<compile_context>
chip_gen: v6e
topology: v6e:2x2x1
jax: 0.10.0
libtpu: 0.0.40
codegen_flags: <defaults>
</compile_context>

<pallas_src>
import functools

import jax
import jax.numpy as jnp
from jax import lax
from jax.experimental import pallas as pl
from jax.experimental.pallas import tpu as pltpu


def downsampler_kernel(x_ref, w1_ref, b1_ref, w2_ref, b2_ref,
                       d_ref, p_ref, h1_ref, *, img_h, tile_h):
    # x_ref : (1, TH+4, W+2, Cin)  bf16  -- row tile w/ 2-row halo, 1-col W pad
    # w1_ref: (3, 3, Cin, Cout)    bf16 ; b1_ref: (1, Cout) f32
    # w2_ref: (3, 3, Cout, Cout)   bf16 ; b2_ref: (1, Cout) f32
    # d_ref : (1, TH, W, Cout)       f32 -- DoubleConv output tile
    # p_ref : (1, TH//2, W//2, Cout) f32 -- maxpool output tile
    # h1_ref: (TH+2, W+2, Cout)    bf16 VMEM scratch (conv1 out, W zero-padded)
    TH = tile_h
    W = x_ref.shape[2] - 2
    Cin = x_ref.shape[3]
    Cout = d_ref.shape[3]
    r = pl.program_id(1)                      # row-tile index within the image

    # ---- conv1 (3x3, pad 1) + bias + ReLU over TH+2 rows (1-row halo) -------
    acc1 = jnp.zeros(((TH + 2) * W, Cout), jnp.float32)
    for ky in range(3):
        for kx in range(3):
            patch = x_ref[0, ky:ky + TH + 2, kx:kx + W, :].reshape(
                (TH + 2) * W, Cin)
            acc1 += jnp.dot(patch, w1_ref[ky, kx],
                            preferred_element_type=jnp.float32)
    h1 = jnp.maximum(acc1 + b1_ref[...], 0.0).reshape(TH + 2, W, Cout)

    # h1 halo rows outside the image must be exactly zero (they act as conv2's
    # zero padding), not conv1(zero-padded x).
    row0 = r * TH - 1
    g = row0 + lax.broadcasted_iota(jnp.int32, (TH + 2, 1, 1), 0)
    h1 = jnp.where(jnp.logical_and(g >= 0, g < img_h), h1, 0.0)

    # Write interior once (bf16); zero only the two 1-column W borders.
    h1_ref[:, 1:W + 1, :] = h1.astype(h1_ref.dtype)
    zcol = jnp.zeros((TH + 2, 1, Cout), h1_ref.dtype)
    h1_ref[:, 0:1, :] = zcol
    h1_ref[:, W + 1:W + 2, :] = zcol

    # ---- conv2 (3x3, pad 1) + bias + ReLU over the TH output rows -----------
    acc2 = jnp.zeros((TH * W, Cout), jnp.float32)
    for ky in range(3):
        for kx in range(3):
            patch = h1_ref[ky:ky + TH, kx:kx + W, :].reshape(TH * W, Cout)
            acc2 += jnp.dot(patch, w2_ref[ky, kx],
                            preferred_element_type=jnp.float32)
    d = jnp.maximum(acc2 + b2_ref[...], 0.0).reshape(TH, W, Cout)
    d_ref[0] = d.astype(d_ref.dtype)

    # ---- MaxPool2d(2, 2): leading-dim pair max, then sublane pair max -------
    dh = jnp.max(d.reshape(TH // 2, 2, W, Cout), axis=1)
    p = jnp.max(dh.reshape(TH // 2, W // 2, 2, Cout), axis=2)
    p_ref[0] = p.astype(p_ref.dtype)


def downsampler(x_nchw, w1_oihw, b1, w2_oihw, b2, *, tile_h=8):
    """NCHW input / OIHW weights in, (d, p) out in NCHW (matches PyTorch)."""
    N, Cin, H, W = x_nchw.shape
    Cout = w1_oihw.shape[0]
    assert H % 2 == 0 and W % 2 == 0
    assert tile_h % 2 == 0 and H % tile_h == 0
    R = H // tile_h
    out_dtype = x_nchw.dtype
    cdt = jnp.bfloat16                       # MXU operand dtype

    # NCHW -> NHWC (lane dim = C); pad 2 halo rows (H) and 1 column (W).
    x = jnp.transpose(x_nchw, (0, 2, 3, 1)).astype(cdt)
    xpad = jnp.pad(x, ((0, 0), (2, 2), (1, 1), (0, 0)))
    # Pre-extract overlapping row windows -> disjoint (tile_h+4)-row blocks.
    x_tiles = jnp.stack(
        [xpad[:, rr * tile_h: rr * tile_h + tile_h + 4] for rr in range(R)],
        axis=1).reshape(N * R, tile_h + 4, W + 2, Cin)

    w1 = jnp.transpose(w1_oihw, (2, 3, 1, 0)).astype(cdt)    # (3,3,Cin,Cout)
    w2 = jnp.transpose(w2_oihw, (2, 3, 1, 0)).astype(cdt)    # (3,3,Cout,Cout)
    b1_2d = b1.reshape(1, Cout).astype(jnp.float32)
    b2_2d = b2.reshape(1, Cout).astype(jnp.float32)

    kernel = functools.partial(downsampler_kernel, img_h=H, tile_h=tile_h)

    flops = 2 * N * H * W * 9 * Cout * (Cin + Cout)
    bytes_accessed = (
        N * R * (tile_h + 4) * (W + 2) * Cin * 2
        + 9 * Cin * Cout * 2 + 9 * Cout * Cout * 2
        + N * H * W * Cout * 4
        + N * (H // 2) * (W // 2) * Cout * 4)

    d_tiles, p_tiles = pl.pallas_call(
        kernel,
        out_shape=(
            jax.ShapeDtypeStruct((N * R, tile_h, W, Cout), jnp.float32),
            jax.ShapeDtypeStruct((N * R, tile_h // 2, W // 2, Cout),
                                 jnp.float32),
        ),
        grid=(N, R),
        in_specs=[
            pl.BlockSpec((1, tile_h + 4, W + 2, Cin),
                         lambda n, rr: (n * R + rr, 0, 0, 0)),
            pl.BlockSpec((3, 3, Cin, Cout), lambda n, rr: (0, 0, 0, 0)),
            pl.BlockSpec((1, Cout), lambda n, rr: (0, 0)),
            pl.BlockSpec((3, 3, Cout, Cout), lambda n, rr: (0, 0, 0, 0)),
            pl.BlockSpec((1, Cout), lambda n, rr: (0, 0)),
        ],
        out_specs=(
            pl.BlockSpec((1, tile_h, W, Cout),
                         lambda n, rr: (n * R + rr, 0, 0, 0)),
            pl.BlockSpec((1, tile_h // 2, W // 2, Cout),
                         lambda n, rr: (n * R + rr, 0, 0, 0)),
        ),
        scratch_shapes=[pltpu.VMEM((tile_h + 2, W + 2, Cout), cdt)],
        compiler_params=pltpu.CompilerParams(
            dimension_semantics=("parallel", "parallel"),
            vmem_limit_bytes=32 * 1024 * 1024),
        cost_estimate=pl.CostEstimate(flops=flops, transcendentals=0,
                                      bytes_accessed=bytes_accessed),
    )(x_tiles, w1, b1_2d, w2, b2_2d)

    d = d_tiles.reshape(N, H, W, Cout)
    p = p_tiles.reshape(N, H // 2, W // 2, Cout)
    d = jnp.transpose(d, (0, 3, 1, 2)).astype(out_dtype)
    p = jnp.transpose(p, (0, 3, 1, 2)).astype(out_dtype)
    return d, p


def reference(x_nchw, w1_oihw, b1, w2_oihw, b2):
    """Same DoubleConv+pool, bf16 operands / f32 accumulation like the kernel."""
    dn = ("NCHW", "OIHW", "NCHW")
    cdt = jnp.bfloat16
    h = lax.conv_general_dilated(x_nchw.astype(cdt), w1_oihw.astype(cdt),
                                 (1, 1), ((1, 1), (1, 1)),
                                 dimension_numbers=dn,
                                 preferred_element_type=jnp.float32)
    h = jnp.maximum(h + b1[None, :, None, None], 0.0)
    d = lax.conv_general_dilated(h.astype(cdt), w2_oihw.astype(cdt),
                                 (1, 1), ((1, 1), (1, 1)),
                                 dimension_numbers=dn,
                                 preferred_element_type=jnp.float32)
    d = jnp.maximum(d + b2[None, :, None, None], 0.0)
    p = lax.reduce_window(d, -jnp.inf, lax.max,
                          window_dimensions=(1, 1, 2, 2),
                          window_strides=(1, 1, 2, 2),
                          padding="VALID")
    return d, p


if __name__ == "__main__":
    N, Cin, Cout, H, W = 2, 4, 8, 16, 16

    key = jax.random.PRNGKey(0)
    kx_, kw1, kb1, kw2, kb2 = jax.random.split(key, 5)
    x = jax.random.normal(kx_, (N, Cin, H, W), jnp.float32)
    # PyTorch-shaped params (OIHW weights, per-channel bias), deterministic.
    w1 = jax.random.normal(kw1, (Cout, Cin, 3, 3), jnp.float32) * 0.1
    b1 = jax.random.normal(kb1, (Cout,), jnp.float32) * 0.1
    w2 = jax.random.normal(kw2, (Cout, Cout, 3, 3), jnp.float32) * 0.1
    b2 = jax.random.normal(kb2, (Cout,), jnp.float32) * 0.1

    d, p = downsampler(x, w1, b1, w2, b2, tile_h=8)
    jax.block_until_ready((d, p))

    d_ref, p_ref = reference(x, w1, b1, w2, b2)
    assert d.shape == (N, Cout, H, W) and p.shape == (N, Cout, H // 2, W // 2)
    assert jnp.allclose(d, d_ref, atol=2e-2, rtol=2e-2), \
        float(jnp.max(jnp.abs(d - d_ref)))
    assert jnp.allclose(p, p_ref, atol=2e-2, rtol=2e-2), \
        float(jnp.max(jnp.abs(p - p_ref)))

    print("KERNEL_OK")
</pallas_src>

<mosaic_0001>
module attributes {stable_mosaic.version = 11 : i64} {
  func.func @downsampler_kernel(%arg0: i32, %arg1: i32, %arg2: memref<1x12x18x4xbf16, #tpu.memory_space<vmem>>, %arg3: memref<3x3x4x8xbf16, #tpu.memory_space<vmem>>, %arg4: memref<1x8xf32, #tpu.memory_space<vmem>>, %arg5: memref<3x3x8x8xbf16, #tpu.memory_space<vmem>>, %arg6: memref<1x8xf32, #tpu.memory_space<vmem>>, %arg7: memref<1x8x16x8xf32, #tpu.memory_space<vmem>>, %arg8: memref<1x4x8x8xf32, #tpu.memory_space<vmem>>, %arg9: memref<10x18x8xbf16, #tpu.memory_space<vmem>>) attributes {dimension_semantics = [#tpu.dimension_semantics<parallel>, #tpu.dimension_semantics<parallel>], iteration_bounds = array<i64: 2, 2>, scalar_prefetch = 0 : i64, scratch_operands = 1 : i64, tpu.core_type = #tpu.core_type<tc>, window_params = [{transform_indices = @transform_0, window_bounds = array<i64: 1, 12, 18, 4>}, {pipeline_mode = #tpu.pipeline_mode<synchronous>, transform_indices = @transform_1, window_bounds = array<i64: 3, 3, 4, 8>}, {pipeline_mode = #tpu.pipeline_mode<synchronous>, transform_indices = @transform_2, window_bounds = array<i64: 1, 8>}, {pipeline_mode = #tpu.pipeline_mode<synchronous>, transform_indices = @transform_3, window_bounds = array<i64: 3, 3, 8, 8>}, {pipeline_mode = #tpu.pipeline_mode<synchronous>, transform_indices = @transform_4, window_bounds = array<i64: 1, 8>}, {transform_indices = @transform_5, window_bounds = array<i64: 1, 8, 16, 8>}, {transform_indices = @transform_6, window_bounds = array<i64: 1, 4, 8, 8>}]} {
    %cst = arith.constant 0.000000e+00 : f32
    %0 = vector.broadcast %cst : f32 to vector<160x8xf32>
    %c0 = arith.constant 0 : index
    %c0_0 = arith.constant 0 : index
    %c0_1 = arith.constant 0 : index
    %c0_2 = arith.constant 0 : index
    %1 = vector.load %arg2[%c0, %c0_0, %c0_1, %c0_2] : memref<1x12x18x4xbf16, #tpu.memory_space<vmem>>, vector<1x10x16x4xbf16>
    %2 = vector.shape_cast %1 : vector<1x10x16x4xbf16> to vector<10x16x4xbf16>
    %3 = vector.shape_cast %2 : vector<10x16x4xbf16> to vector<160x4xbf16>
    %c0_3 = arith.constant 0 : index
    %c0_4 = arith.constant 0 : index
    %c0_5 = arith.constant 0 : index
    %c0_6 = arith.constant 0 : index
    %4 = vector.load %arg3[%c0_3, %c0_4, %c0_5, %c0_6] : memref<3x3x4x8xbf16, #tpu.memory_space<vmem>>, vector<1x1x4x8xbf16>
    %5 = vector.shape_cast %4 : vector<1x1x4x8xbf16> to vector<4x8xbf16>
    %cst_7 = arith.constant dense<0.000000e+00> : vector<160x8xf32>
    %6 = tpu.matmul %3, %5, %cst_7 {dimension_numbers = #tpu.dot_dimension_numbers<[1], [0], [0], [1], [0, 0, 1, 1], [], []>} : vector<160x4xbf16>, vector<4x8xbf16>, vector<160x8xf32> -> vector<160x8xf32>
    %7 = arith.addf %0, %6 : vector<160x8xf32>
    %c0_8 = arith.constant 0 : index
    %c0_9 = arith.constant 0 : index
    %c1 = arith.constant 1 : index
    %c0_10 = arith.constant 0 : index
    %8 = vector.load %arg2[%c0_8, %c0_9, %c1, %c0_10] : memref<1x12x18x4xbf16, #tpu.memory_space<vmem>>, vector<1x10x16x4xbf16>
    %9 = vector.shape_cast %8 : vector<1x10x16x4xbf16> to vector<10x16x4xbf16>
    %10 = vector.shape_cast %9 : vector<10x16x4xbf16> to vector<160x4xbf16>
    %c0_11 = arith.constant 0 : index
    %c1_12 = arith.constant 1 : index
    %c0_13 = arith.constant 0 : index
    %c0_14 = arith.constant 0 : index
    %11 = vector.load %arg3[%c0_11, %c1_12, %c0_13, %c0_14] : memref<3x3x4x8xbf16, #tpu.memory_space<vmem>>, vector<1x1x4x8xbf16>
    %12 = vector.shape_cast %11 : vector<1x1x4x8xbf16> to vector<4x8xbf16>
    %cst_15 = arith.constant dense<0.000000e+00> : vector<160x8xf32>
    %13 = tpu.matmul %10, %12, %cst_15 {dimension_numbers = #tpu.dot_dimension_numbers<[1], [0], [0], [1], [0, 0, 1, 1], [], []>} : vector<160x4xbf16>, vector<4x8xbf16>, vector<160x8xf32> -> vector<160x8xf32>
    %14 = arith.addf %7, %13 : vector<160x8xf32>
    %c0_16 = arith.constant 0 : index
    %c0_17 = arith.constant 0 : index
    %c2 = arith.constant 2 : index
    %c0_18 = arith.constant 0 : index
    %15 = vector.load %arg2[%c0_16, %c0_17, %c2, %c0_18] : memref<1x12x18x4xbf16, #tpu.memory_space<vmem>>, vector<1x10x16x4xbf16>
    %16 = vector.shape_cast %15 : vector<1x10x16x4xbf16> to vector<10x16x4xbf16>
    %17 = vector.shape_cast %16 : vector<10x16x4xbf16> to vector<160x4xbf16>
    %c0_19 = arith.constant 0 : index
    %c2_20 = arith.constant 2 : index
    %c0_21 = arith.constant 0 : index
    %c0_22 = arith.constant 0 : index
    %18 = vector.load %arg3[%c0_19, %c2_20, %c0_21, %c0_22] : memref<3x3x4x8xbf16, #tpu.memory_space<vmem>>, vector<1x1x4x8xbf16>
    %19 = vector.shape_cast %18 : vector<1x1x4x8xbf16> to vector<4x8xbf16>
    %cst_23 = arith.constant dense<0.000000e+00> : vector<160x8xf32>
    %20 = tpu.matmul %17, %19, %cst_23 {dimension_numbers = #tpu.dot_dimension_numbers<[1], [0], [0], [1], [0, 0, 1, 1], [], []>} : vector<160x4xbf16>, vector<4x8xbf16>, vector<160x8xf32> -> vector<160x8xf32>
    %21 = arith.addf %14, %20 : vector<160x8xf32>
    %c0_24 = arith.constant 0 : index
    %c1_25 = arith.constant 1 : index
    %c0_26 = arith.constant 0 : index
    %c0_27 = arith.constant 0 : index
    %22 = vector.load %arg2[%c0_24, %c1_25, %c0_26, %c0_27] : memref<1x12x18x4xbf16, #tpu.memory_space<vmem>>, vector<1x10x16x4xbf16>
    %23 = vector.shape_cast %22 : vector<1x10x16x4xbf16> to vector<10x16x4xbf16>
    %24 = vector.shape_cast %23 : vector<10x16x4xbf16> to vector<160x4xbf16>
    %c1_28 = arith.constant 1 : index
    %c0_29 = arith.constant 0 : index
    %c0_30 = arith.constant 0 : index
    %c0_31 = arith.constant 0 : index
    %25 = vector.load %arg3[%c1_28, %c0_29, %c0_30, %c0_31] : memref<3x3x4x8xbf16, #tpu.memory_space<vmem>>, vector<1x1x4x8xbf16>
    %26 = vector.shape_cast %25 : vector<1x1x4x8xbf16> to vector<4x8xbf16>
    %cst_32 = arith.constant dense<0.000000e+00> : vector<160x8xf32>
    %27 = tpu.matmul %24, %26, %cst_32 {dimension_numbers = #tpu.dot_dimension_numbers<[1], [0], [0], [1], [0, 0, 1, 1], [], []>} : vector<160x4xbf16>, vector<4x8xbf16>, vector<160x8xf32> -> vector<160x8xf32>
    %28 = arith.addf %21, %27 : vector<160x8xf32>
    %c0_33 = arith.constant 0 : index
    %c1_34 = arith.constant 1 : index
    %c1_35 = arith.constant 1 : index
    %c0_36 = arith.constant 0 : index
    %29 = vector.load %arg2[%c0_33, %c1_34, %c1_35, %c0_36] : memref<1x12x18x4xbf16, #tpu.memory_space<vmem>>, vector<1x10x16x4xbf16>
    %30 = vector.shape_cast %29 : vector<1x10x16x4xbf16> to vector<10x16x4xbf16>
    %31 = vector.shape_cast %30 : vector<10x16x4xbf16> to vector<160x4xbf16>
    %c1_37 = arith.constant 1 : index
    %c1_38 = arith.constant 1 : index
    %c0_39 = arith.constant 0 : index
    %c0_40 = arith.constant 0 : index
    %32 = vector.load %arg3[%c1_37, %c1_38, %c0_39, %c0_40] : memref<3x3x4x8xbf16, #tpu.memory_space<vmem>>, vector<1x1x4x8xbf16>
    %33 = vector.shape_cast %32 : vector<1x1x4x8xbf16> to vector<4x8xbf16>
    %cst_41 = arith.constant dense<0.000000e+00> : vector<160x8xf32>
    %34 = tpu.matmul %31, %33, %cst_41 {dimension_numbers = #tpu.dot_dimension_numbers<[1], [0], [0], [1], [0, 0, 1, 1], [], []>} : vector<160x4xbf16>, vector<4x8xbf16>, vector<160x8xf32> -> vector<160x8xf32>
    %35 = arith.addf %28, %34 : vector<160x8xf32>
    %c0_42 = arith.constant 0 : index
    %c1_43 = arith.constant 1 : index
    %c2_44 = arith.constant 2 : index
    %c0_45 = arith.constant 0 : index
    %36 = vector.load %arg2[%c0_42, %c1_43, %c2_44, %c0_45] : memref<1x12x18x4xbf16, #tpu.memory_space<vmem>>, vector<1x10x16x4xbf16>
    %37 = vector.shape_cast %36 : vector<1x10x16x4xbf16> to vector<10x16x4xbf16>
    %38 = vector.shape_cast %37 : vector<10x16x4xbf16> to vector<160x4xbf16>
    %c1_46 = arith.constant 1 : index
    %c2_47 = arith.constant 2 : index
    %c0_48 = arith.constant 0 : index
    %c0_49 = arith.constant 0 : index
    %39 = vector.load %arg3[%c1_46, %c2_47, %c0_48, %c0_49] : memref<3x3x4x8xbf16, #tpu.memory_space<vmem>>, vector<1x1x4x8xbf16>
    %40 = vector.shape_cast %39 : vector<1x1x4x8xbf16> to vector<4x8xbf16>
    %cst_50 = arith.constant dense<0.000000e+00> : vector<160x8xf32>
    %41 = tpu.matmul %38, %40, %cst_50 {dimension_numbers = #tpu.dot_dimension_numbers<[1], [0], [0], [1], [0, 0, 1, 1], [], []>} : vector<160x4xbf16>, vector<4x8xbf16>, vector<160x8xf32> -> vector<160x8xf32>
    %42 = arith.addf %35, %41 : vector<160x8xf32>
    %c0_51 = arith.constant 0 : index
    %c2_52 = arith.constant 2 : index
    %c0_53 = arith.constant 0 : index
    %c0_54 = arith.constant 0 : index
    %43 = vector.load %arg2[%c0_51, %c2_52, %c0_53, %c0_54] : memref<1x12x18x4xbf16, #tpu.memory_space<vmem>>, vector<1x10x16x4xbf16>
    %44 = vector.shape_cast %43 : vector<1x10x16x4xbf16> to vector<10x16x4xbf16>
    %45 = vector.shape_cast %44 : vector<10x16x4xbf16> to vector<160x4xbf16>
    %c2_55 = arith.constant 2 : index
    %c0_56 = arith.constant 0 : index
    %c0_57 = arith.constant 0 : index
    %c0_58 = arith.constant 0 : index
    %46 = vector.load %arg3[%c2_55, %c0_56, %c0_57, %c0_58] : memref<3x3x4x8xbf16, #tpu.memory_space<vmem>>, vector<1x1x4x8xbf16>
    %47 = vector.shape_cast %46 : vector<1x1x4x8xbf16> to vector<4x8xbf16>
    %cst_59 = arith.constant dense<0.000000e+00> : vector<160x8xf32>
    %48 = tpu.matmul %45, %47, %cst_59 {dimension_numbers = #tpu.dot_dimension_numbers<[1], [0], [0], [1], [0, 0, 1, 1], [], []>} : vector<160x4xbf16>, vector<4x8xbf16>, vector<160x8xf32> -> vector<160x8xf32>
    %49 = arith.addf %42, %48 : vector<160x8xf32>
    %c0_60 = arith.constant 0 : index
    %c2_61 = arith.constant 2 : index
    %c1_62 = arith.constant 1 : index
    %c0_63 = arith.constant 0 : index
    %50 = vector.load %arg2[%c0_60, %c2_61, %c1_62, %c0_63] : memref<1x12x18x4xbf16, #tpu.memory_space<vmem>>, vector<1x10x16x4xbf16>
    %51 = vector.shape_cast %50 : vector<1x10x16x4xbf16> to vector<10x16x4xbf16>
    %52 = vector.shape_cast %51 : vector<10x16x4xbf16> to vector<160x4xbf16>
    %c2_64 = arith.constant 2 : index
    %c1_65 = arith.constant 1 : index
    %c0_66 = arith.constant 0 : index
    %c0_67 = arith.constant 0 : index
    %53 = vector.load %arg3[%c2_64, %c1_65, %c0_66, %c0_67] : memref<3x3x4x8xbf16, #tpu.memory_space<vmem>>, vector<1x1x4x8xbf16>
    %54 = vector.shape_cast %53 : vector<1x1x4x8xbf16> to vector<4x8xbf16>
    %cst_68 = arith.constant dense<0.000000e+00> : vector<160x8xf32>
    %55 = tpu.matmul %52, %54, %cst_68 {dimension_numbers = #tpu.dot_dimension_numbers<[1], [0], [0], [1], [0, 0, 1, 1], [], []>} : vector<160x4xbf16>, vector<4x8xbf16>, vector<160x8xf32> -> vector<160x8xf32>
    %56 = arith.addf %49, %55 : vector<160x8xf32>
    %c0_69 = arith.constant 0 : index
    %c2_70 = arith.constant 2 : index
    %c2_71 = arith.constant 2 : index
    %c0_72 = arith.constant 0 : index
    %57 = vector.load %arg2[%c0_69, %c2_70, %c2_71, %c0_72] : memref<1x12x18x4xbf16, #tpu.memory_space<vmem>>, vector<1x10x16x4xbf16>
    %58 = vector.shape_cast %57 : vector<1x10x16x4xbf16> to vector<10x16x4xbf16>
    %59 = vector.shape_cast %58 : vector<10x16x4xbf16> to vector<160x4xbf16>
    %c2_73 = arith.constant 2 : index
    %c2_74 = arith.constant 2 : index
    %c0_75 = arith.constant 0 : index
    %c0_76 = arith.constant 0 : index
    %60 = vector.load %arg3[%c2_73, %c2_74, %c0_75, %c0_76] : memref<3x3x4x8xbf16, #tpu.memory_space<vmem>>, vector<1x1x4x8xbf16>
    %61 = vector.shape_cast %60 : vector<1x1x4x8xbf16> to vector<4x8xbf16>
    %cst_77 = arith.constant dense<0.000000e+00> : vector<160x8xf32>
    %62 = tpu.matmul %59, %61, %cst_77 {dimension_numbers = #tpu.dot_dimension_numbers<[1], [0], [0], [1], [0, 0, 1, 1], [], []>} : vector<160x4xbf16>, vector<4x8xbf16>, vector<160x8xf32> -> vector<160x8xf32>
    %63 = arith.addf %56, %62 : vector<160x8xf32>
    %c0_78 = arith.constant 0 : index
    %c0_79 = arith.constant 0 : index
    %64 = vector.load %arg4[%c0_78, %c0_79] : memref<1x8xf32, #tpu.memory_space<vmem>>, vector<1x8xf32>
    %65 = vector.broadcast %64 : vector<1x8xf32> to vector<160x8xf32>
    %66 = arith.addf %63, %65 : vector<160x8xf32>
    %cst_80 = arith.constant 0.000000e+00 : f32
    %67 = vector.broadcast %cst_80 : f32 to vector<160x8xf32>
    %68 = arith.maximumf %66, %67 : vector<160x8xf32>
    %69 = vector.shape_cast %68 : vector<160x8xf32> to vector<10x16x8xf32>
    %c8_i32 = arith.constant 8 : i32
    %70 = arith.muli %arg1, %c8_i32 : i32
    %c1_i32 = arith.constant 1 : i32
    %71 = arith.subi %70, %c1_i32 : i32
    %72 = tpu.iota {dimensions = array<i32: 0>} : vector<10x1x1xi32>
    %73 = vector.broadcast %71 : i32 to vector<10x1x1xi32>
    %74 = arith.addi %73, %72 : vector<10x1x1xi32>
    %c0_i32 = arith.constant 0 : i32
    %75 = vector.broadcast %c0_i32 : i32 to vector<10x1x1xi32>
    %76 = arith.cmpi sge, %74, %75 : vector<10x1x1xi32>
    %c16_i32 = arith.constant 16 : i32
    %77 = vector.broadcast %c16_i32 : i32 to vector<10x1x1xi32>
    %78 = arith.cmpi slt, %74, %77 : vector<10x1x1xi32>
    %79 = arith.andi %76, %78 : vector<10x1x1xi1>
    %cst_81 = arith.constant 0.000000e+00 : f32
    %80 = vector.shape_cast %79 : vector<10x1x1xi1> to vector<10x1x1xi1>
    %81 = vector.broadcast %80 : vector<10x1x1xi1> to vector<10x16x8xi1>
    %82 = vector.broadcast %cst_81 : f32 to vector<10x16x8xf32>
    %83 = arith.select %81, %69, %82 : vector<10x16x8xi1>, vector<10x16x8xf32>
    %84 = arith.truncf %83 : vector<10x16x8xf32> to vector<10x16x8xbf16>
    %c0_82 = arith.constant 0 : index
    %c1_83 = arith.constant 1 : index
    %c0_84 = arith.constant 0 : index
    %85 = vector.load %arg9[%c0_82, %c1_83, %c0_84] : memref<10x18x8xbf16, #tpu.memory_space<vmem>>, vector<10x16x8xbf16>
    tpu.vector_store %arg9[%c0_82, %c1_83, %c0_84], %84 {strides = array<i32>} : memref<10x18x8xbf16, #tpu.memory_space<vmem>>, vector<10x16x8xbf16>,
    %cst_85 = arith.constant 0.000000e+00 : bf16
    %86 = vector.broadcast %cst_85 : bf16 to vector<10x1x8xbf16>
    %c0_86 = arith.constant 0 : index
    %c0_87 = arith.constant 0 : index
    %c0_88 = arith.constant 0 : index
    %87 = vector.load %arg9[%c0_86, %c0_87, %c0_88] : memref<10x18x8xbf16, #tpu.memory_space<vmem>>, vector<10x1x8xbf16>
    tpu.vector_store %arg9[%c0_86, %c0_87, %c0_88], %86 {strides = array<i32>} : memref<10x18x8xbf16, #tpu.memory_space<vmem>>, vector<10x1x8xbf16>,
    %c0_89 = arith.constant 0 : index
    %c17 = arith.constant 17 : index
    %c0_90 = arith.constant 0 : index
    %88 = vector.load %arg9[%c0_89, %c17, %c0_90] : memref<10x18x8xbf16, #tpu.memory_space<vmem>>, vector<10x1x8xbf16>
    tpu.vector_store %arg9[%c0_89, %c17, %c0_90], %86 {strides = array<i32>} : memref<10x18x8xbf16, #tpu.memory_space<vmem>>, vector<10x1x8xbf16>,
    %cst_91 = arith.constant 0.000000e+00 : f32
    %89 = vector.broadcast %cst_91 : f32 to vector<128x8xf32>
    %c0_92 = arith.constant 0 : index
    %c0_93 = arith.constant 0 : index
    %c0_94 = arith.constant 0 : index
    %90 = vector.load %arg9[%c0_92, %c0_93, %c0_94] : memref<10x18x8xbf16, #tpu.memory_space<vmem>>, vector<8x16x8xbf16>
    %91 = vector.shape_cast %90 : vector<8x16x8xbf16> to vector<128x8xbf16>
    %c0_95 = arith.constant 0 : index
    %c0_96 = arith.constant 0 : index
    %c0_97 = arith.constant 0 : index
    %c0_98 = arith.constant 0 : index
    %92 = vector.load %arg5[%c0_95, %c0_96, %c0_97, %c0_98] : memref<3x3x8x8xbf16, #tpu.memory_space<vmem>>, vector<1x1x8x8xbf16>
    %93 = vector.shape_cast %92 : vector<1x1x8x8xbf16> to vector<8x8xbf16>
    %cst_99 = arith.constant dense<0.000000e+00> : vector<128x8xf32>
    %94 = tpu.matmul %91, %93, %cst_99 {dimension_numbers = #tpu.dot_dimension_numbers<[1], [0], [0], [1], [0, 0, 1, 1], [], []>} : vector<128x8xbf16>, vector<8x8xbf16>, vector<128x8xf32> -> vector<128x8xf32>
    %95 = arith.addf %89, %94 : vector<128x8xf32>
    %c0_100 = arith.constant 0 : index
    %c1_101 = arith.constant 1 : index
    %c0_102 = arith.constant 0 : index
    %96 = vector.load %arg9[%c0_100, %c1_101, %c0_102] : memref<10x18x8xbf16, #tpu.memory_space<vmem>>, vector<8x16x8xbf16>
    %97 = vector.shape_cast %96 : vector<8x16x8xbf16> to vector<128x8xbf16>
    %c0_103 = arith.constant 0 : index
    %c1_104 = arith.constant 1 : index
    %c0_105 = arith.constant 0 : index
    %c0_106 = arith.constant 0 : index
    %98 = vector.load %arg5[%c0_103, %c1_104, %c0_105, %c0_106] : memref<3x3x8x8xbf16, #tpu.memory_space<vmem>>, vector<1x1x8x8xbf16>
    %99 = vector.shape_cast %98 : vector<1x1x8x8xbf16> to vector<8x8xbf16>
    %cst_107 = arith.constant dense<0.000000e+00> : vector<128x8xf32>
    %100 = tpu.matmul %97, %99, %cst_107 {dimension_numbers = #tpu.dot_dimension_numbers<[1], [0], [0], [1], [0, 0, 1, 1], [], []>} : vector<128x8xbf16>, vector<8x8xbf16>, vector<128x8xf32> -> vector<128x8xf32>
    %101 = arith.addf %95, %100 : vector<128x8xf32>
    %c0_108 = arith.constant 0 : index
    %c2_109 = arith.constant 2 : index
    %c0_110 = arith.constant 0 : index
    %102 = vector.load %arg9[%c0_108, %c2_109, %c0_110] : memref<10x18x8xbf16, #tpu.memory_space<vmem>>, vector<8x16x8xbf16>
    %103 = vector.shape_cast %102 : vector<8x16x8xbf16> to vector<128x8xbf16>
    %c0_111 = arith.constant 0 : index
    %c2_112 = arith.constant 2 : index
    %c0_113 = arith.constant 0 : index
    %c0_114 = arith.constant 0 : index
    %104 = vector.load %arg5[%c0_111, %c2_112, %c0_113, %c0_114] : memref<3x3x8x8xbf16, #tpu.memory_space<vmem>>, vector<1x1x8x8xbf16>
    %105 = vector.shape_cast %104 : vector<1x1x8x8xbf16> to vector<8x8xbf16>
    %cst_115 = arith.constant dense<0.000000e+00> : vector<128x8xf32>
    %106 = tpu.matmul %103, %105, %cst_115 {dimension_numbers = #tpu.dot_dimension_numbers<[1], [0], [0], [1], [0, 0, 1, 1], [], []>} : vector<128x8xbf16>, vector<8x8xbf16>, vector<128x8xf32> -> vector<128x8xf32>
    %107 = arith.addf %101, %106 : vector<128x8xf32>
    %c1_116 = arith.constant 1 : index
    %c0_117 = arith.constant 0 : index
    %c0_118 = arith.constant 0 : index
    %108 = vector.load %arg9[%c1_116, %c0_117, %c0_118] : memref<10x18x8xbf16, #tpu.memory_space<vmem>>, vector<8x16x8xbf16>
    %109 = vector.shape_cast %108 : vector<8x16x8xbf16> to vector<128x8xbf16>
    %c1_119 = arith.constant 1 : index
    %c0_120 = arith.constant 0 : index
    %c0_121 = arith.constant 0 : index
    %c0_122 = arith.constant 0 : index
    %110 = vector.load %arg5[%c1_119, %c0_120, %c0_121, %c0_122] : memref<3x3x8x8xbf16, #tpu.memory_space<vmem>>, vector<1x1x8x8xbf16>
    %111 = vector.shape_cast %110 : vector<1x1x8x8xbf16> to vector<8x8xbf16>
    %cst_123 = arith.constant dense<0.000000e+00> : vector<128x8xf32>
    %112 = tpu.matmul %109, %111, %cst_123 {dimension_numbers = #tpu.dot_dimension_numbers<[1], [0], [0], [1], [0, 0, 1, 1], [], []>} : vector<128x8xbf16>, vector<8x8xbf16>, vector<128x8xf32> -> vector<128x8xf32>
    %113 = arith.addf %107, %112 : vector<128x8xf32>
    %c1_124 = arith.constant 1 : index
    %c1_125 = arith.constant 1 : index
    %c0_126 = arith.constant 0 : index
    %114 = vector.load %arg9[%c1_124, %c1_125, %c0_126] : memref<10x18x8xbf16, #tpu.memory_space<vmem>>, vector<8x16x8xbf16>
    %115 = vector.shape_cast %114 : vector<8x16x8xbf16> to vector<128x8xbf16>
    %c1_127 = arith.constant 1 : index
    %c1_128 = arith.constant 1 : index
    %c0_129 = arith.constant 0 : index
    %c0_130 = arith.constant 0 : index
    %116 = vector.load %arg5[%c1_127, %c1_128, %c0_129, %c0_130] : memref<3x3x8x8xbf16, #tpu.memory_space<vmem>>, vector<1x1x8x8xbf16>
    %117 = vector.shape_cast %116 : vector<1x1x8x8xbf16> to vector<8x8xbf16>
    %cst_131 = arith.constant dense<0.000000e+00> : vector<128x8xf32>
    %118 = tpu.matmul %115, %117, %cst_131 {dimension_numbers = #tpu.dot_dimension_numbers<[1], [0], [0], [1], [0, 0, 1, 1], [], []>} : vector<128x8xbf16>, vector<8x8xbf16>, vector<128x8xf32> -> vector<128x8xf32>
    %119 = arith.addf %113, %118 : vector<128x8xf32>
    %c1_132 = arith.constant 1 : index
    %c2_133 = arith.constant 2 : index
    %c0_134 = arith.constant 0 : index
    %120 = vector.load %arg9[%c1_132, %c2_133, %c0_134] : memref<10x18x8xbf16, #tpu.memory_space<vmem>>, vector<8x16x8xbf16>
    %121 = vector.shape_cast %120 : vector<8x16x8xbf16> to vector<128x8xbf16>
    %c1_135 = arith.constant 1 : index
    %c2_136 = arith.constant 2 : index
    %c0_137 = arith.constant 0 : index
    %c0_138 = arith.constant 0 : index
    %122 = vector.load %arg5[%c1_135, %c2_136, %c0_137, %c0_138] : memref<3x3x8x8xbf16, #tpu.memory_space<vmem>>, vector<1x1x8x8xbf16>
    %123 = vector.shape_cast %122 : vector<1x1x8x8xbf16> to vector<8x8xbf16>
    %cst_139 = arith.constant dense<0.000000e+00> : vector<128x8xf32>
    %124 = tpu.matmul %121, %123, %cst_139 {dimension_numbers = #tpu.dot_dimension_numbers<[1], [0], [0], [1], [0, 0, 1, 1], [], []>} : vector<128x8xbf16>, vector<8x8xbf16>, vector<128x8xf32> -> vector<128x8xf32>
    %125 = arith.addf %119, %124 : vector<128x8xf32>
    %c2_140 = arith.constant 2 : index
    %c0_141 = arith.constant 0 : index
    %c0_142 = arith.constant 0 : index
    %126 = vector.load %arg9[%c2_140, %c0_141, %c0_142] : memref<10x18x8xbf16, #tpu.memory_space<vmem>>, vector<8x16x8xbf16>
    %127 = vector.shape_cast %126 : vector<8x16x8xbf16> to vector<128x8xbf16>
    %c2_143 = arith.constant 2 : index
    %c0_144 = arith.constant 0 : index
    %c0_145 = arith.constant 0 : index
    %c0_146 = arith.constant 0 : index
    %128 = vector.load %arg5[%c2_143, %c0_144, %c0_145, %c0_146] : memref<3x3x8x8xbf16, #tpu.memory_space<vmem>>, vector<1x1x8x8xbf16>
    %129 = vector.shape_cast %128 : vector<1x1x8x8xbf16> to vector<8x8xbf16>
    %cst_147 = arith.constant dense<0.000000e+00> : vector<128x8xf32>
    %130 = tpu.matmul %127, %129, %cst_147 {dimension_numbers = #tpu.dot_dimension_numbers<[1], [0], [0], [1], [0, 0, 1, 1], [], []>} : vector<128x8xbf16>, vector<8x8xbf16>, vector<128x8xf32> -> vector<128x8xf32>
    %131 = arith.addf %125, %130 : vector<128x8xf32>
    %c2_148 = arith.constant 2 : index
    %c1_149 = arith.constant 1 : index
    %c0_150 = arith.constant 0 : index
    %132 = vector.load %arg9[%c2_148, %c1_149, %c0_150] : memref<10x18x8xbf16, #tpu.memory_space<vmem>>, vector<8x16x8xbf16>
    %133 = vector.shape_cast %132 : vector<8x16x8xbf16> to vector<128x8xbf16>
    %c2_151 = arith.constant 2 : index
    %c1_152 = arith.constant 1 : index
    %c0_153 = arith.constant 0 : index
    %c0_154 = arith.constant 0 : index
    %134 = vector.load %arg5[%c2_151, %c1_152, %c0_153, %c0_154] : memref<3x3x8x8xbf16, #tpu.memory_space<vmem>>, vector<1x1x8x8xbf16>
    %135 = vector.shape_cast %134 : vector<1x1x8x8xbf16> to vector<8x8xbf16>
    %cst_155 = arith.constant dense<0.000000e+00> : vector<128x8xf32>
    %136 = tpu.matmul %133, %135, %cst_155 {dimension_numbers = #tpu.dot_dimension_numbers<[1], [0], [0], [1], [0, 0, 1, 1], [], []>} : vector<128x8xbf16>, vector<8x8xbf16>, vector<128x8xf32> -> vector<128x8xf32>
    %137 = arith.addf %131, %136 : vector<128x8xf32>
    %c2_156 = arith.constant 2 : index
    %c2_157 = arith.constant 2 : index
    %c0_158 = arith.constant 0 : index
    %138 = vector.load %arg9[%c2_156, %c2_157, %c0_158] : memref<10x18x8xbf16, #tpu.memory_space<vmem>>, vector<8x16x8xbf16>
    %139 = vector.shape_cast %138 : vector<8x16x8xbf16> to vector<128x8xbf16>
    %c2_159 = arith.constant 2 : index
    %c2_160 = arith.constant 2 : index
    %c0_161 = arith.constant 0 : index
    %c0_162 = arith.constant 0 : index
    %140 = vector.load %arg5[%c2_159, %c2_160, %c0_161, %c0_162] : memref<3x3x8x8xbf16, #tpu.memory_space<vmem>>, vector<1x1x8x8xbf16>
    %141 = vector.shape_cast %140 : vector<1x1x8x8xbf16> to vector<8x8xbf16>
    %cst_163 = arith.constant dense<0.000000e+00> : vector<128x8xf32>
    %142 = tpu.matmul %139, %141, %cst_163 {dimension_numbers = #tpu.dot_dimension_numbers<[1], [0], [0], [1], [0, 0, 1, 1], [], []>} : vector<128x8xbf16>, vector<8x8xbf16>, vector<128x8xf32> -> vector<128x8xf32>
    %143 = arith.addf %137, %142 : vector<128x8xf32>
    %c0_164 = arith.constant 0 : index
    %c0_165 = arith.constant 0 : index
    %144 = vector.load %arg6[%c0_164, %c0_165] : memref<1x8xf32, #tpu.memory_space<vmem>>, vector<1x8xf32>
    %145 = vector.broadcast %144 : vector<1x8xf32> to vector<128x8xf32>
    %146 = arith.addf %143, %145 : vector<128x8xf32>
    %cst_166 = arith.constant 0.000000e+00 : f32
    %147 = vector.broadcast %cst_166 : f32 to vector<128x8xf32>
    %148 = arith.maximumf %146, %147 : vector<128x8xf32>
    %149 = vector.shape_cast %148 : vector<128x8xf32> to vector<8x16x8xf32>
    %c0_167 = arith.constant 0 : index
    %c0_168 = arith.constant 0 : index
    %c0_169 = arith.constant 0 : index
    %c0_170 = arith.constant 0 : index
    %150 = vector.load %arg7[%c0_167, %c0_168, %c0_169, %c0_170] : memref<1x8x16x8xf32, #tpu.memory_space<vmem>>, vector<1x8x16x8xf32>
    %151 = vector.shape_cast %150 : vector<1x8x16x8xf32> to vector<8x16x8xf32>
    %152 = vector.shape_cast %149 : vector<8x16x8xf32> to vector<1x8x16x8xf32>
    tpu.vector_store %arg7[%c0_167, %c0_168, %c0_169, %c0_170], %152 {strides = array<i32>} : memref<1x8x16x8xf32, #tpu.memory_space<vmem>>, vector<1x8x16x8xf32>,
    %153 = vector.shape_cast %149 : vector<8x16x8xf32> to vector<4x2x16x8xf32>
    %cst_171 = arith.constant dense<0xFF800000> : vector<4x16x8xf32>
    %154 = vector.multi_reduction <maximumf>, %153, %cst_171 [1] : vector<4x2x16x8xf32> to vector<4x16x8xf32>
    %155 = vector.shape_cast %154 : vector<4x16x8xf32> to vector<4x8x2x8xf32>
    %cst_172 = arith.constant dense<0xFF800000> : vector<4x8x8xf32>
    %156 = vector.multi_reduction <maximumf>, %155, %cst_172 [2] : vector<4x8x2x8xf32> to vector<4x8x8xf32>
    %c0_173 = arith.constant 0 : index
    %c0_174 = arith.constant 0 : index
    %c0_175 = arith.constant 0 : index
    %c0_176 = arith.constant 0 : index
    %157 = vector.load %arg8[%c0_173, %c0_174, %c0_175, %c0_176] : memref<1x4x8x8xf32, #tpu.memory_space<vmem>>, vector<1x4x8x8xf32>
    %158 = vector.shape_cast %157 : vector<1x4x8x8xf32> to vector<4x8x8xf32>
    %159 = vector.shape_cast %156 : vector<4x8x8xf32> to vector<1x4x8x8xf32>
    tpu.vector_store %arg8[%c0_173, %c0_174, %c0_175, %c0_176], %159 {strides = array<i32>} : memref<1x4x8x8xf32, #tpu.memory_space<vmem>>, vector<1x4x8x8xf32>,
    return
  }
  func.func @transform_0(%arg0: i32, %arg1: i32) -> (i32, i32, i32, i32) {
    %c2_i32 = arith.constant 2 : i32
    %0 = arith.muli %arg0, %c2_i32 : i32
    %1 = arith.addi %0, %arg1 : i32
    %c0_i32 = arith.constant 0 : i32
    %c0_i32_0 = arith.constant 0 : i32
    %c0_i32_1 = arith.constant 0 : i32
    %c0_i32_2 = arith.constant 0 : i32
    return %1, %c0_i32, %c0_i32_0, %c0_i32_1 : i32, i32, i32, i32
  }
  func.func @transform_1(%arg0: i32, %arg1: i32) -> (i32, i32, i32, i32) {
    %c0_i32 = arith.constant 0 : i32
    %c0_i32_0 = arith.constant 0 : i32
    %c0_i32_1 = arith.constant 0 : i32
    %c0_i32_2 = arith.constant 0 : i32
    %c0_i32_3 = arith.constant 0 : i32
    return %c0_i32, %c0_i32_0, %c0_i32_1, %c0_i32_2 : i32, i32, i32, i32
  }
  func.func @transform_2(%arg0: i32, %arg1: i32) -> (i32, i32) {
    %c0_i32 = arith.constant 0 : i32
    %c0_i32_0 = arith.constant 0 : i32
    %c0_i32_1 = arith.constant 0 : i32
    return %c0_i32, %c0_i32_0 : i32, i32
  }
  func.func @transform_3(%arg0: i32, %arg1: i32) -> (i32, i32, i32, i32) {
    %c0_i32 = arith.constant 0 : i32
    %c0_i32_0 = arith.constant 0 : i32
    %c0_i32_1 = arith.constant 0 : i32
    %c0_i32_2 = arith.constant 0 : i32
    %c0_i32_3 = arith.constant 0 : i32
    return %c0_i32, %c0_i32_0, %c0_i32_1, %c0_i32_2 : i32, i32, i32, i32
  }
  func.func @transform_4(%arg0: i32, %arg1: i32) -> (i32, i32) {
    %c0_i32 = arith.constant 0 : i32
    %c0_i32_0 = arith.constant 0 : i32
    %c0_i32_1 = arith.constant 0 : i32
    return %c0_i32, %c0_i32_0 : i32, i32
  }
  func.func @transform_5(%arg0: i32, %arg1: i32) -> (i32, i32, i32, i32) {
    %c2_i32 = arith.constant 2 : i32
    %0 = arith.muli %arg0, %c2_i32 : i32
    %1 = arith.addi %0, %arg1 : i32
    %c0_i32 = arith.constant 0 : i32
    %c0_i32_0 = arith.constant 0 : i32
    %c0_i32_1 = arith.constant 0 : i32
    %c0_i32_2 = arith.constant 0 : i32
    return %1, %c0_i32, %c0_i32_0, %c0_i32_1 : i32, i32, i32, i32
  }
  func.func @transform_6(%arg0: i32, %arg1: i32) -> (i32, i32, i32, i32) {
    %c2_i32 = arith.constant 2 : i32
    %0 = arith.muli %arg0, %c2_i32 : i32
    %1 = arith.addi %0, %arg1 : i32
    %c0_i32 = arith.constant 0 : i32
    %c0_i32_0 = arith.constant 0 : i32
    %c0_i32_1 = arith.constant 0 : i32
    %c0_i32_2 = arith.constant 0 : i32
    return %1, %c0_i32, %c0_i32_0, %c0_i32_1 : i32, i32, i32, i32
  }
}

</mosaic_0001>

<bundles_post_ra>
// kernel: tpu_custom_call.1
= control target key start
LH: loop header
LB: loop body
LE: loop exit
PB: predicated region body
PF: predicated region fallthrough
CT: control target
= control target key end

     0   :  { %12 = vsyncpa [#allocation4], 0  ;;  %s11213_s0 = inlined_call_operand.vmem [shape: bf16[4,12,18,4], index: 0, kind: input, shape index: {}]   ;;  %s11214_s1 = inlined_call_operand.vmem [shape: bf16[3,3,4,8], index: 1, kind: input, shape index: {}]   ;;  %s11215_s2 = inlined_call_operand.vmem [shape: f32[1,8], index: 2, kind: input, shape index: {}]   ;;  %s11216_s3 = inlined_call_operand.vmem [shape: bf16[3,3,8,8], index: 3, kind: input, shape index: {}]   ;;  %s11217_s4 = inlined_call_operand.vmem [shape: f32[1,8], index: 4, kind: input, shape index: {}]   ;;  %s11218_s5 = inlined_call_operand.vmem [shape: f32[4,8,16,8], index: 5, kind: output, shape index: {0}]   ;;  %s11219_s6 = inlined_call_operand.hbm [shape: f32[4,4,8,8], index: 6, kind: output, shape index: {1}]  }
   0x1   :  { %14 = vsyncpa [#allocation4 + $0x1], 0  ;;  %s8353_s21 = smov 0   ;;  %s8355_s22 = smov 0  }
   0x2   :  { %s8357_s23 = smov 0   ;;  %s8359_s24 = smov 0  }
   0x3   :  { %s8361_s25 = smov 0   ;;  %s8363_s26 = smov 0  }
   0x4   :  { %s8365_s27 = smov 0   ;;  %s8367_s28 = smov 0  }
   0x5 LB: > { %s6950_s29 = sadd.s32 4294967295, %s8312_s28   ;;  %s29_s30 = sadd.s32 1, %s8304_s26  ;;  %s8312_s28 = sphi %s8367_s28, %s20_s28   ;;  %s8308_s27 = sphi %s8365_s27, %s11348_s27   ;;  %s8304_s26 = sphi %s8363_s26, %s11347_s26   ;;  %s8300_s25 = sphi %s8361_s25, %s11346_s25   ;;  %s8296_s24 = sphi %s8359_s24, %s11345_s24   ;;  %s8292_s23 = sphi %s8357_s23, %s11344_s23   ;;  %s8288_s22 = sphi %s8355_s22, %s11343_s22   ;;  %s8284_s21 = sphi %s8353_s21, %s11342_s21  }
   0x6   : > { %s32_s7 = sadd.s32 1, %s8308_s27  ;;  %p30_p0 = scmp.ge.s32.totalorder %s29_s30, 2 }
   0x7   : > { %s6956_s8 = sshll.u32 %s8308_s27, 1  ;;  %s6951_s9 = sadd.s32 4294967294, %s8312_s28  }
   0x8   : > { %s181_s10 = sadd.s32 %s8304_s26, %s6956_s8  ;;  %s11350_s30 = smov (%p30_p0, %s29_s30), 0 }
   0x9   : > { %s11352_s7 = smov (!%p30_p0, %s32_s7), %s8308_s27  ;;  %p197_p1 = scmp.ne.s32.totalorder %s8292_s23, %s8288_s22 }
   0xa   : > { %p198_p2 = scmp.eq.s32.totalorder %s6950_s29, 3  ;;  %p34_p3 = scmp.ge.s32.totalorder %s11352_s7, 2 }
   0xb   : > { %p203_p4 = scmp.ne.s32.totalorder %s8288_s22, %s8284_s21  ;;  %p204_p6 = scmp.eq.s32.totalorder %s6951_s9, 3 }
   0xc   : > { %p8406_p5 = por %p198_p2, %p197_p1  ;;  %s11354_s7 = smov (%p34_p3, %s11352_s7), 0 }
   0xd   : > { %p8412_p7 = por %p204_p6, %p203_p4  ;;  %p6960_p8 = scmp.ge.s32.totalorder %s8312_s28, 1 }
   0xe   : > { %s6957_s13 = sshll.u32 %s11354_s7, 1  ;;  %p246_p9 = scmp.lt.s32.totalorder %s8312_s28, 5 }
   0xf   : > { %s183_s14 = sadd.s32 %s6957_s13, %s11350_s30  ;;  %s187_s15 = sadd.s32 1, %s8292_s23 }
  0x10   : > { %s184_s16 = ssub.s32 %s181_s10, %s183_s14  ;;  %p247_p10 = pnand %p6960_p8, %p246_p9 }
  0x11   : > { %p185_p11 = scmp.eq.s32.totalorder %s184_s16, 0 }
  0x12   : > { %250 = sbr.rel (%p247_p10) target bundleno = 960 (0x3c0), region = 40 }
  0x13   : > { %s8422_s17 = scalar_select %p185_p11, %s8292_s23, %s187_s15  }
  0x17   : > { %v6967_v0 = vld [vmem:[%s11214_s1 + $0x2] sm:$0x3]  ;;  %vm643_vm0 = vcmask 1041408   ;;  %v326_v1 = vld [vmem:[%s11214_s1] sm:$0x3]  ;;  %s6962_s8 = sshll.u32 %s8300_s25, 1 }
  0x18   : > { %8073 = vmatprep.subr.msk.bf16.mxu0 %vm643_vm0, %v6967_v0  ;;  %v645_v2 = vsel %vm643_vm0, %v6967_v0, 0  ;;  %8074 = vmatprep.subr.msk.bf16.mxu1 %vm643_vm0, %v326_v1  ;;  %v841_v3 = vsel %vm643_vm0, %v326_v1, 0  ;;  %s8436_s9 = sadd.s32 %s8296_s24, %s6962_s8  ;;  %v7018_v4 = vld [vmem:[%s11214_s1 + $0x4] sm:$0x3]  ;;  %v7059_v5 = vld [vmem:[%s11214_s1 + $0x6] sm:$0x3] }
  0x19   : > { %7714 = vmatpush3.bf16.msra.mxu0 %v645_v2  ;;  %7736 = vmatpush3.bf16.msra.mxu1 %v841_v3  ;;  %p287_p12 = scmp.lt.s32.totalorder %s8436_s9, 3  ;;  %v8453_v6 = vld [vmem:[%s11214_s1 + $0x8] sm:$0x3]  ;;  %v8458_v7 = vld [vmem:[%s11214_s1 + $0xa] sm:$0x3]  ;;  %vm612_vm3 = vcmask 31744  }
  0x1a   : > { %8075 = vmatprep.subr.msk.bf16.mxu0 %vm643_vm0, %v7018_v4  ;;  %8076 = vmatprep.subr.msk.bf16.mxu1 %vm643_vm0, %v7059_v5  ;;  %v8463_v8 = vld [vmem:[%s11214_s1 + $0xc] sm:$0x3]  ;;  %vm337_vm1 = vsmask.f32 3328  ;;  %vm338_vm2 = vsmask.f32 7440 }
  0x1b   : > { %s8448_s15 = scalar_select %p287_p12, %s8436_s9, 3  ;;  %v8467_v9 = vsel %vm643_vm0, %v7018_v4, 0  ;;  %v1361_v10 = vsel %vm643_vm0, %v7059_v5, 0  ;;  %v8477_v11 = vsel %vm643_vm0, %v8453_v6, 0  ;;  %v8481_v12 = vsel %vm643_vm0, %v8458_v7, 0  ;;  %vm8513_vm4 = vmor %vm337_vm1, %vm338_vm2 }
  0x1c   : > { %v8485_v13 = vsel %vm643_vm0, %v8463_v8, 0  ;;  %v11229_v40 = vmov 0  ;;  %vm986_vm5 = vcmask 1042432   ;;  %vm987_vm6 = vcmask 1046532   ;;  %s7306_s16 = sshll.u32 %s8296_s24, 3  ;;  %s7532_s24 = sshll.u32 %s8436_s9, 9 }
  0x1d   : > { %s8091_s10 = smul.u32 144, %s8448_s15  ;;  %v11230_v40 = vsel %vm8513_vm4, 4294967295, %v11229_v40  ;;  %vm8667_vm7 = vmor %vm986_vm5, %vm987_vm6  ;;  %vm11226_vm8 = vcmask 1043456   ;;  %s7307_s18 = sadd.s32 4294967295, %s7306_s16  ;;  %vm3679_vm15 = vcmask 60416   ;;  %vm3687_vm6 = vcmask 57344  }
  0x1e   : > { %11231 = vst [vmem:[#allocation6_spill] sm:$0xff] %v11230_v40  ;;  %vm3476_vm5 = vsmask.f32 256  ;;  %s11152_s8 = scalar_lea.hbm %s11219_s6, %s7532_s24  ;;  %s8315_s13 = smov [#allocation3]  }
  0x1f   : > { %s8472_s14 = scalar_lea.vmem %s11213_s0, %s8091_s10  ;;  %s7511_s10 = sshll.u32 %s8448_s15, 7 }
  0x20   : > { %v306_v14 = vld [vmem:[%s8472_s14] sm:$0xf]  ;;  %v8489_v15 = vld [vmem:[%s8472_s14 + $0x4] sm:$0xf]  ;;  %v8492_v16 = vld [vmem:[%s8472_s14 + $0x8] sm:$0x1]  ;;  %s10930_s25 = scalar_lea.vmem %s11218_s5, %s7511_s10 }
  0x21   : > { %v341_v17 = vshrl.u32 %v306_v14, 16  ;;  %v344_v18 = vshll.u32 %v306_v14, 16  ;;  %v350_v19 = vshll.u32 %v8489_v15, 16  ;;  %v354_v20 = vshrl.u32 %v8489_v15, 16  ;;  %v308_v21 = vld [vmem:[%s8472_s14 + $0xc] sm:$0xf] }
  0x22   : > { %v360_v22 = vshll.u32 %v8492_v16, 16  ;;  %v994_v23 = vrot.slane %v8492_v16, 5  ;;  %v6988_v24 = vcombine.low %v306_v14, %v8489_v15  ;;  %v8501_v25 = vld [vmem:[%s8472_s14 + $0x10] sm:$0xf]  ;;  %v8504_v26 = vld [vmem:[%s8472_s14 + $0x14] sm:$0x1] }
  0x23   : > { %v343_v27 = vrot.slane %v341_v17, 4  ;;  %v346_v28 = vrot.slane %v344_v18, 5  ;;  %v352_v29 = vrot.slane %v350_v19, 5  ;;  %v356_v30 = vrot.slane %v354_v20, 4  ;;  %v310_v39 = vld [vmem:[%s8472_s14 + $0x18] sm:$0xf] }
  0x24   : > { %v362_v31 = vrot.slane %v360_v22, 5  ;;  %7737 = vmatprep.mubr.msk.bf16.mxu1 %vm612_vm3, %v6988_v24  ;;  %v365_v32 = vshrl.u32 %v308_v21, 16  ;;  %v368_v33 = vshll.u32 %v308_v21, 16  ;;  %v374_v34 = vshll.u32 %v8501_v25, 16  ;;  %v8519_v49 = vld [vmem:[%s8472_s14 + $0x1c] sm:$0xf] }
  0x25   : > { %v347_v35 = vor.u32 %v346_v28, %v343_v27  ;;  %v357_v36 = vor.u32 %v356_v30, %v352_v29  ;;  %v378_v37 = vshrl.u32 %v8501_v25, 16  ;;  %v384_v38 = vshll.u32 %v8504_v26, 16  ;;  %v8524_v53 = vld [vmem:[%s8472_s14 + $0x20] sm:$0x1]  ;;  %v312_v59 = vld [vmem:[%s8472_s14 + $0x24] sm:$0xf] }
  0x26   : > { %v367_v41 = vrot.slane %v365_v32, 4  ;;  %v370_v42 = vrot.slane %v368_v33, 5  ;;  %v376_v43 = vrot.slane %v374_v34, 5  ;;  %v998_v44 = vrot.slane %v8501_v25, 5  ;;  %v8536_v4 = vld [vmem:[%s8472_s14 + $0x28] sm:$0xf] }
  0x27   : > { %v348_v45 = vrot.slane %v347_v35, 4  ;;  %v358_v46 = vrot.slane %v357_v36, 4  ;;  %v380_v47 = vrot.slane %v378_v37, 4  ;;  %v386_v48 = vrot.slane %v384_v38, 5  ;;  %v8543_v18 = vld [vmem:[%s8472_s14 + $0x2c] sm:$0x1] }
  0x28   : > { %v371_v50 = vor.u32 %v370_v42, %v367_v41  ;;  %v1001_v51 = vrot.slane %v8504_v26, 5  ;;  %v6989_v52 = vcombine.low %v308_v21, %v8501_v25  ;;  %v389_v54 = vshrl.u32 %v310_v39, 16  ;;  %v314_v24 = vld [vmem:[%s8472_s14 + $0x30] sm:$0xf]  ;;  %v8555_v34 = vld [vmem:[%s8472_s14 + $0x34] sm:$0xf] }
  0x29   : > { %v353_v55 = vsel %vm8513_vm4, %v348_v45, %v352_v29  ;;  %v363_v56 = vsel %vm8513_vm4, %v358_v46, %v362_v31  ;;  %v381_v57 = vor.u32 %v380_v47, %v376_v43  ;;  %v392_v58 = vshll.u32 %v310_v39, 16  ;;  %v8560_v38 = vld [vmem:[%s8472_s14 + $0x38] sm:$0x1]  ;;  %s8224_s15 = sshll.u32 %s8315_s13, 4  ;;  %s8225_s15 = int_to_ptr.vmem [resolvable:$false] %s8224_s15 }
  0x2a   : > { %v6968_v60 = vcombine.low %v353_v55, %v363_v56  ;;  %v372_v61 = vrot.slane %v371_v50, 4  ;;  %7738 = vmatmul.mubr.msk.bf16.vlgmr.msra.gmra.mxu1 %vm612_vm3, %v6989_v52  ;;  %v391_v62 = vrot.slane %v389_v54, 4  ;;  %v398_v63 = vshll.u32 %v8519_v49, 16  ;;  %v316_v56 = vld [vmem:[%s8472_s14 + $0x3c] sm:$0xf] }
  0x2b   : > { %v382_v0 = vrot.slane %v381_v57, 4  ;;  %v394_v1 = vrot.slane %v392_v58, 5  ;;  %v402_v2 = vshrl.u32 %v8519_v49, 16  ;;  %v408_v3 = vshll.u32 %v8524_v53, 16  ;;  %7780 = vmatpush3.bf16.msra.mxu1 %v1361_v10 }
  0x2c   : > { %7715 = vmatprep.mubr.msk.bf16.mxu0 %vm612_vm3, %v6968_v60  ;;  %v377_v5 = vsel %vm8513_vm4, %v372_v61, %v376_v43  ;;  %v400_v14 = vrot.slane %v398_v63, 5  ;;  %v6990_v17 = vcombine.low %v310_v39, %v8519_v49  ;;  %v413_v19 = vshrl.u32 %v312_v59, 16  ;;  %8078 = vmatprep.subr.msk.bf16.mxu1 %vm643_vm0, %v8458_v7  ;;  %v8575_v61 = vld [vmem:[%s8472_s14 + $0x40] sm:$0xf] }
  0x2d   : > { %v387_v20 = vsel %vm8513_vm4, %v382_v0, %v386_v48  ;;  %v395_v21 = vor.u32 %v394_v1, %v391_v62  ;;  %v404_v10 = vrot.slane %v402_v2, 4  ;;  %v410_v22 = vrot.slane %v408_v3, 5  ;;  %v8579_v1 = vld [vmem:[%s8472_s14 + $0x44] sm:$0x1] }
  0x2e   : > { %v6969_v27 = vcombine.low %v377_v5, %v387_v20  ;;  %7741 = vmatprep.mubr.msk.bf16.mxu1 %vm612_vm3, %v6990_v17  ;;  %v415_v28 = vrot.slane %v413_v19, 4  ;;  %v416_v29 = vshll.u32 %v312_v59, 16  ;;  %v422_v30 = vshll.u32 %v8536_v4, 16  ;;  %v318_v17 = vld [vmem:[%s8472_s14 + $0x48] sm:$0xf] }
  0x2f   : > { %v396_v31 = vrot.slane %v395_v21, 4  ;;  %v405_v32 = vor.u32 %v404_v10, %v400_v14  ;;  %v426_v33 = vshrl.u32 %v8536_v4, 16  ;;  %v432_v7 = vshll.u32 %v8543_v18, 16 }
  0x30   : > { %7716 = vmatmul.mubr.msk.bf16.vlgmr.msra.gmra.mxu0 %vm612_vm3, %v6969_v27  ;;  %v418_v35 = vrot.slane %v416_v29, 5  ;;  %v424_v36 = vrot.slane %v422_v30, 5  ;;  %v6991_v37 = vcombine.low %v312_v59, %v8536_v4  ;;  %v437_v39 = vshrl.u32 %v314_v24, 16 }
  0x31   : > { %7758 = vmatpush3.bf16.msra.mxu0 %v8467_v9  ;;  %v401_v41 = vsel %vm8513_vm4, %v396_v31, %v400_v14  ;;  %v406_v42 = vrot.slane %v405_v32, 4  ;;  %v428_v43 = vrot.slane %v426_v33, 4  ;;  %v434_v45 = vrot.slane %v432_v7, 5  ;;  %v8595_v7 = vld [vmem:[%s8472_s14 + $0x50] sm:$0x1] }
  0x32   : > { %v419_v46 = vor.u32 %v418_v35, %v415_v28  ;;  %7742 = vmatmul.mubr.msk.bf16.gmra.mxu1 %vm612_vm3, %v6991_v37  ;;  %v439_v47 = vrot.slane %v437_v39, 4  ;;  %v440_v48 = vshll.u32 %v314_v24, 16  ;;  %v446_v50 = vshll.u32 %v8555_v34, 16  ;;  %8077 = vmatprep.subr.msk.bf16.mxu0 %vm643_vm0, %v8453_v6 }
  0x33   : > { %v411_v9 = vsel %vm8513_vm4, %v406_v42, %v410_v22  ;;  %v429_v52 = vor.u32 %v428_v43, %v424_v36  ;;  %v450_v54 = vshrl.u32 %v8555_v34, 16  ;;  %v456_v55 = vshll.u32 %v8560_v38, 16  ;;  %v8591_v22 = vld [vmem:[%s8472_s14 + $0x4c] sm:$0xf] }
  0x34   : > { %v6970_v57 = vcombine.low %v401_v41, %v411_v9  ;;  %v420_v58 = vrot.slane %v419_v46, 4  ;;  %v442_v59 = vrot.slane %v440_v48, 5  ;;  %v448_v60 = vrot.slane %v446_v50, 5  ;;  %v320_v41 = vld [vmem:[%s8472_s14 + $0x54] sm:$0xf] }
  0x35   : > { %v430_v62 = vrot.slane %v429_v52, 4  ;;  %v452_v63 = vrot.slane %v450_v54, 4  ;;  %v458_v6 = vrot.slane %v456_v55, 5  ;;  %v6992_v0 = vcombine.low %v314_v24, %v8555_v34 }
  0x36   : > { %7719 = vmatprep.mubr.msk.bf16.mxu0 %vm612_vm3, %v6970_v57  ;;  %v425_v2 = vsel %vm8513_vm4, %v420_v58, %v424_v36  ;;  %v443_v3 = vor.u32 %v442_v59, %v439_v47  ;;  %v461_v5 = vshrl.u32 %v316_v56, 16  ;;  %v464_v14 = vshll.u32 %v316_v56, 16  ;;  %v8605_v47 = vld [vmem:[%s8472_s14 + $0x58] sm:$0xf]  ;;  %v8612_v58 = vld [vmem:[%s8472_s14 + $0x5c] sm:$0x1] }
  0x37   : > { %v435_v19 = vsel %vm8513_vm4, %v430_v62, %v434_v45  ;;  %v453_v20 = vor.u32 %v452_v63, %v448_v60  ;;  %7745 = vmatprep.mubr.msk.bf16.mxu1 %vm612_vm3, %v6992_v0  ;;  %v470_v21 = vshll.u32 %v8575_v61, 16  ;;  %v474_v10 = vshrl.u32 %v8575_v61, 16 }
  0x38   : > { %v6971_v24 = vcombine.low %v425_v2, %v435_v19  ;;  %v444_v27 = vrot.slane %v443_v3, 4  ;;  %v463_v28 = vrot.slane %v461_v5, 4  ;;  %v466_v29 = vrot.slane %v464_v14, 5 }
  0x39   : > { %v454_v30 = vrot.slane %v453_v20, 4  ;;  %v472_v31 = vrot.slane %v470_v21, 5  ;;  %v476_v32 = vrot.slane %v474_v10, 4  ;;  %v480_v33 = vshll.u32 %v8579_v1, 16 }
  0x3a   : > { %7720 = vmatmul.mubr.msk.bf16.gmra.mxu0 %vm612_vm3, %v6971_v24  ;;  %v449_v35 = vsel %vm8513_vm4, %v444_v27, %v448_v60  ;;  %v467_v36 = vor.u32 %v466_v29, %v463_v28  ;;  %v6993_v37 = vcombine.low %v316_v56, %v8575_v61  ;;  %v485_v39 = vshrl.u32 %v318_v17, 16  ;;  %v8626_v28 = vld [vmem:[%s8472_s14 + $0x64] sm:$0xf] }
  0x3b   : > { %v459_v42 = vsel %vm8513_vm4, %v454_v30, %v458_v6  ;;  %v477_v43 = vor.u32 %v476_v32, %v472_v31  ;;  %v482_v45 = vrot.slane %v480_v33, 5  ;;  %v488_v46 = vshll.u32 %v318_v17, 16  ;;  %v322_v6 = vld [vmem:[%s8472_s14 + $0x60] sm:$0xf]  ;;  %v8631_v32 = vld [vmem:[%s8472_s14 + $0x68] sm:$0x1] }
  0x3c   : > { %v6972_v48 = vcombine.low %v449_v35, %v459_v42  ;;  %v468_v50 = vrot.slane %v467_v36, 4  ;;  %7746 = vmatmul.mubr.msk.bf16.gmra.mxu1 %vm612_vm3, %v6993_v37  ;;  %v487_v9 = vrot.slane %v485_v39, 4  ;;  %v494_v52 = vshll.u32 %v8591_v22, 16  ;;  %v324_v42 = vld [vmem:[%s8472_s14 + $0x6c] sm:$0xf] }
  0x3d   : > { %v478_v54 = vrot.slane %v477_v43, 4  ;;  %v490_v55 = vrot.slane %v488_v46, 5  ;;  %v498_v56 = vshrl.u32 %v8591_v22, 16  ;;  %v504_v57 = vshll.u32 %v8595_v7, 16 }
  0x3e   : > { %7723 = vmatprep.mubr.msk.bf16.mxu0 %vm612_vm3, %v6972_v48  ;;  %v473_v59 = vsel %vm8513_vm4, %v468_v50, %v472_v31  ;;  %v496_v60 = vrot.slane %v494_v52, 5  ;;  %v6994_v62 = vcombine.low %v318_v17, %v8591_v22  ;;  %v509_v63 = vshrl.u32 %v320_v41, 16 }
  0x3f   : > { %v483_v0 = vsel %vm8513_vm4, %v478_v54, %v482_v45  ;;  %v491_v2 = vor.u32 %v490_v55, %v487_v9  ;;  %v500_v3 = vrot.slane %v498_v56, 4  ;;  %v506_v5 = vrot.slane %v504_v57, 5 }
  0x40   : > { %v6973_v14 = vcombine.low %v473_v59, %v483_v0  ;;  %7749 = vmatprep.mubr.msk.bf16.mxu1 %vm612_vm3, %v6994_v62  ;;  %v511_v19 = vrot.slane %v509_v63, 4  ;;  %v512_v20 = vshll.u32 %v320_v41, 16  ;;  %v518_v21 = vshll.u32 %v8605_v47, 16 }
  0x41   : > { %v492_v10 = vrot.slane %v491_v2, 4  ;;  %v501_v24 = vor.u32 %v500_v3, %v496_v60  ;;  %v522_v17 = vshrl.u32 %v8605_v47, 16  ;;  %v528_v27 = vshll.u32 %v8612_v58, 16  ;;  %v956_v3 = vld [vmem:[%s8472_s14] sm:$0xe] }
  0x42   : > { %7724 = vmatmul.mubr.msk.bf16.gmra.mxu0 %vm612_vm3, %v6973_v14  ;;  %v514_v29 = vrot.slane %v512_v20, 5  ;;  %v520_v30 = vrot.slane %v518_v21, 5  ;;  %v6995_v31 = vcombine.low %v320_v41, %v8605_v47  ;;  %v533_v33 = vshrl.u32 %v322_v6, 16  ;;  %v8639_v41 = vld [vmem:[%s8472_s14 + $0x70] sm:$0xf] }
  0x43   : > { %v497_v35 = vsel %vm8513_vm4, %v492_v10, %v496_v60  ;;  %v502_v36 = vrot.slane %v501_v24, 4  ;;  %v524_v37 = vrot.slane %v522_v17, 4  ;;  %v530_v39 = vrot.slane %v528_v27, 5  ;;  %v8646_v60 = vld [vmem:[%s8472_s14 + $0x74] sm:$0x1] }
  0x44   : > { %v515_v43 = vor.u32 %v514_v29, %v511_v19  ;;  %7750 = vmatmul.mubr.msk.bf16.gmra.mxu1 %vm612_vm3, %v6995_v31  ;;  %v535_v45 = vrot.slane %v533_v33, 4  ;;  %v536_v46 = vshll.u32 %v322_v6, 16  ;;  %v542_v48 = vshll.u32 %v8626_v28, 16 }
  0x45   : > { %v507_v50 = vsel %vm8513_vm4, %v502_v36, %v506_v5  ;;  %v525_v9 = vor.u32 %v524_v37, %v520_v30  ;;  %v546_v52 = vshrl.u32 %v8626_v28, 16  ;;  %v552_v54 = vshll.u32 %v8631_v32, 16 }
  0x46   : > { %v6974_v55 = vcombine.low %v497_v35, %v507_v50  ;;  %v516_v56 = vrot.slane %v515_v43, 4  ;;  %v538_v57 = vrot.slane %v536_v46, 5  ;;  %v544_v59 = vrot.slane %v542_v48, 5  ;;  %v957_v43 = vld [vmem:[%s8472_s14 + $0xc] sm:$0xe] }
  0x47   : > { %v526_v62 = vrot.slane %v525_v9, 4  ;;  %v548_v63 = vrot.slane %v546_v52, 4  ;;  %v554_v0 = vrot.slane %v552_v54, 5  ;;  %v6996_v2 = vcombine.low %v322_v6, %v8626_v28  ;;  %v958_v9 = vld [vmem:[%s8472_s14 + $0x18] sm:$0xe] }
  0x48   : > { %7727 = vmatprep.mubr.msk.bf16.mxu0 %vm612_vm3, %v6974_v55  ;;  %v521_v5 = vsel %vm8513_vm4, %v516_v56, %v520_v30  ;;  %v539_v14 = vor.u32 %v538_v57, %v535_v45  ;;  %v557_v19 = vshrl.u32 %v324_v42, 16  ;;  %v560_v20 = vshll.u32 %v324_v42, 16  ;;  %v8176_v30 = vld [vmem:[%s8472_s14 + $0xc] sm:$0xff]  }
  0x49   : > { %v531_v21 = vsel %vm8513_vm4, %v526_v62, %v530_v39  ;;  %v549_v10 = vor.u32 %v548_v63, %v544_v59  ;;  %7753 = vmatprep.mubr.msk.bf16.mxu1 %vm612_vm3, %v6996_v2  ;;  %v566_v24 = vshll.u32 %v8639_v41, 16  ;;  %v570_v6 = vshrl.u32 %v8639_v41, 16 }
  0x4a   : > { %v6975_v17 = vcombine.low %v521_v5, %v531_v21  ;;  %v540_v27 = vrot.slane %v539_v14, 4  ;;  %v559_v29 = vrot.slane %v557_v19, 4  ;;  %v562_v31 = vrot.slane %v560_v20, 5  ;;  %v959_v20 = vld [vmem:[%s8472_s14 + $0x24] sm:$0xe] }
  0x4b   : > { %v550_v33 = vrot.slane %v549_v10, 4  ;;  %v568_v35 = vrot.slane %v566_v24, 5  ;;  %v572_v36 = vrot.slane %v570_v6, 4  ;;  %v576_v37 = vshll.u32 %v8646_v60, 16  ;;  %v960_v21 = vld [vmem:[%s8472_s14 + $0x30] sm:$0xe] }
  0x4c   : > { %7728 = vmatmul.mubr.msk.bf16.gmra.mxu0 %vm612_vm3, %v6975_v17  ;;  %v545_v39 = vsel %vm8513_vm4, %v540_v27, %v544_v59  ;;  %v563_v45 = vor.u32 %v562_v31, %v559_v29  ;;  %v6997_v46 = vcombine.low %v324_v42, %v8639_v41  ;;  %v11232_v48 = vmov 0  ;;  %v8178_v29 = vld [vmem:[%s8472_s14 + $0x24] sm:$0xff]  }
  0x4d   : > { %v11233_v48 = vsel %vm8667_vm7, 4294967295, %v11232_v48  ;;  %v7008_v50 = vrot.slane %v956_v3, 9  ;;  %v555_v52 = vsel %vm8513_vm4, %v550_v33, %v554_v0  ;;  %v573_v54 = vor.u32 %v572_v36, %v568_v35  ;;  %v962_v33 = vld [vmem:[%s8472_s14 + $0x48] sm:$0xe] }
  0x4e   : > { %11234 = vst [vmem:[#allocation7_spill] sm:$0xff] %v11233_v48  ;;  %v578_v55 = vrot.slane %v576_v37, 5  ;;  %v991_v56 = vrot.slane %v8489_v15, 5  ;;  %v6976_v57 = vcombine.low %v545_v39, %v555_v52  ;;  %v564_v59 = vrot.slane %v563_v45, 4  ;;  %7754 = vmatmul.mubr.msk.bf16.gmra.mxu1 %vm612_vm3, %v6997_v46  ;;  %v963_v45 = vld [vmem:[%s8472_s14 + $0x54] sm:$0xe] }
  0x4f   : > { %v7009_v42 = vrot.slane %v957_v43, 9  ;;  %v1000_v62 = vrot.slane %v998_v44, 4  ;;  %v574_v63 = vrot.slane %v573_v54, 4  ;;  %7781 = vmatprep.mubr.msk.bf16.mxu1 %vm612_vm3, %v8176_v30  ;;  %v7010_v15 = vrot.slane %v958_v9, 9 }
  0x50   : > { %v992_v2 = vsel %vm8667_vm7, %v7008_v50, %v991_v56  ;;  %v993_v0 = vrot.slane %v991_v56, 4  ;;  %7731 = vmatprep.mubr.msk.bf16.mxu0 %vm612_vm3, %v6976_v57  ;;  %v569_v3 = vsel %vm8513_vm4, %v564_v59, %v568_v35  ;;  %v1005_v19 = vrot.slane %v8519_v49, 5  ;;  %v8177_v49 = vld [vmem:[%s8472_s14 + $0x18] sm:$0xff]  }
  0x51   : > { %v8688_v5 = vsel %vm8667_vm7, %v7009_v42, %v998_v44  ;;  %v8694_v14 = vsel %vm8667_vm7, %v1000_v62, %v1001_v51  ;;  %v579_v10 = vsel %vm8513_vm4, %v574_v63, %v578_v55  ;;  %v1008_v44 = vrot.slane %v8524_v53, 5  ;;  %v961_v51 = vld [vmem:[%s8472_s14 + $0x3c] sm:$0xe]  ;;  %v964_v55 = vld [vmem:[%s8472_s14 + $0x60] sm:$0xe] }
  0x52   : > { %v995_v25 = vsel %vm8667_vm7, %v993_v0, %v994_v23  ;;  %v7020_v26 = vcombine.low %v8688_v5, %v8694_v14  ;;  %v6977_v24 = vcombine.low %v569_v3, %v579_v10  ;;  %v1006_v17 = vsel %vm8667_vm7, %v7010_v15, %v1005_v19  ;;  %v965_v42 = vld [vmem:[%s8472_s14 + $0x6c] sm:$0xe]  ;;  %v8180_v14 = vld [vmem:[%s8472_s14 + $0x3c] sm:$0xff]  }
  0x53   : > { %v7019_v6 = vcombine.low %v992_v2, %v995_v25  ;;  %v1007_v27 = vrot.slane %v1005_v19, 4  ;;  %v7011_v31 = vrot.slane %v959_v20, 9  ;;  %v1012_v16 = vrot.slane %v8536_v4, 5  ;;  %v8179_v2 = vld [vmem:[%s8472_s14 + $0x30] sm:$0xff]   ;;  %v7080_v5 = vld [vmem:[%s8472_s14 + $0xc] sm:$0xf] }
  0x54   : > { %v1015_v23 = vrot.slane %v8543_v18, 5  ;;  %v7012_v30 = vrot.slane %v960_v21, 9  ;;  %7732 = vmatmul.mubr.msk.bf16.gmra.mxu0 %vm612_vm3, %v6977_v24  ;;  %v1019_v35 = vrot.slane %v8555_v34, 5  ;;  %v1022_v36 = vrot.slane %v8560_v38, 5 }
  0x55   : > { %v1009_v53 = vsel %vm8667_vm7, %v1007_v27, %v1008_v44  ;;  %v7013_v37 = vrot.slane %v961_v51, 9  ;;  %7759 = vmatprep.mubr.msk.bf16.mxu0 %vm612_vm3, %v7019_v6  ;;  %v8724_v4 = vsel %vm8667_vm7, %v7011_v31, %v1012_v16  ;;  %v1014_v18 = vrot.slane %v1012_v16, 4  ;;  %v8786_v51 = vld [vmem:[%s8472_s14 + $0x10] sm:$0xf] }
  0x56   : > { %v7021_v43 = vcombine.low %v1006_v17, %v1009_v53  ;;  %v1026_v39 = vrot.slane %v8575_v61, 5  ;;  %7782 = vmatmul.mubr.msk.bf16.vlgmr.msra.gmra.mxu1 %vm612_vm3, %v8177_v49  ;;  %v8731_v34 = vsel %vm8667_vm7, %v7012_v30, %v1019_v35  ;;  %v1021_v38 = vrot.slane %v1019_v35, 4  ;;  %v8805_v49 = vld [vmem:[%s8472_s14 + $0x14] sm:$0x1]  ;;  %v8827_v35 = vld [vmem:[%s8472_s14 + $0x20] sm:$0x1] }
  0x57   : > { %v1029_v46 = vrot.slane %v8579_v1, 5  ;;  %v7014_v50 = vrot.slane %v962_v33, 9  ;;  %v8736_v9 = vsel %vm8667_vm7, %v1014_v18, %v1015_v23  ;;  %7785 = vmatprep.mubr.msk.bf16.mxu1 %vm612_vm3, %v8178_v29  ;;  %v1033_v54 = vrot.slane %v8591_v22, 5  ;;  %7824 = vmatpush3.bf16.msra.mxu1 %v8481_v12  ;;  %v7084_v23 = vld [vmem:[%s8472_s14 + $0x1c] sm:$0xf] }
  0x58   : > { %v8741_v61 = vsel %vm8667_vm7, %v7013_v37, %v1026_v39  ;;  %v1028_v52 = vrot.slane %v1026_v39, 4  ;;  %v7022_v1 = vcombine.low %v8724_v4, %v8736_v9  ;;  %v8750_v56 = vsel %vm8667_vm7, %v1021_v38, %v1022_v36  ;;  %v8181_v36 = vld [vmem:[%s8472_s14 + $0x48] sm:$0xff]  }
  0x59   : > { %v1036_v57 = vrot.slane %v8595_v7, 5  ;;  %v7015_v59 = vrot.slane %v963_v45, 9  ;;  %v7023_v62 = vcombine.low %v8731_v34, %v8750_v56  ;;  %v8762_v12 = vsel %vm8667_vm7, %v7014_v50, %v1033_v54  ;;  %v8182_v45 = vld [vmem:[%s8472_s14 + $0x54] sm:$0xff]   ;;  %v8850_v4 = vld [vmem:[%s11214_s1 + $0xe] sm:$0x3] }
  0x5a   : > { %v8758_v22 = vsel %vm8667_vm7, %v1028_v52, %v1029_v46  ;;  %v1035_v63 = vrot.slane %v1033_v54, 4  ;;  %v1040_v7 = vrot.slane %v8605_v47, 5  ;;  %v1043_v15 = vrot.slane %v8612_v58, 5  ;;  %v7131_v54 = vld [vmem:[%s8472_s14 + $0xc] sm:$0xe]  ;;  %8080 = vmatprep.subr.msk.bf16.mxu1 %vm643_vm0, %v8850_v4 }
  0x5b   : > { %v7024_v0 = vcombine.low %v8741_v61, %v8758_v22  ;;  %v7016_v3 = vrot.slane %v964_v55, 9  ;;  %v1047_v20 = vrot.slane %v8626_v28, 5  ;;  %v1050_v21 = vrot.slane %v8631_v32, 5 }
  0x5c   : > { %v8773_v19 = vsel %vm8667_vm7, %v1035_v63, %v1036_v57  ;;  %v7017_v10 = vrot.slane %v965_v42, 9  ;;  %7760 = vmatmul.mubr.msk.bf16.vlgmr.msra.gmra.mxu0 %vm612_vm3, %v7020_v26  ;;  %v8782_v58 = vsel %vm8667_vm7, %v7015_v59, %v1040_v7  ;;  %v1042_v25 = vrot.slane %v1040_v7, 4  ;;  %v7132_v63 = vld [vmem:[%s8472_s14 + $0x18] sm:$0xe] }
  0x5d   : > { %v7025_v47 = vcombine.low %v8762_v12, %v8773_v19  ;;  %v1054_v44 = vrot.slane %v8639_v41, 5  ;;  %7802 = vmatpush3.bf16.msra.mxu0 %v8477_v11  ;;  %7763 = vmatprep.mubr.msk.bf16.mxu0 %vm612_vm3, %v7021_v43  ;;  %v8792_v28 = vsel %vm8667_vm7, %v7016_v3, %v1047_v20  ;;  %v1049_v32 = vrot.slane %v1047_v20, 4 }
  0x5e   : > { %v1057_v26 = vrot.slane %v8646_v60, 5  ;;  %v1527_v24 = vshrl.u32 %v7080_v5, 16  ;;  %7786 = vmatmul.mubr.msk.bf16.gmra.mxu1 %vm612_vm3, %v8179_v2  ;;  %v8798_v41 = vsel %vm8667_vm7, %v1042_v25, %v1043_v15  ;;  %v1530_v17 = vshll.u32 %v7080_v5, 16  ;;  %8079 = vmatprep.subr.msk.bf16.mxu0 %vm643_vm0, %v8463_v8  ;;  %v7083_v60 = vld [vmem:[%s8472_s14 + $0x18] sm:$0xf] }
  0x5f   : > { %v8802_v11 = vsel %vm8667_vm7, %v7017_v10, %v1054_v44  ;;  %v1056_v6 = vrot.slane %v1054_v44, 4  ;;  %7789 = vmatprep.mubr.msk.bf16.mxu1 %vm612_vm3, %v8180_v14  ;;  %v7026_v27 = vcombine.low %v8782_v58, %v8798_v41  ;;  %v8815_v29 = vsel %vm8667_vm7, %v1049_v32, %v1050_v21  ;;  %v7086_v5 = vld [vmem:[%s8472_s14 + $0x24] sm:$0xf]  ;;  %v8864_v32 = vld [vmem:[%s8472_s14 + $0x28] sm:$0xf] }
  0x60   : > { %v1529_v31 = vrot.slane %v1527_v24, 4  ;;  %v1536_v16 = vshll.u32 %v8786_v51, 16  ;;  %v7027_v30 = vcombine.low %v8792_v28, %v8815_v29  ;;  %v1532_v33 = vrot.slane %v1530_v17, 5 }
  0x61   : > { %v8823_v8 = vsel %vm8667_vm7, %v1056_v6, %v1057_v26  ;;  %v1540_v53 = vshrl.u32 %v8786_v51, 16  ;;  %v1546_v18 = vshll.u32 %v8805_v49, 16  ;;  %v1551_v39 = vshrl.u32 %v7083_v60, 16 }
  0x62   : > { %v7028_v37 = vcombine.low %v8802_v11, %v8823_v8  ;;  %v1538_v43 = vrot.slane %v1536_v16, 5  ;;  %v1533_v38 = vor.u32 %v1532_v33, %v1529_v31  ;;  %v1554_v50 = vshll.u32 %v7083_v60, 16  ;;  %v8876_v16 = vld [vmem:[%s8472_s14 + $0x2c] sm:$0x1] }
  0x63   : > { %v1542_v46 = vrot.slane %v1540_v53, 4  ;;  %v1560_v52 = vshll.u32 %v7084_v23, 16  ;;  %v1548_v55 = vrot.slane %v1546_v18, 5  ;;  %v1553_v57 = vrot.slane %v1551_v39, 4  ;;  %v8183_v53 = vld [vmem:[%s8472_s14 + $0x60] sm:$0xff]  }
  0x64   : > { %v1564_v59 = vshrl.u32 %v7084_v23, 16  ;;  %v1570_v42 = vshll.u32 %v8827_v35, 16  ;;  %7764 = vmatmul.mubr.msk.bf16.gmra.mxu0 %vm612_vm3, %v7022_v1  ;;  %v1534_v2 = vrot.slane %v1533_v38, 4  ;;  %v1556_v15 = vrot.slane %v1554_v50, 5  ;;  %v7089_v18 = vld [vmem:[%s8472_s14 + $0x30] sm:$0xf] }
  0x65   : > { %v1543_v7 = vor.u32 %v1542_v46, %v1538_v43  ;;  %v1562_v3 = vrot.slane %v1560_v52, 5  ;;  %7767 = vmatprep.mubr.msk.bf16.mxu0 %vm612_vm3, %v7023_v62  ;;  %v7141_v21 = vrot.slane %v7131_v54, 9  ;;  %v2006_v10 = vrot.slane %v8786_v51, 5  ;;  %v8889_v39 = vld [vmem:[%s8472_s14 + $0x34] sm:$0xf] }
  0x66   : > { %v1566_v14 = vrot.slane %v1564_v59, 4  ;;  %v1572_v20 = vrot.slane %v1570_v42, 5  ;;  %7790 = vmatmul.mubr.msk.bf16.gmra.mxu1 %vm612_vm3, %v8181_v36  ;;  %v1539_v9 = vsel %vm8513_vm4, %v1534_v2, %v1538_v43  ;;  %v1557_v34 = vor.u32 %v1556_v15, %v1553_v57  ;;  %v8896_v54 = vld [vmem:[%s8472_s14 + $0x38] sm:$0x1] }
  0x67   : > { %v1544_v1 = vrot.slane %v1543_v7, 4  ;;  %v2009_v56 = vrot.slane %v8805_v49, 5  ;;  %7793 = vmatprep.mubr.msk.bf16.mxu1 %vm612_vm3, %v8182_v45  ;;  %v8861_v25 = vsel %vm8667_vm7, %v7141_v21, %v2006_v10  ;;  %v2008_v44 = vrot.slane %v2006_v10, 4  ;;  %v8184_v45 = vld [vmem:[%s8472_s14 + $0x6c] sm:$0xff]  }
  0x68   : > { %v1567_v62 = vor.u32 %v1566_v14, %v1562_v3  ;;  %v7142_v51 = vrot.slane %v7132_v63, 9  ;;  %v1558_v24 = vrot.slane %v1557_v34, 4  ;;  %v2013_v6 = vrot.slane %v7084_v23, 5  ;;  %v7133_v63 = vld [vmem:[%s8472_s14 + $0x24] sm:$0xe] }
  0x69   : > { %v1549_v26 = vsel %vm8513_vm4, %v1544_v1, %v1548_v55  ;;  %v2016_v49 = vrot.slane %v8827_v35, 5  ;;  %v8873_v31 = vsel %vm8667_vm7, %v2008_v44, %v2009_v56  ;;  %v1575_v33 = vshrl.u32 %v7086_v5, 16  ;;  %v7134_v7 = vld [vmem:[%s8472_s14 + $0x30] sm:$0xe] }
  0x6a   : > { %v8869_v17 = vcombine.low %v1539_v9, %v1549_v26  ;;  %v1568_v60 = vrot.slane %v1567_v62, 4  ;;  %v1563_v36 = vsel %vm8513_vm4, %v1558_v24, %v1562_v3  ;;  %v7152_v23 = vcombine.low %v8861_v25, %v8873_v31  ;;  %v8978_v31 = vld [vmem:[%s8472_s14 + $0x50] sm:$0x1] }
  0x6b   : > { %v8885_v35 = vsel %vm8667_vm7, %v7142_v51, %v2013_v6  ;;  %v2015_v43 = vrot.slane %v2013_v6, 4  ;;  %v1577_v46 = vrot.slane %v1575_v33, 4  ;;  %v1578_v50 = vshll.u32 %v7086_v5, 16  ;;  %v8185_v51 = vld [vmem:[%s8472_s14 + $0x78] sm:$0xff]  }
  0x6c   : > { %v1573_v38 = vsel %vm8513_vm4, %v1568_v60, %v1572_v20  ;;  %v1584_v52 = vshll.u32 %v8864_v32, 16  ;;  %7768 = vmatmul.mubr.msk.bf16.gmra.mxu0 %vm612_vm3, %v7024_v0  ;;  %v1588_v59 = vshrl.u32 %v8864_v32, 16  ;;  %v1594_v42 = vshll.u32 %v8876_v16, 16  ;;  %v7092_v60 = vld [vmem:[%s8472_s14 + $0x3c] sm:$0xf] }
  0x6d   : > { %v8902_v55 = vcombine.low %v1563_v36, %v1573_v38  ;;  %v8906_v57 = vsel %vm8667_vm7, %v2015_v43, %v2016_v49  ;;  %7771 = vmatprep.mubr.msk.bf16.mxu0 %vm612_vm3, %v7025_v47  ;;  %v1580_v22 = vrot.slane %v1578_v50, 5  ;;  %v1599_v2 = vshrl.u32 %v7089_v18, 16  ;;  %v7095_v50 = vld [vmem:[%s8472_s14 + $0x48] sm:$0xf] }
  0x6e   : > { %v7153_v61 = vcombine.low %v8885_v35, %v8906_v57  ;;  %v1586_v0 = vrot.slane %v1584_v52, 5  ;;  %7794 = vmatmul.mubr.msk.bf16.gmra.mxu1 %vm612_vm3, %v8183_v53  ;;  %v1590_v15 = vrot.slane %v1588_v59, 4  ;;  %v1596_v3 = vrot.slane %v1594_v42, 5  ;;  %v9004_v57 = vld [vmem:[%s8472_s14 + $0x58] sm:$0xf] }
  0x6f   : > { %v1602_v5 = vshll.u32 %v7089_v18, 16  ;;  %v1608_v14 = vshll.u32 %v8889_v39, 16  ;;  %7797 = vmatprep.mubr.msk.bf16.mxu1 %vm612_vm3, %v8184_v45  ;;  %v1581_v12 = vor.u32 %v1580_v22, %v1577_v46  ;;  %v1601_v19 = vrot.slane %v1599_v2, 4  ;;  %v8932_v18 = vld [vmem:[%s8472_s14 + $0x40] sm:$0xf] }
  0x70   : > { %v1612_v47 = vshrl.u32 %v8889_v39, 16  ;;  %v1618_v20 = vshll.u32 %v8896_v54, 16  ;;  %v1591_v21 = vor.u32 %v1590_v15, %v1586_v0  ;;  %v7143_v1 = vrot.slane %v7133_v63, 9  ;;  %v8935_v45 = vld [vmem:[%s8472_s14 + $0x44] sm:$0x1] }
  0x71   : > { %v1604_v10 = vrot.slane %v1602_v5, 5  ;;  %v1610_v9 = vrot.slane %v1608_v14, 5  ;;  %v1582_v34 = vrot.slane %v1581_v12, 4  ;;  %v2020_v44 = vrot.slane %v8864_v32, 5  ;;  %v7096_v22 = vld [vmem:[%s8472_s14 + $0x4c] sm:$0xf] }
  0x72   : > { %v1614_v56 = vrot.slane %v1612_v47, 4  ;;  %v1620_v62 = vrot.slane %v1618_v20, 5  ;;  %v1592_v26 = vrot.slane %v1591_v21, 4  ;;  %v2023_v6 = vrot.slane %v8876_v16, 5  ;;  %v7135_v14 = vld [vmem:[%s8472_s14 + $0x3c] sm:$0xe] }
  0x73   : > { %v1605_v24 = vor.u32 %v1604_v10, %v1601_v19  ;;  %v7144_v49 = vrot.slane %v7134_v7, 9  ;;  %v1587_v33 = vsel %vm8513_vm4, %v1582_v34, %v1586_v0  ;;  %v2021_v36 = vsel %vm8667_vm7, %v7143_v1, %v2020_v44  ;;  %v7136_v34 = vld [vmem:[%s8472_s14 + $0x48] sm:$0xe] }
  0x74   : > { %v1615_v53 = vor.u32 %v1614_v56, %v1610_v9  ;;  %v2022_v43 = vrot.slane %v2020_v44, 4  ;;  %7772 = vmatmul.mubr.msk.bf16.gmra.mxu0 %vm612_vm3, %v7026_v27  ;;  %v1597_v32 = vsel %vm8513_vm4, %v1592_v26, %v1596_v3  ;;  %v2027_v38 = vrot.slane %v8889_v39, 5  ;;  %v7098_v26 = vld [vmem:[%s8472_s14 + $0x54] sm:$0xf] }
  0x75   : > { %v1606_v16 = vrot.slane %v1605_v24, 4  ;;  %v2030_v46 = vrot.slane %v8896_v54, 5  ;;  %7775 = vmatprep.mubr.msk.bf16.mxu0 %vm612_vm3, %v7027_v30  ;;  %v8950_v52 = vcombine.low %v1587_v33, %v1597_v32  ;;  %v1623_v27 = vshrl.u32 %v7092_v60, 16  ;;  %v9010_v32 = vld [vmem:[%s8472_s14 + $0x5c] sm:$0x1] }
  0x76   : > { %v1616_v58 = vrot.slane %v1615_v53, 4  ;;  %v2024_v41 = vsel %vm8667_vm7, %v2022_v43, %v2023_v6  ;;  %7798 = vmatmul.mubr.msk.bf16.gmra.mxu1 %vm612_vm3, %v8185_v51  ;;  %v8959_v28 = vsel %vm8667_vm7, %v7144_v49, %v2027_v38  ;;  %v2029_v29 = vrot.slane %v2027_v38, 4 }
  0x77   : > { %v1611_v39 = vsel %vm8513_vm4, %v1606_v16, %v1610_v9  ;;  %v7154_v54 = vcombine.low %v2021_v36, %v2024_v41  ;;  %7825 = vmatprep.mubr.msk.bf16.mxu1 %vm612_vm3, %v7152_v23  ;;  %v1625_v59 = vrot.slane %v1623_v27, 4  ;;  %v1626_v42 = vshll.u32 %v7092_v60, 16  ;;  %v9018_v41 = vld [vmem:[%s8472_s14 + $0x64] sm:$0xf] }
  0x78   : > { %v1621_v30 = vsel %vm8513_vm4, %v1616_v58, %v1620_v62  ;;  %v1632_v63 = vshll.u32 %v8932_v18, 16  ;;  %v8973_v2 = vsel %vm8667_vm7, %v2029_v29, %v2030_v46  ;;  %v1636_v7 = vshrl.u32 %v8932_v18, 16  ;;  %v7101_v58 = vld [vmem:[%s8472_s14 + $0x60] sm:$0xf] }
  0x79   : > { %v8969_v0 = vcombine.low %v1611_v39, %v1621_v30  ;;  %v1642_v25 = vshll.u32 %v8935_v45, 16  ;;  %v7155_v23 = vcombine.low %v8959_v28, %v8973_v2  ;;  %v1628_v15 = vrot.slane %v1626_v42, 5  ;;  %v9025_v30 = vld [vmem:[%s8472_s14 + $0x68] sm:$0x1]  ;;  %v7138_v28 = vld [vmem:[%s8472_s14 + $0x60] sm:$0xe] }
  0x7a   : > { %v1634_v3 = vrot.slane %v1632_v63, 5  ;;  %v1647_v5 = vshrl.u32 %v7095_v50, 16  ;;  %v1638_v12 = vrot.slane %v1636_v7, 4  ;;  %v1650_v47 = vshll.u32 %v7095_v50, 16 }
  0x7b   : > { %v1644_v19 = vrot.slane %v1642_v25, 5  ;;  %v1656_v20 = vshll.u32 %v7096_v22, 16  ;;  %v1629_v21 = vor.u32 %v1628_v15, %v1625_v59  ;;  %v1660_v9 = vshrl.u32 %v7096_v22, 16  ;;  %v9030_v59 = vld [vmem:[%s11214_s1 + $0x10] sm:$0x3] }
  0x7c   : > { %v1649_v10 = vrot.slane %v1647_v5, 4  ;;  %v1666_v1 = vshll.u32 %v8978_v31, 16  ;;  %7776 = vmatmul.mubr.msk.bf16.gmra.mxu0 %vm612_vm3, %v7028_v37  ;;  %v1639_v56 = vor.u32 %v1638_v12, %v1634_v3  ;;  %v1652_v62 = vrot.slane %v1650_v47, 5  ;;  %v7137_v25 = vld [vmem:[%s8472_s14 + $0x54] sm:$0xe] }
  0x7d   : > { %v1658_v44 = vrot.slane %v1656_v20, 5  ;;  %v7145_v51 = vrot.slane %v7135_v14, 9  ;;  %7803 = vmatprep.mubr.msk.bf16.mxu0 %vm612_vm3, %v8869_v17  ;;  %v1630_v24 = vrot.slane %v1629_v21, 4  ;;  %v1662_v6 = vrot.slane %v1660_v9, 4 }
  0x7e   : > { %v1668_v49 = vrot.slane %v1666_v1, 5  ;;  %v2034_v60 = vrot.slane %v8932_v18, 5  ;;  %7826 = vmatmul.mubr.msk.bf16.vlgmr.msra.gmra.mxu1 %vm612_vm3, %v7153_v61  ;;  %v1640_v11 = vrot.slane %v1639_v56, 4  ;;  %v1653_v8 = vor.u32 %v1652_v62, %v1649_v10 }
  0x7f   : > { %v2037_v37 = vrot.slane %v8935_v45, 5  ;;  %v7146_v33 = vrot.slane %v7136_v34, 9  ;;  %7829 = vmatprep.mubr.msk.bf16.mxu1 %vm612_vm3, %v7154_v54  ;;  %v1635_v17 = vsel %vm8513_vm4, %v1630_v24, %v1634_v3  ;;  %v1663_v53 = vor.u32 %v1662_v6, %v1658_v44 }
  0x80   : > { %v2035_v36 = vsel %vm8667_vm7, %v7145_v51, %v2034_v60  ;;  %v2036_v35 = vrot.slane %v2034_v60, 4  ;;  %v1645_v61 = vsel %vm8513_vm4, %v1640_v11, %v1644_v19  ;;  %v1654_v43 = vrot.slane %v1653_v8, 4  ;;  %v7104_v11 = vld [vmem:[%s8472_s14 + $0x6c] sm:$0xf] }
  0x81   : > { %v2041_v18 = vrot.slane %v7096_v22, 5  ;;  %v2044_v45 = vrot.slane %v8978_v31, 5  ;;  %v9012_v16 = vcombine.low %v1635_v17, %v1645_v61  ;;  %v1664_v38 = vrot.slane %v1663_v53, 4  ;;  %v7105_v61 = vld [vmem:[%s8472_s14 + $0x70] sm:$0xf] }
  0x82   : > { %v2038_v46 = vsel %vm8667_vm7, %v2036_v35, %v2037_v37  ;;  %v1671_v50 = vshrl.u32 %v7098_v26, 16  ;;  %v1659_v27 = vsel %vm8513_vm4, %v1654_v43, %v1658_v44  ;;  %v1674_v22 = vshll.u32 %v7098_v26, 16 }
  0x83   : > { %v7156_v39 = vcombine.low %v2035_v36, %v2038_v46  ;;  %v2042_v54 = vsel %vm8667_vm7, %v7146_v33, %v2041_v18  ;;  %v2043_v29 = vrot.slane %v2041_v18, 4  ;;  %v1669_v42 = vsel %vm8513_vm4, %v1664_v38, %v1668_v49 }
  0x84   : > { %v1673_v63 = vrot.slane %v1671_v50, 4  ;;  %v1680_v7 = vshll.u32 %v9004_v57, 16  ;;  %7804 = vmatmul.mubr.msk.bf16.vlgmr.msra.gmra.mxu0 %vm612_vm3, %v8902_v55  ;;  %v9038_v31 = vcombine.low %v1659_v27, %v1669_v42  ;;  %v1684_v3 = vshrl.u32 %v9004_v57, 16 }
  0x85   : > { %v2045_v15 = vsel %vm8667_vm7, %v2043_v29, %v2044_v45  ;;  %v1690_v5 = vshll.u32 %v9010_v32, 16  ;;  %7846 = vmatpush3.bf16.msra.mxu0 %v8485_v13  ;;  %7807 = vmatprep.mubr.msk.bf16.mxu0 %vm612_vm3, %v8950_v52  ;;  %v1676_v12 = vrot.slane %v1674_v22, 5  ;;  %v1695_v47 = vshrl.u32 %v7101_v58, 16  ;;  %v7108_v29 = vld [vmem:[%s8472_s14 + $0x7c] sm:$0xf] }
  0x86   : > { %v7157_v14 = vcombine.low %v2042_v54, %v2045_v15  ;;  %v1682_v19 = vrot.slane %v1680_v7, 5  ;;  %7830 = vmatmul.mubr.msk.bf16.gmra.mxu1 %vm612_vm3, %v7155_v23  ;;  %v1686_v55 = vrot.slane %v1684_v3, 4  ;;  %v1698_v21 = vshll.u32 %v7101_v58, 16  ;;  %8081 = vmatprep.subr.msk.bf16.mxu0 %vm643_vm0, %v9030_v59  ;;  %v7109_v7 = vld [vmem:[%s8472_s14 + $0x80] sm:$0x1] }
  0x87   : > { %v1692_v20 = vrot.slane %v1690_v5, 5  ;;  %v1704_v10 = vshll.u32 %v9018_v41, 16  ;;  %7833 = vmatprep.mubr.msk.bf16.mxu1 %vm612_vm3, %v7156_v39  ;;  %v1677_v13 = vor.u32 %v1676_v12, %v1673_v63  ;;  %v1697_v52 = vrot.slane %v1695_v47, 4 }
  0x88   : > { %v1708_v9 = vshrl.u32 %v9018_v41, 16  ;;  %v1714_v1 = vshll.u32 %v9025_v30, 16  ;;  %v1687_v2 = vor.u32 %v1686_v55, %v1682_v19  ;;  %v1700_v23 = vrot.slane %v1698_v21, 5 }
  0x89   : > { %v1706_v34 = vrot.slane %v1704_v10, 5  ;;  %v7147_v56 = vrot.slane %v7137_v25, 9  ;;  %v1678_v62 = vrot.slane %v1677_v13, 4  ;;  %v2048_v26 = vrot.slane %v9004_v57, 5 }
  0x8a   : > { %v1710_v44 = vrot.slane %v1708_v9, 4  ;;  %v1716_v51 = vrot.slane %v1714_v1, 5  ;;  %v1688_v24 = vrot.slane %v1687_v2, 4  ;;  %v1701_v6 = vor.u32 %v1700_v23, %v1697_v52  ;;  %v7140_v52 = vld [vmem:[%s8472_s14 + $0x78] sm:$0xe] }
  0x8b   : > { %v2051_v49 = vrot.slane %v9010_v32, 5  ;;  %v7148_v60 = vrot.slane %v7138_v28, 9  ;;  %v1683_v8 = vsel %vm8513_vm4, %v1678_v62, %v1682_v19  ;;  %v2049_v33 = vsel %vm8667_vm7, %v7147_v56, %v2048_v26 }
  0x8c   : > { %v1711_v37 = vor.u32 %v1710_v44, %v1706_v34  ;;  %v2050_v17 = vrot.slane %v2048_v26, 4  ;;  %7808 = vmatmul.mubr.msk.bf16.gmra.mxu0 %vm612_vm3, %v8969_v0  ;;  %v1693_v53 = vsel %vm8513_vm4, %v1688_v24, %v1692_v20  ;;  %v1702_v36 = vrot.slane %v1701_v6, 4  ;;  %v7106_v0 = vld [vmem:[%s8472_s14 + $0x74] sm:$0x1] }
  0x8d   : > { %v2055_v35 = vrot.slane %v9018_v41, 5  ;;  %v2058_v57 = vrot.slane %v9025_v30, 5  ;;  %7811 = vmatprep.mubr.msk.bf16.mxu0 %vm612_vm3, %v9012_v16  ;;  %v7117_v43 = vcombine.low %v1683_v8, %v1693_v53  ;;  %v1719_v32 = vshrl.u32 %v7104_v11, 16  ;;  %v7107_v16 = vld [vmem:[%s8472_s14 + $0x78] sm:$0xf] }
  0x8e   : > { %v1712_v18 = vrot.slane %v1711_v37, 4  ;;  %v2052_v45 = vsel %vm8667_vm7, %v2050_v17, %v2051_v49  ;;  %7834 = vmatmul.mubr.msk.bf16.gmra.mxu1 %vm612_vm3, %v7157_v14  ;;  %v1707_v38 = vsel %vm8513_vm4, %v1702_v36, %v1706_v34  ;;  %v1722_v39 = vshll.u32 %v7104_v11, 16  ;;  %v7139_v14 = vld [vmem:[%s8472_s14 + $0x6c] sm:$0xe]  ;;  %v7213_v17 = vld [vmem:[%s8472_s14 + $0x18] sm:$0xf] }
  0x8f   : > { %v7158_v46 = vcombine.low %v2049_v33, %v2052_v45  ;;  %v2056_v50 = vsel %vm8667_vm7, %v7148_v60, %v2055_v35  ;;  %v2057_v58 = vrot.slane %v2055_v35, 4  ;;  %v1721_v27 = vrot.slane %v1719_v32, 4  ;;  %v9115_v32 = vld [vmem:[%s8472_s14 + $0x20] sm:$0x1] }
  0x90   : > { %v1717_v41 = vsel %vm8513_vm4, %v1712_v18, %v1716_v51  ;;  %v1728_v54 = vshll.u32 %v7105_v61, 16  ;;  %v1732_v63 = vshrl.u32 %v7105_v61, 16  ;;  %v1738_v22 = vshll.u32 %v7106_v0, 16 }
  0x91   : > { %v7118_v30 = vcombine.low %v1707_v38, %v1717_v41  ;;  %7837 = vmatprep.mubr.msk.bf16.mxu1 %vm612_vm3, %v7158_v46  ;;  %v2059_v42 = vsel %vm8667_vm7, %v2057_v58, %v2058_v57  ;;  %v1724_v15 = vrot.slane %v1722_v39, 5  ;;  %v1743_v5 = vshrl.u32 %v7107_v16, 16  ;;  %v7216_v58 = vld [vmem:[%s8472_s14 + $0x24] sm:$0xf] }
  0x92   : > { %v7159_v25 = vcombine.low %v2056_v50, %v2059_v42  ;;  %v1730_v3 = vrot.slane %v1728_v54, 5  ;;  %v1734_v12 = vrot.slane %v1732_v63, 4  ;;  %v1740_v19 = vrot.slane %v1738_v22, 5  ;;  %v9131_v54 = vld [vmem:[%s8472_s14 + $0x28] sm:$0xf] }
  0x93   : > { %v1746_v47 = vshll.u32 %v7107_v16, 16  ;;  %v1752_v55 = vshll.u32 %v7108_v29, 16  ;;  %v1725_v20 = vor.u32 %v1724_v15, %v1721_v27  ;;  %v1745_v21 = vrot.slane %v1743_v5, 4  ;;  %v9136_v63 = vld [vmem:[%s8472_s14 + $0x2c] sm:$0x1] }
  0x94   : > { %v1756_v10 = vshrl.u32 %v7108_v29, 16  ;;  %v1762_v13 = vshll.u32 %v7109_v7, 16  ;;  %7812 = vmatmul.mubr.msk.bf16.gmra.mxu0 %vm612_vm3, %v9038_v31  ;;  %v1735_v9 = vor.u32 %v1734_v12, %v1730_v3  ;;  %v7149_v2 = vrot.slane %v7139_v14, 9 }
  0x95   : > { %v1748_v1 = vrot.slane %v1746_v47, 5  ;;  %v1754_v28 = vrot.slane %v1752_v55, 5  ;;  %7815 = vmatprep.mubr.msk.bf16.mxu0 %vm612_vm3, %v7117_v43  ;;  %v1726_v23 = vrot.slane %v1725_v20, 4  ;;  %v2062_v62 = vrot.slane %v7105_v61, 5  ;;  %v9108_v61 = vld [vmem:[%s8472_s14 + $0x1c] sm:$0xf] }
  0x96   : > { %v1758_v34 = vrot.slane %v1756_v10, 4  ;;  %v1764_v56 = vrot.slane %v1762_v13, 5  ;;  %7838 = vmatmul.mubr.msk.bf16.gmra.mxu1 %vm612_vm3, %v7159_v25  ;;  %v1736_v44 = vrot.slane %v1735_v9, 4  ;;  %v2065_v26 = vrot.slane %v7106_v0, 5  ;;  %v9144_v10 = vld [vmem:[%s8472_s14 + $0x34] sm:$0xf] }
  0x97   : > { %v1749_v51 = vor.u32 %v1748_v1, %v1745_v21  ;;  %v7150_v24 = vrot.slane %v7140_v52, 9  ;;  %v1731_v31 = vsel %vm8513_vm4, %v1726_v23, %v1730_v3  ;;  %v2063_v49 = vsel %vm8667_vm7, %v7149_v2, %v2062_v62  ;;  %v7219_v3 = vld [vmem:[%s8472_s14 + $0x30] sm:$0xf]  ;;  %v8186_v13 = vld [vmem:[%s8472_s14 + $0x18] sm:$0xff]  }
  0x98   : > { %v1759_v6 = vor.u32 %v1758_v34, %v1754_v28  ;;  %v2064_v60 = vrot.slane %v2062_v62, 4  ;;  %v1741_v11 = vsel %vm8513_vm4, %v1736_v44, %v1740_v19  ;;  %v2069_v37 = vrot.slane %v7108_v29, 5 }
  0x99   : > { %v1750_v8 = vrot.slane %v1749_v51, 4  ;;  %v2072_v33 = vrot.slane %v7109_v7, 5  ;;  %v7119_v53 = vcombine.low %v1731_v31, %v1741_v11  ;;  %v2844_v57 = vsel %vm643_vm0, %v8850_v4, 0  ;;  %v7222_v31 = vld [vmem:[%s8472_s14 + $0x3c] sm:$0xf] }
  0x9a   : > { %v1760_v36 = vrot.slane %v1759_v6, 4  ;;  %v2066_v35 = vsel %vm8667_vm7, %v2064_v60, %v2065_v26  ;;  %v2070_v45 = vsel %vm8667_vm7, %v7150_v24, %v2069_v37  ;;  %v2071_v0 = vrot.slane %v2069_v37, 4  ;;  %7868 = vmatpush3.bf16.msra.mxu1 %v2844_v57 }
  0x9b   : > { %v1755_v43 = vsel %vm8513_vm4, %v1750_v8, %v1754_v28  ;;  %v7160_v18 = vcombine.low %v2063_v49, %v2066_v35  ;;  %v9121_v4 = vsel %vm643_vm0, %v9030_v59, 0  ;;  %v2542_v46 = vshrl.u32 %v7213_v17, 16  ;;  %v9159_v8 = vld [vmem:[%s8472_s14 + $0x40] sm:$0xf] }
  0x9c   : > { %v1765_v38 = vsel %vm8513_vm4, %v1760_v36, %v1764_v56  ;;  %v2545_v50 = vshll.u32 %v7213_v17, 16  ;;  %7816 = vmatmul.mubr.msk.bf16.gmra.mxu0 %vm612_vm3, %v7118_v30  ;;  %v2073_v41 = vsel %vm8667_vm7, %v2071_v0, %v2072_v33  ;;  %v2551_v27 = vshll.u32 %v9108_v61, 16  ;;  %v9148_v56 = vld [vmem:[%s8472_s14 + $0x38] sm:$0x1] }
  0x9d   : > { %v7120_v16 = vcombine.low %v1755_v43, %v1765_v38  ;;  %7841 = vmatprep.mubr.msk.bf16.mxu1 %vm612_vm3, %v7160_v18  ;;  %v2555_v39 = vshrl.u32 %v9108_v61, 16  ;;  %7819 = vmatprep.mubr.msk.bf16.mxu0 %vm612_vm3, %v7119_v53  ;;  %v7161_v59 = vcombine.low %v2070_v45, %v2073_v41  ;;  %v2544_v29 = vrot.slane %v2542_v46, 4  ;;  %v9166_v43 = vld [vmem:[%s8472_s14 + $0x44] sm:$0x1] }
  0x9e   : > { %v2547_v42 = vrot.slane %v2545_v50, 5  ;;  %v2561_v30 = vshll.u32 %v9115_v32, 16  ;;  %v2553_v22 = vrot.slane %v2551_v27, 5  ;;  %v2566_v25 = vshrl.u32 %v7216_v58, 16  ;;  %v7225_v50 = vld [vmem:[%s8472_s14 + $0x48] sm:$0xf] }
  0x9f   : > { %v2557_v7 = vrot.slane %v2555_v39, 4  ;;  %v2569_v15 = vshll.u32 %v7216_v58, 16  ;;  %7842 = vmatmul.mubr.msk.bf16.gmra.mxu1 %vm612_vm3, %v7161_v59  ;;  %v2575_v12 = vshll.u32 %v9131_v54, 16  ;;  %v2579_v19 = vshrl.u32 %v9131_v54, 16  ;;  %v8187_v58 = vld [vmem:[%s8472_s14 + $0x24] sm:$0xff]  }
  0xa0   : > { %v2548_v5 = vor.u32 %v2547_v42, %v2544_v29  ;;  %v2563_v14 = vrot.slane %v2561_v30, 5  ;;  %v2568_v55 = vrot.slane %v2566_v25, 4  ;;  %v2585_v21 = vshll.u32 %v9136_v63, 16  ;;  %v9175_v59 = vld [vmem:[%s8472_s14 + $0x4c] sm:$0xf]  ;;  %v8188_v29 = vld [vmem:[%s8472_s14 + $0x30] sm:$0xff]  }
  0xa1   : > { %v2558_v47 = vor.u32 %v2557_v7, %v2553_v22  ;;  %v2571_v20 = vrot.slane %v2569_v15, 5  ;;  %v2577_v9 = vrot.slane %v2575_v12, 5  ;;  %v2581_v1 = vrot.slane %v2579_v19, 4 }
  0xa2   : > { %v2549_v52 = vrot.slane %v2548_v5, 4  ;;  %v2590_v28 = vshrl.u32 %v7219_v3, 16  ;;  %v2587_v34 = vrot.slane %v2585_v21, 5  ;;  %v2593_v62 = vshll.u32 %v7219_v3, 16  ;;  %v9184_v3 = vld [vmem:[%s8472_s14 + $0x50] sm:$0x1] }
  0xa3   : > { %v2559_v2 = vrot.slane %v2558_v47, 4  ;;  %v2572_v23 = vor.u32 %v2571_v20, %v2568_v55  ;;  %v2582_v51 = vor.u32 %v2581_v1, %v2577_v9  ;;  %v2599_v24 = vshll.u32 %v9144_v10, 16  ;;  %v7228_v20 = vld [vmem:[%s8472_s14 + $0x54] sm:$0xf]  ;;  %v9193_v1 = vld [vmem:[%s8472_s14 + $0x58] sm:$0xf] }
  0xa4   : > { %v2554_v44 = vsel %vm8513_vm4, %v2549_v52, %v2553_v22  ;;  %v2592_v26 = vrot.slane %v2590_v28, 4  ;;  %7820 = vmatmul.mubr.msk.bf16.gmra.mxu0 %vm612_vm3, %v7120_v16  ;;  %v2595_v60 = vrot.slane %v2593_v62, 5  ;;  %v2603_v11 = vshrl.u32 %v9144_v10, 16 }
  0xa5   : > { %v2564_v6 = vsel %vm8513_vm4, %v2559_v2, %v2563_v14  ;;  %v2573_v49 = vrot.slane %v2572_v23, 4  ;;  %7847 = vmatprep.mubr.msk.bf16.mxu0 %vm612_vm3, %v8186_v13  ;;  %v2583_v33 = vrot.slane %v2582_v51, 4  ;;  %v2601_v17 = vrot.slane %v2599_v24, 5 }
  0xa6   : > { %v7244_v37 = vcombine.low %v2554_v44, %v2564_v6  ;;  %v2609_v53 = vshll.u32 %v9148_v56, 16  ;;  %v2596_v35 = vor.u32 %v2595_v60, %v2592_v26  ;;  %v2605_v57 = vrot.slane %v2603_v11, 4  ;;  %v8189_v60 = vld [vmem:[%s8472_s14 + $0x3c] sm:$0xff]  }
  0xa7   : > { %v2578_v36 = vsel %vm8513_vm4, %v2573_v49, %v2577_v9  ;;  %v2614_v18 = vshrl.u32 %v7222_v31, 16  ;;  %v2588_v45 = vsel %vm8513_vm4, %v2583_v33, %v2587_v34  ;;  %v2617_v38 = vshll.u32 %v7222_v31, 16  ;;  %v9202_v31 = vld [vmem:[%s8472_s14 + $0x5c] sm:$0x1] }
  0xa8   : > { %7869 = vmatprep.mubr.msk.bf16.mxu1 %vm612_vm3, %v7244_v37  ;;  %v2611_v0 = vrot.slane %v2609_v53, 5  ;;  %v2623_v46 = vshll.u32 %v9159_v8, 16  ;;  %v7245_v16 = vcombine.low %v2578_v36, %v2588_v45  ;;  %v2597_v41 = vrot.slane %v2596_v35, 4  ;;  %v7231_v53 = vld [vmem:[%s8472_s14 + $0x60] sm:$0xf]  ;;  %v8190_v35 = vld [vmem:[%s8472_s14 + $0x48] sm:$0xff]  }
  0xa9   : > { %v2606_v27 = vor.u32 %v2605_v57, %v2601_v17  ;;  %v2616_v39 = vrot.slane %v2614_v18, 4  ;;  %v2619_v42 = vrot.slane %v2617_v38, 5  ;;  %v2627_v22 = vshrl.u32 %v9159_v8, 16 }
  0xaa   : > { %v2625_v30 = vrot.slane %v2623_v46, 5  ;;  %v2633_v7 = vshll.u32 %v9166_v43, 16  ;;  %7870 = vmatmul.mubr.msk.bf16.vlgmr.msra.gmra.mxu1 %vm612_vm3, %v7245_v16  ;;  %v2602_v25 = vsel %vm8513_vm4, %v2597_v41, %v2601_v17  ;;  %v2638_v5 = vshrl.u32 %v7225_v50, 16 }
  0xab   : > { %v2607_v15 = vrot.slane %v2606_v27, 4  ;;  %v2641_v14 = vshll.u32 %v7225_v50, 16  ;;  %v2620_v12 = vor.u32 %v2619_v42, %v2616_v39  ;;  %v2629_v19 = vrot.slane %v2627_v22, 4  ;;  %v9218_v27 = vld [vmem:[%s8472_s14 + $0x68] sm:$0x1] }
  0xac   : > { %v2635_v47 = vrot.slane %v2633_v7, 5  ;;  %v2647_v55 = vshll.u32 %v9175_v59, 16  ;;  %7848 = vmatmul.mubr.msk.bf16.vlgmr.msra.gmra.mxu0 %vm612_vm3, %v8187_v58  ;;  %v2640_v13 = vrot.slane %v2638_v5, 4  ;;  %v2651_v9 = vshrl.u32 %v9175_v59, 16 }
  0xad   : > { %v2612_v21 = vsel %vm8513_vm4, %v2607_v15, %v2611_v0  ;;  %v2643_v52 = vrot.slane %v2641_v14, 5  ;;  %7890 = vmatpush3.bf16.msra.mxu0 %v9121_v4  ;;  %7851 = vmatprep.mubr.msk.bf16.mxu0 %vm612_vm3, %v8188_v29  ;;  %v2621_v2 = vrot.slane %v2620_v12, 4  ;;  %v2630_v23 = vor.u32 %v2629_v19, %v2625_v30  ;;  %v9212_v0 = vld [vmem:[%s8472_s14 + $0x64] sm:$0xf]  ;;  %v9229_v19 = vld [vmem:[%s8472_s14 + $0x70] sm:$0xf] }
  0xae   : > { %v7246_v28 = vcombine.low %v2602_v25, %v2612_v21  ;;  %v2649_v34 = vrot.slane %v2647_v55, 5  ;;  %v2653_v44 = vrot.slane %v2651_v9, 4  ;;  %v2657_v51 = vshll.u32 %v9184_v3, 16  ;;  %v7234_v25 = vld [vmem:[%s8472_s14 + $0x6c] sm:$0xf] }
  0xaf   : > { %v2644_v62 = vor.u32 %v2643_v52, %v2640_v13  ;;  %v2662_v26 = vshrl.u32 %v7228_v20, 16  ;;  %v2626_v24 = vsel %vm8513_vm4, %v2621_v2, %v2625_v30  ;;  %v2631_v4 = vrot.slane %v2630_v23, 4  ;;  %v8191_v13 = vld [vmem:[%s8472_s14 + $0x54] sm:$0xff]  }
  0xb0   : > { %7873 = vmatprep.mubr.msk.bf16.mxu1 %vm612_vm3, %v7246_v28  ;;  %v2665_v6 = vshll.u32 %v7228_v20, 16  ;;  %v2671_v49 = vshll.u32 %v9193_v1, 16  ;;  %v2654_v37 = vor.u32 %v2653_v44, %v2649_v34  ;;  %v2659_v33 = vrot.slane %v2657_v51, 5  ;;  %v9237_v44 = vld [vmem:[%s8472_s14 + $0x74] sm:$0x1] }
  0xb1   : > { %v2645_v11 = vrot.slane %v2644_v62, 4  ;;  %v2664_v17 = vrot.slane %v2662_v26, 4  ;;  %v2636_v36 = vsel %vm8513_vm4, %v2631_v4, %v2635_v47  ;;  %v2675_v45 = vshrl.u32 %v9193_v1, 16  ;;  %v7237_v26 = vld [vmem:[%s8472_s14 + $0x78] sm:$0xf]  ;;  %v8192_v4 = vld [vmem:[%s8472_s14 + $0x60] sm:$0xff]  }
  0xb2   : > { %v2667_v57 = vrot.slane %v2665_v6, 5  ;;  %v2673_v18 = vrot.slane %v2671_v49, 5  ;;  %v7247_v38 = vcombine.low %v2626_v24, %v2636_v36  ;;  %v2655_v50 = vrot.slane %v2654_v37, 4 }
  0xb3   : > { %v2650_v46 = vsel %vm8513_vm4, %v2645_v11, %v2649_v34  ;;  %v2681_v58 = vshll.u32 %v9202_v31, 16  ;;  %v2677_v41 = vrot.slane %v2675_v45, 4  ;;  %v2686_v39 = vshrl.u32 %v7231_v53, 16  ;;  %v9246_v11 = vld [vmem:[%s8472_s14 + $0x7c] sm:$0xf] }
  0xb4   : > { %v2668_v16 = vor.u32 %v2667_v57, %v2664_v17  ;;  %v2689_v29 = vshll.u32 %v7231_v53, 16  ;;  %7852 = vmatmul.mubr.msk.bf16.gmra.mxu0 %vm612_vm3, %v8189_v60  ;;  %7874 = vmatmul.mubr.msk.bf16.gmra.mxu1 %vm612_vm3, %v7247_v38  ;;  %v2660_v42 = vsel %vm8513_vm4, %v2655_v50, %v2659_v33  ;;  %v2695_v22 = vshll.u32 %v9212_v0, 16 }
  0xb5   : > { %v2683_v30 = vrot.slane %v2681_v58, 5  ;;  %v2699_v7 = vshrl.u32 %v9212_v0, 16  ;;  %7855 = vmatprep.mubr.msk.bf16.mxu0 %vm612_vm3, %v8190_v35  ;;  %v7248_v15 = vcombine.low %v2650_v46, %v2660_v42  ;;  %v2678_v14 = vor.u32 %v2677_v41, %v2673_v18  ;;  %v9256_v46 = vld [vmem:[%s8472_s14 + $0x80] sm:$0x1] }
  0xb6   : > { %v2669_v5 = vrot.slane %v2668_v16, 4  ;;  %v2688_v12 = vrot.slane %v2686_v39, 4  ;;  %v2691_v47 = vrot.slane %v2689_v29, 5  ;;  %v2697_v55 = vrot.slane %v2695_v22, 5  ;;  %v7240_v16 = vld [vmem:[%s8472_s14 + $0x84] sm:$0xf] }
  0xb7   : > { %v2701_v20 = vrot.slane %v2699_v7, 4  ;;  %v2705_v21 = vshll.u32 %v9218_v27, 16  ;;  %7877 = vmatprep.mubr.msk.bf16.mxu1 %vm612_vm3, %v7248_v15  ;;  %v2679_v9 = vrot.slane %v2678_v14, 4  ;;  %v2710_v28 = vshrl.u32 %v7234_v25, 16 }
  0xb8   : > { %v2674_v52 = vsel %vm8513_vm4, %v2669_v5, %v2673_v18  ;;  %v2713_v2 = vshll.u32 %v7234_v25, 16  ;;  %v2692_v23 = vor.u32 %v2691_v47, %v2688_v12  ;;  %v2719_v51 = vshll.u32 %v9229_v19, 16  ;;  %v9270_v47 = vld [vmem:[%s8472_s14 + $0x8c] sm:$0x1] }
  0xb9   : > { %v2702_v34 = vor.u32 %v2701_v20, %v2697_v55  ;;  %v2707_v62 = vrot.slane %v2705_v21, 5  ;;  %v2684_v24 = vsel %vm8513_vm4, %v2679_v9, %v2683_v30  ;;  %v2712_v6 = vrot.slane %v2710_v28, 4  ;;  %v9262_v30 = vld [vmem:[%s8472_s14 + $0x88] sm:$0xf]  ;;  %v8193_v20 = vld [vmem:[%s8472_s14 + $0x6c] sm:$0xff]  }
  0xba   : > { %v2715_v49 = vrot.slane %v2713_v2, 5  ;;  %v2723_v60 = vshrl.u32 %v9229_v19, 16  ;;  %v7249_v37 = vcombine.low %v2674_v52, %v2684_v24  ;;  %v2693_v33 = vrot.slane %v2692_v23, 4  ;;  %v7264_v28 = vld [vmem:[%s8472_s14 + $0x18] sm:$0xe] }
  0xbb   : > { %v2703_v17 = vrot.slane %v2702_v34, 4  ;;  %v2721_v53 = vrot.slane %v2719_v51, 5  ;;  %v2729_v57 = vshll.u32 %v9237_v44, 16  ;;  %v2734_v18 = vshrl.u32 %v7237_v26, 16  ;;  %v8194_v23 = vld [vmem:[%s8472_s14 + $0x78] sm:$0xff]  }
  0xbc   : > { %v2716_v36 = vor.u32 %v2715_v49, %v2712_v6  ;;  %v2725_v35 = vrot.slane %v2723_v60, 4  ;;  %7856 = vmatmul.mubr.msk.bf16.gmra.mxu0 %vm612_vm3, %v8191_v13  ;;  %7878 = vmatmul.mubr.msk.bf16.gmra.mxu1 %vm612_vm3, %v7249_v37  ;;  %v2698_v45 = vsel %vm8513_vm4, %v2693_v33, %v2697_v55  ;;  %v2737_v50 = vshll.u32 %v7237_v26, 16 }
  0xbd   : > { %v2708_v38 = vsel %vm8513_vm4, %v2703_v17, %v2707_v62  ;;  %v2743_v58 = vshll.u32 %v9246_v11, 16  ;;  %7859 = vmatprep.mubr.msk.bf16.mxu0 %vm612_vm3, %v8192_v4  ;;  %v2731_v42 = vrot.slane %v2729_v57, 5  ;;  %v2736_v22 = vrot.slane %v2734_v18, 4 }
  0xbe   : > { %v7250_v41 = vcombine.low %v2698_v45, %v2708_v38  ;;  %v2717_v39 = vrot.slane %v2716_v36, 4  ;;  %v2726_v29 = vor.u32 %v2725_v35, %v2721_v53  ;;  %v2739_v7 = vrot.slane %v2737_v50, 5  ;;  %v7265_v38 = vld [vmem:[%s8472_s14 + $0x24] sm:$0xe] }
  0xbf   : > { %v2745_v25 = vrot.slane %v2743_v58, 5  ;;  %v2747_v15 = vshrl.u32 %v9246_v11, 16  ;;  %v2753_v12 = vshll.u32 %v9256_v46, 16  ;;  %v2758_v55 = vshrl.u32 %v7240_v16, 16 }
  0xc0   : > { %7881 = vmatprep.mubr.msk.bf16.mxu1 %vm612_vm3, %v7250_v41  ;;  %v2722_v5 = vsel %vm8513_vm4, %v2717_v39, %v2721_v53  ;;  %v2727_v14 = vrot.slane %v2726_v29, 4  ;;  %v2740_v21 = vor.u32 %v2739_v7, %v2736_v22  ;;  %v2761_v52 = vshll.u32 %v7240_v16, 16  ;;  %v8195_v22 = vld [vmem:[%s8472_s14 + $0x84] sm:$0xff]  }
  0xc1   : > { %v2749_v13 = vrot.slane %v2747_v15, 4  ;;  %v2767_v9 = vshll.u32 %v9262_v30, 16  ;;  %v2755_v34 = vrot.slane %v2753_v12, 5  ;;  %v2760_v62 = vrot.slane %v2758_v55, 4 }
  0xc2   : > { %v2732_v2 = vsel %vm8513_vm4, %v2727_v14, %v2731_v42  ;;  %v2771_v51 = vshrl.u32 %v9262_v30, 16  ;;  %v2741_v24 = vrot.slane %v2740_v21, 4  ;;  %v2763_v6 = vrot.slane %v2761_v52, 5 }
  0xc3   : > { %v7251_v26 = vcombine.low %v2722_v5, %v2732_v2  ;;  %v2750_v4 = vor.u32 %v2749_v13, %v2745_v25  ;;  %v2769_v49 = vrot.slane %v2767_v9, 5  ;;  %v2777_v37 = vshll.u32 %v9270_v47, 16 }
  0xc4   : > { %v2773_v60 = vrot.slane %v2771_v51, 4  ;;  %v7274_v33 = vrot.slane %v7264_v28, 9  ;;  %7860 = vmatmul.mubr.msk.bf16.gmra.mxu0 %vm612_vm3, %v8193_v20  ;;  %v2746_v17 = vsel %vm8513_vm4, %v2741_v24, %v2745_v25  ;;  %v2764_v36 = vor.u32 %v2763_v6, %v2760_v62  ;;  %v7267_v28 = vld [vmem:[%s8472_s14 + $0x3c] sm:$0xe] }
  0xc5   : > { %7882 = vmatmul.mubr.msk.bf16.gmra.mxu1 %vm612_vm3, %v7251_v26  ;;  %v2751_v53 = vrot.slane %v2750_v4, 4  ;;  %v3021_v35 = vrot.slane %v9108_v61, 5  ;;  %7863 = vmatprep.mubr.msk.bf16.mxu0 %vm612_vm3, %v8194_v23  ;;  %v2779_v18 = vrot.slane %v2777_v37, 5  ;;  %v3024_v45 = vrot.slane %v9115_v32, 5  ;;  %v7266_v61 = vld [vmem:[%s8472_s14 + $0x30] sm:$0xe] }
  0xc6   : > { %v2774_v57 = vor.u32 %v2773_v60, %v2769_v49  ;;  %v2765_v58 = vrot.slane %v2764_v36, 4  ;;  %v3028_v42 = vrot.slane %v9131_v54, 5  ;;  %v7275_v25 = vrot.slane %v7265_v38, 9  ;;  %v7268_v23 = vld [vmem:[%s8472_s14 + $0x48] sm:$0xe] }
  0xc7   : > { %v2756_v50 = vsel %vm8513_vm4, %v2751_v53, %v2755_v34  ;;  %v3022_v16 = vsel %vm8667_vm7, %v7274_v33, %v3021_v35  ;;  %v3023_v41 = vrot.slane %v3021_v35, 4  ;;  %v3035_v15 = vrot.slane %v9144_v10, 5  ;;  %v7269_v33 = vld [vmem:[%s8472_s14 + $0x54] sm:$0xe] }
  0xc8   : > { %v7252_v39 = vcombine.low %v2746_v17, %v2756_v50  ;;  %v2775_v29 = vrot.slane %v2774_v57, 4  ;;  %v2770_v7 = vsel %vm8513_vm4, %v2765_v58, %v2769_v49  ;;  %v3030_v12 = vrot.slane %v3028_v42, 4  ;;  %v7270_v17 = vld [vmem:[%s8472_s14 + $0x60] sm:$0xe] }
  0xc9   : > { %v3025_v32 = vsel %vm8667_vm7, %v3023_v41, %v3024_v45  ;;  %v3031_v54 = vrot.slane %v9136_v63, 5  ;;  %v7276_v20 = vrot.slane %v7266_v61, 9  ;;  %v3037_v21 = vrot.slane %v3035_v15, 4  ;;  %v7271_v41 = vld [vmem:[%s8472_s14 + $0x6c] sm:$0xe] }
  0xca   : > { %7885 = vmatprep.mubr.msk.bf16.mxu1 %vm612_vm3, %v7252_v39  ;;  %v2780_v5 = vsel %vm8513_vm4, %v2775_v29, %v2779_v18  ;;  %v7285_v14 = vcombine.low %v3022_v16, %v3025_v32  ;;  %v3038_v13 = vrot.slane %v9148_v56, 5  ;;  %v3029_v10 = vsel %vm8667_vm7, %v7275_v25, %v3028_v42  ;;  %v7272_v39 = vld [vmem:[%s8472_s14 + $0x78] sm:$0xe] }
  0xcb   : > { %v7253_v55 = vcombine.low %v2770_v7, %v2780_v5  ;;  %v3032_v52 = vsel %vm8667_vm7, %v3030_v12, %v3031_v54  ;;  %v3042_v9 = vrot.slane %v9159_v8, 5  ;;  %v3036_v63 = vsel %vm8667_vm7, %v7276_v20, %v3035_v15  ;;  %v7273_v12 = vld [vmem:[%s8472_s14 + $0x84] sm:$0xe]  ;;  %s282_s14 = sand.u32 1, %s8288_s22  }
  0xcc   : > { %7864 = vmatmul.mubr.msk.bf16.gmra.mxu0 %vm612_vm3, %v8195_v22  ;;  %v3039_v56 = vsel %vm8667_vm7, %v3037_v21, %v3038_v13  ;;  %v3049_v2 = vrot.slane %v9175_v59, 5  ;;  %v7286_v34 = vcombine.low %v3029_v10, %v3032_v52  ;;  %v7277_v51 = vrot.slane %v7267_v28, 9  ;;  %s6961_s16 = sshll.u32 %s282_s14, 5  ;;  %s11162_s9 = scalar_lea.sflag [#allocation4], %s282_s14 }
  0xcd   : > { %7886 = vmatmul.mubr.msk.bf16.gmra.mxu1 %vm612_vm3, %v7253_v55  ;;  %7891 = vmatprep.mubr.msk.bf16.mxu0 %vm612_vm3, %v7285_v14  ;;  %v7287_v62 = vcombine.low %v3036_v63, %v3039_v56  ;;  %v3044_v26 = vrot.slane %v3042_v9, 4  ;;  %v3045_v24 = vrot.slane %v9166_v43, 5  ;;  %v7278_v4 = vrot.slane %v7268_v23, 9 }
  0xce   : > { %v3051_v8 = vrot.slane %v3049_v2, 4  ;;  %v3052_v6 = vrot.slane %v9184_v3, 5  ;;  %v3043_v59 = vsel %vm8667_vm7, %v7277_v51, %v3042_v9  ;;  %v3056_v60 = vrot.slane %v9193_v1, 5 }
  0xcf   : > { %v3046_v49 = vsel %vm8667_vm7, %v3044_v26, %v3045_v24  ;;  %v3050_v37 = vsel %vm8667_vm7, %v7278_v4, %v3049_v2  ;;  %v3063_v3 = vrot.slane %v9212_v0, 5  ;;  %v7279_v35 = vrot.slane %v7269_v33, 9 }
  0xd0   : > { %v3053_v43 = vsel %vm8667_vm7, %v3051_v8, %v3052_v6  ;;  %v7288_v53 = vcombine.low %v3043_v59, %v3046_v49  ;;  %v3058_v57 = vrot.slane %v3056_v60, 4  ;;  %v3059_v18 = vrot.slane %v9202_v31, 5 }
  0xd1   : > { %v7289_v36 = vcombine.low %v3050_v37, %v3053_v43  ;;  %v7280_v45 = vrot.slane %v7270_v17, 9  ;;  %v3065_v1 = vrot.slane %v3063_v3, 4  ;;  %v3066_v38 = vrot.slane %v9218_v27, 5 }
  0xd2   : > { %v3057_v0 = vsel %vm8667_vm7, %v7279_v35, %v3056_v60  ;;  %v3060_v50 = vsel %vm8667_vm7, %v3058_v57, %v3059_v18  ;;  %v3070_v58 = vrot.slane %v9229_v19, 5  ;;  %v3077_v27 = vrot.slane %v9246_v11, 5 }
  0xd3   : > { %v3064_v16 = vsel %vm8667_vm7, %v7280_v45, %v3063_v3  ;;  %v3067_v31 = vsel %vm8667_vm7, %v3065_v1, %v3066_v38  ;;  %v7290_v29 = vcombine.low %v3057_v0, %v3060_v50  ;;  %v7281_v61 = vrot.slane %v7271_v41, 9 }
  0xd4   : > { %7892 = vmatmul.mubr.msk.bf16.vlgmr.msra.gmra.mxu0 %vm612_vm3, %v7286_v34  ;;  %v7291_v42 = vcombine.low %v3064_v16, %v3067_v31  ;;  %v3072_v22 = vrot.slane %v3070_v58, 4  ;;  %v3073_v7 = vrot.slane %v9237_v44, 5  ;;  %v7282_v32 = vrot.slane %v7272_v39, 9 }
  0xd5   : > { %7895 = vmatprep.mubr.msk.bf16.mxu0 %vm612_vm3, %v7287_v62  ;;  %v3079_v25 = vrot.slane %v3077_v27, 4  ;;  %v3080_v19 = vrot.slane %v9256_v46, 5  ;;  %v3071_v15 = vsel %vm8667_vm7, %v7281_v61, %v3070_v58  ;;  %v3084_v5 = vrot.slane %v9262_v30, 5 }
  0xd6   : > { %v3074_v11 = vsel %vm8667_vm7, %v3072_v22, %v3073_v7  ;;  %v3078_v14 = vsel %vm8667_vm7, %v7282_v32, %v3077_v27  ;;  %v7283_v55 = vrot.slane %v7273_v12, 9  ;;  %v3087_v21 = vrot.slane %v9270_v47, 5 }
  0xd7   : > { %v3081_v44 = vsel %vm8667_vm7, %v3079_v25, %v3080_v19  ;;  %v7292_v46 = vcombine.low %v3071_v15, %v3074_v11  ;;  %v3086_v20 = vrot.slane %v3084_v5, 4  ;;  %vm3680_vm0 = vsmask.f32 7938 }
  0xd8   : > { %v7293_v54 = vcombine.low %v3078_v14, %v3081_v44  ;;  %v3085_v30 = vsel %vm8667_vm7, %v7283_v55, %v3084_v5 }
  0xd9   : > { %v3088_v52 = vsel %vm8667_vm7, %v3086_v20, %v3087_v21 }
  0xda   : > { %v7294_v56 = vcombine.low %v3085_v30, %v3088_v52 }
  0xdc   : > { %7896 = vmatmul.mubr.msk.bf16.gmra.mxu0 %vm612_vm3, %v7288_v53 }
  0xdd   : > { %7899 = vmatprep.mubr.msk.bf16.mxu0 %vm612_vm3, %v7289_v36 }
  0xe4   : > { %7900 = vmatmul.mubr.msk.bf16.gmra.mxu0 %vm612_vm3, %v7290_v29 }
  0xe5   : > { %7903 = vmatprep.mubr.msk.bf16.mxu0 %vm612_vm3, %v7291_v42 }
  0xea   : > { %v7739_v13 = vpop.f32.mrf.mxu1 }
  0xec   : > { %7904 = vmatmul.mubr.msk.bf16.gmra.mxu0 %vm612_vm3, %v7292_v46  ;;  %v877_v10 = vpop.f32.mrf.mxu1 }
  0xed   : > { %7907 = vmatprep.mubr.msk.bf16.mxu0 %vm612_vm3, %v7293_v54 }
  0xee   : > { %v7740_v9 = vpop.f32.mrf.mxu1 }
  0xf0   : > { %v7717_v63 = vpop.f32.mrf.mxu0  ;;  %v9373_v28 = vpop.f32.mrf.mxu1 }
  0xf1   : > { %v886_v2 = vadd.f32 %v7739_v13, %v7717_v63 }
  0xf2   : > { %v681_v23 = vpop.f32.mrf.mxu0  ;;  %v7743_v47 = vpop.f32.mrf.mxu1 }
  0xf3   : > { %v878_v34 = vadd.f32 %v877_v10, %v681_v23 }
  0xf4   : > { %7908 = vmatmul.mubr.msk.bf16.gmra.mxu0 %vm612_vm3, %v7294_v56  ;;  %v7718_v62 = vpop.f32.mrf.mxu0  ;;  %v893_v51 = vpop.f32.mrf.mxu1 }
  0xf5   : > { %v889_v26 = vadd.f32 %v7740_v9, %v7718_v62 }
  0xf6   : > { %v9376_v24 = vpop.f32.mrf.mxu0  ;;  %v7744_v4 = vpop.f32.mrf.mxu1 }
  0xf8   : > { %v9378_v8 = vpop.f32.mrf.mxu1 }
  0xfa   : > { %v7721_v6 = vpop.f32.mrf.mxu0 }
  0xfb   : > { %v902_v59 = vadd.f32 %v7743_v47, %v7721_v6 }
  0xfc   : > { %v697_v49 = vpop.f32.mrf.mxu0  ;;  %v7747_v60 = vpop.f32.mrf.mxu1 }
  0xfd   : > { %v894_v37 = vadd.f32 %v893_v51, %v697_v49 }
  0xfe   : > { %v7722_v43 = vpop.f32.mrf.mxu0  ;;  %v909_v33 = vpop.f32.mrf.mxu1 }
  0xff   : > { %v905_v3 = vadd.f32 %v7744_v4, %v7722_v43 }
 0x100   : > { %v9380_v17 = vpop.f32.mrf.mxu0  ;;  %v7748_v53 = vpop.f32.mrf.mxu1 }
 0x102   : > { %v7725_v36 = vpop.f32.mrf.mxu0  ;;  %v9382_v35 = vpop.f32.mrf.mxu1 }
 0x103   : > { %v918_v57 = vadd.f32 %v7747_v60, %v7725_v36 }
 0x104   : > { %v713_v18 = vpop.f32.mrf.mxu0  ;;  %v7751_v45 = vpop.f32.mrf.mxu1 }
 0x105   : > { %v910_v1 = vadd.f32 %v909_v33, %v713_v18 }
 0x106   : > { %v7726_v38 = vpop.f32.mrf.mxu0  ;;  %v925_v0 = vpop.f32.mrf.mxu1 }
 0x107   : > { %v921_v50 = vadd.f32 %v7748_v53, %v7726_v38 }
 0x108   : > { %v9384_v58 = vpop.f32.mrf.mxu0  ;;  %v7752_v16 = vpop.f32.mrf.mxu1 }
 0x10a   : > { %v9386_v31 = vpop.f32.mrf.mxu1 }
 0x10c   : > { %v7729_v41 = vpop.f32.mrf.mxu0 }
 0x10d   : > { %v9388_v27 = vadd.f32 %v7751_v45, %v7729_v41 }
 0x10e   : > { %v729_v39 = vpop.f32.mrf.mxu0  ;;  %v7755_v29 = vpop.f32.mrf.mxu1 }
 0x10f   : > { %v9390_v42 = vadd.f32 %v925_v0, %v729_v39 }
 0x110   : > { %v7730_v61 = vpop.f32.mrf.mxu0  ;;  %v941_v22 = vpop.f32.mrf.mxu1 }
 0x111   : > { %v9392_v7 = vadd.f32 %v7752_v16, %v7730_v61 }
 0x112   : > { %v9394_v32 = vpop.f32.mrf.mxu0  ;;  %v7756_v25 = vpop.f32.mrf.mxu1 }
 0x114   : > { %v7733_v19 = vpop.f32.mrf.mxu0  ;;  %v9396_v15 = vpop.f32.mrf.mxu1 }
 0x115   : > { %v9398_v11 = vadd.f32 %v7755_v29, %v7733_v19 }
 0x116   : > { %v745_v5 = vpop.f32.mrf.mxu0  ;;  %v7783_v14 = vpop.f32.mrf.mxu1 }
 0x117   : > { %v9400_v44 = vadd.f32 %v941_v22, %v745_v5 }
 0x118   : > { %v7734_v12 = vpop.f32.mrf.mxu0  ;;  %v1397_v46 = vpop.f32.mrf.mxu1 }
 0x119   : > { %v9402_v54 = vadd.f32 %v7756_v25, %v7734_v12 }
 0x11a   : > { %v9404_v55 = vpop.f32.mrf.mxu0  ;;  %v7784_v20 = vpop.f32.mrf.mxu1 }
 0x11c   : > { %v7761_v21 = vpop.f32.mrf.mxu0  ;;  %v9406_v13 = vpop.f32.mrf.mxu1 }
 0x11d   : > { %v1239_v10 = vadd.f32 %v7761_v21, %v886_v2 }
 0x11e   : > { %v1158_v30 = vpop.f32.mrf.mxu0  ;;  %v7787_v52 = vpop.f32.mrf.mxu1 }
 0x11f   : > { %v1237_v9 = vadd.f32 %v1158_v30, %v878_v34  ;;  %v9408_v63 = vadd.f32 %v7783_v14, %v1239_v10 }
 0x120   : > { %v7762_v56 = vpop.f32.mrf.mxu0  ;;  %v1413_v23 = vpop.f32.mrf.mxu1 }
 0x121   : > { %v1240_v47 = vadd.f32 %v7762_v56, %v889_v26  ;;  %v9410_v62 = vadd.f32 %v1397_v46, %v1237_v9 }
 0x122   : > { %v9412_v51 = vpop.f32.mrf.mxu0  ;;  %v7788_v4 = vpop.f32.mrf.mxu1 }
 0x123   : > { %v9414_v6 = vadd.f32 %v7784_v20, %v1240_v47 }
 0x124   : > { %v7765_v49 = vpop.f32.mrf.mxu0  ;;  %v9416_v60 = vpop.f32.mrf.mxu1 }
 0x125   : > { %v1243_v43 = vadd.f32 %v7765_v49, %v902_v59 }
 0x126   : > { %v1174_v2 = vpop.f32.mrf.mxu0  ;;  %v7791_v33 = vpop.f32.mrf.mxu1 }
 0x127   : > { %v1241_v53 = vadd.f32 %v1174_v2, %v894_v37  ;;  %v9418_v34 = vadd.f32 %v7787_v52, %v1243_v43 }
 0x128   : > { %v7766_v36 = vpop.f32.mrf.mxu0  ;;  %v1429_v18 = vpop.f32.mrf.mxu1 }
 0x129   : > { %v1244_v45 = vadd.f32 %v7766_v36, %v905_v3  ;;  %v9420_v26 = vadd.f32 %v1413_v23, %v1241_v53 }
 0x12a   : > { %v9422_v38 = vpop.f32.mrf.mxu0  ;;  %v7792_v0 = vpop.f32.mrf.mxu1 }
 0x12b   : > { %v9424_v16 = vadd.f32 %v7788_v4, %v1244_v45 }
 0x12c   : > { %v7769_v41 = vpop.f32.mrf.mxu0  ;;  %v9426_v39 = vpop.f32.mrf.mxu1 }
 0x12d   : > { %v1247_v29 = vadd.f32 %v7769_v41, %v918_v57 }
 0x12e   : > { %v1190_v59 = vpop.f32.mrf.mxu0  ;;  %v7795_v61 = vpop.f32.mrf.mxu1 }
 0x12f   : > { %v1245_v22 = vadd.f32 %v1190_v59, %v910_v1  ;;  %v9428_v37 = vadd.f32 %v7791_v33, %v1247_v29  ;;  %v7328_v1 = vld [vmem:[%s11216_s3 + $0x4] sm:$0xf] }
 0x130   : > { %v7770_v25 = vpop.f32.mrf.mxu0  ;;  %v1445_v19 = vpop.f32.mrf.mxu1  ;;  %8082 = vmatprep.subr.msk.bf16.mxu1 %vm11226_vm8, %v7328_v1  ;;  %v4086_v9 = vsel %vm11226_vm8, %v7328_v1, 0 }
 0x131   : > { %v1248_v5 = vadd.f32 %v7770_v25, %v921_v50  ;;  %v9430_v3 = vadd.f32 %v1429_v18, %v1245_v22  ;;  %7912 = vmatpush3.bf16.msra.mxu1 %v4086_v9 }
 0x132   : > { %v9432_v14 = vpop.f32.mrf.mxu0  ;;  %v7796_v12 = vpop.f32.mrf.mxu1 }
 0x133   : > { %v9434_v46 = vadd.f32 %v7792_v0, %v1248_v5 }
 0x134   : > { %v7773_v20 = vpop.f32.mrf.mxu0  ;;  %v9436_v21 = vpop.f32.mrf.mxu1 }
 0x135   : > { %v1251_v57 = vadd.f32 %v7773_v20, %v9388_v27 }
 0x136   : > { %v1206_v10 = vpop.f32.mrf.mxu0  ;;  %v7799_v30 = vpop.f32.mrf.mxu1 }
 0x137   : > { %v1249_v50 = vadd.f32 %v1206_v10, %v9390_v42  ;;  %v9444_v52 = vadd.f32 %v7795_v61, %v1251_v57 }
 0x138   : > { %v7774_v56 = vpop.f32.mrf.mxu0  ;;  %v1461_v23 = vpop.f32.mrf.mxu1 }
 0x139   : > { %v1252_v27 = vadd.f32 %v7774_v56, %v9392_v7  ;;  %v1488_v47 = vadd.f32 %v1445_v19, %v1249_v50 }
 0x13a   : > { %v9448_v4 = vpop.f32.mrf.mxu0  ;;  %v7800_v49 = vpop.f32.mrf.mxu1 }
 0x13b   : > { %v1491_v43 = vadd.f32 %v7796_v12, %v1252_v27 }
 0x13c   : > { %v7777_v2 = vpop.f32.mrf.mxu0  ;;  %v9450_v33 = vpop.f32.mrf.mxu1 }
 0x13d   : > { %v1255_v53 = vadd.f32 %v7777_v2, %v9398_v11 }
 0x13e   : > { %v1222_v42 = vpop.f32.mrf.mxu0  ;;  %v9453_v36 = vpop.f32.mrf.mxu1 }
 0x13f   : > { %v1253_v18 = vadd.f32 %v1222_v42, %v9400_v44  ;;  %v1494_v45 = vadd.f32 %v7799_v30, %v1255_v53 }
 0x140   : > { %v7778_v0 = vpop.f32.mrf.mxu0  ;;  %v9456_v41 = vpop.f32.mrf.mxu1 }
 0x141   : > { %v1256_v7 = vadd.f32 %v7778_v0, %v9402_v54  ;;  %v1492_v29 = vadd.f32 %v1461_v23, %v1253_v18 }
 0x142   : > { %v9459_v59 = vpop.f32.mrf.mxu0  ;;  %v9461_v61 = vpop.f32.mrf.mxu1 }
 0x143   : > { %v1495_v22 = vadd.f32 %v7800_v49, %v1256_v7 }
 0x144   : > { %v7805_v25 = vpop.f32.mrf.mxu0  ;;  %v9463_v19 = vpop.f32.mrf.mxu1 }
 0x145   : > { %v9466_v11 = vadd.f32 %v7805_v25, %v9408_v63 }
 0x146   : > { %v1865_v5 = vpop.f32.mrf.mxu0  ;;  %v9468_v44 = vpop.f32.mrf.mxu1 }
 0x147   : > { %v9471_v12 = vadd.f32 %v1865_v5, %v9410_v62 }
 0x148   : > { %v7806_v20 = vpop.f32.mrf.mxu0  ;;  %v9473_v54 = vpop.f32.mrf.mxu1 }
 0x149   : > { %v9476_v57 = vadd.f32 %v7806_v20, %v9414_v6 }
 0x14a   : > { %v9478_v1 = vpop.f32.mrf.mxu0  ;;  %v9480_v10 = vpop.f32.mrf.mxu1 }
 0x14c   : > { %v7809_v30 = vpop.f32.mrf.mxu0  ;;  %v9482_v50 = vpop.f32.mrf.mxu1 }
 0x14d   : > { %v9485_v63 = vadd.f32 %v7809_v30, %v9418_v34  ;;  %v7369_v34 = vld [vmem:[%s11216_s3 + $0x8] sm:$0xf] }
 0x14e   : > { %v1881_v9 = vpop.f32.mrf.mxu0  ;;  %v9487_v56 = vpop.f32.mrf.mxu1  ;;  %8084 = vmatprep.subr.msk.bf16.mxu0 %vm11226_vm8, %v7369_v34 }
 0x14f   : > { %v9490_v62 = vadd.f32 %v1881_v9, %v9420_v26  ;;  %v4480_v26 = vsel %vm11226_vm8, %v7369_v34, 0 }
 0x150   : > { %v7810_v23 = vpop.f32.mrf.mxu0  ;;  %v9492_v27 = vpop.f32.mrf.mxu1  ;;  %7948 = vmatpush3.bf16.msra.mxu0 %v4480_v26 }
 0x151   : > { %v9495_v6 = vadd.f32 %v7810_v23, %v9424_v16 }
 0x152   : > { %v9497_v49 = vpop.f32.mrf.mxu0  ;;  %v9499_v2 = vpop.f32.mrf.mxu1 }
 0x154   : > { %v7813_v53 = vpop.f32.mrf.mxu0  ;;  %v9504_v42 = vpop.f32.mrf.mxu1 }
 0x155   : > { %v9509_v18 = vadd.f32 %v7813_v53, %v9428_v37 }
 0x156   : > { %v1897_v16 = vpop.f32.mrf.mxu0  ;;  %v9511_v0 = vpop.f32.mrf.mxu1 }
 0x157   : > { %v9514_v7 = vadd.f32 %v1897_v16, %v9430_v3 }
 0x158   : > { %v7814_v25 = vpop.f32.mrf.mxu0  ;;  %v9516_v5 = vpop.f32.mrf.mxu1 }
 0x159   : > { %11235 = vst [vmem:[#allocation8_spill] sm:$0xff] %v9516_v5  ;;  %v9519_v20 = vadd.f32 %v7814_v25, %v9434_v46 }
 0x15a   : > { %v9521_v30 = vpop.f32.mrf.mxu0  ;;  %v9523_v9 = vpop.f32.mrf.mxu1 }
 0x15b   : > { %11236 = vst [vmem:[#allocation9_spill] sm:$0xff] %v9523_v9 }
 0x15c   : > { %v7817_v23 = vpop.f32.mrf.mxu0  ;;  %v9525_v37 = vpop.f32.mrf.mxu1 }
 0x15d   : > { %11237 = vst [vmem:[#allocation10_spill] sm:$0xff] %v9525_v37  ;;  %v9528_v34 = vadd.f32 %v7817_v23, %v9444_v52 }
 0x15e   : > { %v1913_v53 = vpop.f32.mrf.mxu0 }
 0x15f   : > { %v9530_v26 = vadd.f32 %v1913_v53, %v1488_v47  ;;  %v9532_v3 = vpop.f32.mrf.mxu1 }
 0x160   : > { %11238 = vst [vmem:[#allocation11_spill] sm:$0xff] %v9532_v3  ;;  %v7818_v16 = vpop.f32.mrf.mxu0 }
 0x161   : > { %v9534_v40 = vadd.f32 %v7818_v16, %v1491_v43  ;;  %v9536_v46 = vpop.f32.mrf.mxu1  ;;  %v9557_v16 = vld [vmem:[%s11216_s3] sm:$0xf] }
 0x162   : > { %11239 = vst [vmem:[#allocation12_spill] sm:$0xff] %v9536_v46  ;;  %v9538_v25 = vpop.f32.mrf.mxu0  ;;  %11246 = vst [vmem:[#allocation19_spill] sm:$0xff] %v9557_v16  ;;  %8083 = vmatprep.subr.msk.bf16.mxu1 %vm11226_vm8, %v9557_v16 }
 0x163   : > { %v9540_v48 = vpop.f32.mrf.mxu1 }
 0x164   : > { %11240 = vst [vmem:[#allocation13_spill] sm:$0xff] %v9540_v48  ;;  %v7821_v9 = vpop.f32.mrf.mxu0 }
 0x165   : > { %v9542_v5 = vadd.f32 %v7821_v9, %v1494_v45  ;;  %v9544_v52 = vpop.f32.mrf.mxu1 }
 0x166   : > { %v1929_v37 = vpop.f32.mrf.mxu0  ;;  %11242 = vst [vmem:[#allocation15_spill] sm:$0xff] %v9544_v52 }
 0x167   : > { %11241 = vst [vmem:[#allocation14_spill] sm:$0xff] %v9542_v5  ;;  %v9546_v23 = vadd.f32 %v1929_v37, %v1492_v29 }
 0x168   : > { %v7822_v47 = vpop.f32.mrf.mxu0 }
 0x169   : > { %11243 = vst [vmem:[#allocation16_spill] sm:$0xff] %v9546_v23  ;;  %v9548_v53 = vadd.f32 %v7822_v47, %v1495_v22 }
 0x16a   : > { %v9550_v3 = vpop.f32.mrf.mxu0  ;;  %v9552_v43 = vpop.f32.mrf.mxu1 }
 0x16b   : > { %11244 = vst [vmem:[#allocation17_spill] sm:$0xff] %v9548_v53  ;;  %11245 = vst [vmem:[#allocation18_spill] sm:$0xff] %v9552_v43 }
 0x16c   : > { %v9561_v45 = vpop.f32.mrf.mxu0  ;;  %v9563_v9 = vpop.f32.mrf.mxu1 }
 0x16d   : > { %11247 = vst [vmem:[#allocation20_spill] sm:$0xff] %v9563_v9 }
 0x16e   : > { %v9565_v29 = vpop.f32.mrf.mxu0  ;;  %v9567_v22 = vpop.f32.mrf.mxu1 }
 0x16f   : > { %11248 = vst [vmem:[#allocation21_spill] sm:$0xff] %v9567_v22 }
 0x170   : > { %v9569_v37 = vpop.f32.mrf.mxu0  ;;  %v9571_v47 = vpop.f32.mrf.mxu1 }
 0x171   : > { %11249 = vst [vmem:[#allocation22_spill] sm:$0xff] %v9571_v47 }
 0x172   : > { %v9573_v43 = vpop.f32.mrf.mxu0 }
 0x174   : > { %v9575_v52 = vpop.f32.mrf.mxu0  ;;  %v9577_v48 = vpop.f32.mrf.mxu1 }
 0x175   : > { %11250 = vst [vmem:[#allocation23_spill] sm:$0xff] %v9575_v52  ;;  %11251 = vst [vmem:[#allocation24_spill] sm:$0xff] %v9577_v48 }
 0x176   : > { %v9579_v16 = vpop.f32.mrf.mxu0  ;;  %v9581_v53 = vpop.f32.mrf.mxu1 }
 0x177   : > { %11252 = vst [vmem:[#allocation25_spill] sm:$0xff] %v9581_v53  ;;  %v881_v53 = vadd.f32 %v9373_v28, %v9376_v24  ;;  %v945_v24 = vadd.f32 %v9396_v15, %v9404_v55 }
 0x178   : > { %v9583_v9 = vpop.f32.mrf.mxu0  ;;  %v9585_v46 = vpop.f32.mrf.mxu1 }
 0x179   : > { %11253 = vst [vmem:[#allocation26_spill] sm:$0xff] %v9583_v9  ;;  %11254 = vst [vmem:[#allocation27_spill] sm:$0xff] %v9585_v46  ;;  %v897_v9 = vadd.f32 %v9378_v8, %v9380_v17  ;;  %v9621_v17 = vstv %s7307_s18  ;;  %s11110_s18 = scalar_lea.vmem [#allocation3], %s6961_s16 }
 0x17a   : > { %v9587_v23 = vpop.f32.mrf.mxu0  ;;  %v9589_v22 = vpop.f32.mrf.mxu1  ;;  %v9636_v15 = vadd.s32 1, %v9621_v17  ;;  %v9639_v55 = vadd.s32 3, %v9621_v17  ;;  %vm3346_vm11 = vcmp.ge.s32.totalorder %v9621_v17, 0  ;;  %vm3356_vm12 = vcmp.lt.s32.totalorder %v9621_v17, 16  ;;  %s6848_s19 = sshll.u32 %s11110_s18, 4  ;;  %s11154_s19 = int_to_ptr.vmem [resolvable:$true] %s6848_s19 }
 0x17b   : > { %11255 = vst [vmem:[#allocation28_spill] sm:$0xff] %v9587_v23  ;;  %11256 = vst [vmem:[#allocation29_spill] sm:$0xff] %v9589_v22  ;;  %v913_v22 = vadd.f32 %v9382_v35, %v9384_v58  ;;  %s8220_s10 = scalar_lea.vmem %s11154_s19, 512  ;;  %p8227_p2 = scmp.lt.s32.totalorder %s11154_s19, %s8225_s15 }
 0x17c   : > { %v9591_v5 = vpop.f32.mrf.mxu0  ;;  %v9593_v47 = vpop.f32.mrf.mxu1  ;;  %vm3347_vm9 = vcmp.ge.s32.totalorder %v9636_v15, 0  ;;  %vm3357_vm10 = vcmp.lt.s32.totalorder %v9636_v15, 16  ;;  %vm3349_vm13 = vcmp.ge.s32.totalorder %v9639_v55, 0  ;;  %vm3359_vm14 = vcmp.lt.s32.totalorder %v9639_v55, 16  ;;  %p8221_p13 = scmp.ne.s32.totalorder %s11154_s19, %s8220_s10 }
 0x17d   : > { %11257 = vst [vmem:[#allocation30_spill] sm:$0xff] %v9591_v5  ;;  %11258 = vst [vmem:[#allocation31_spill] sm:$0xff] %v9593_v47  ;;  %v1238_v47 = vadd.f32 %v9412_v51, %v881_v53  ;;  %v1246_v8 = vadd.f32 %v9432_v14, %v913_v22 }
 0x17e   : > { %v9596_v52 = vpop.f32.mrf.mxu0  ;;  %v9598_v48 = vpop.f32.mrf.mxu1  ;;  %vm9788_vm3 = vmand %vm3347_vm9, %vm3357_vm10  ;;  %vm3477_vm10 = vsmask.f32 4368  ;;  %p8222_p0 = pnand %p8221_p13, %p8406_p5 }
 0x17f   : > { %11259 = vst [vmem:[#allocation32_spill] sm:$0xff] %v9596_v52  ;;  %11260 = vst [vmem:[#allocation33_spill] sm:$0xff] %v9598_v48  ;;  %v929_v52 = vadd.f32 %v9386_v31, %v9394_v32  ;;  %v1242_v48 = vadd.f32 %v9422_v38, %v897_v9  ;;  %v1477_v31 = vadd.f32 %v9406_v13, %v1238_v47  ;;  %v9644_v13 = vadd.s32 2, %v9621_v17 }
 0x180   : > { %v9604_v46 = vpop.f32.mrf.mxu0  ;;  %v9606_v23 = vpop.f32.mrf.mxu1  ;;  %v1254_v32 = vadd.f32 %v9459_v59, %v945_v24  ;;  %v1485_v14 = vadd.f32 %v9426_v39, %v1246_v8  ;;  %v9647_v59 = vadd.s32 5, %v9621_v17  ;;  %v9656_v47 = vadd.s32 4, %v9621_v17  ;;  %vm9811_vm9 = vmand %vm3346_vm11, %vm3356_vm12  ;;  %p8223_p1 = pneg %p8222_p0 }
 0x181   : > { %v1250_v35 = vadd.f32 %v9448_v4, %v929_v52  ;;  %v1481_v38 = vadd.f32 %v9416_v60, %v1242_v48  ;;  %v1945_v4 = vadd.f32 %v9478_v1, %v1477_v31  ;;  %v9659_v39 = vadd.s32 7, %v9621_v17  ;;  %vm9846_vm11 = vmand %vm3349_vm13, %vm3359_vm14 }
 0x182   : > { %v9614_v5 = vpop.f32.mrf.mxu0  ;;  %v9616_v28 = vpop.f32.mrf.mxu1  ;;  %v1493_v1 = vadd.f32 %v9450_v33, %v1254_v32  ;;  %v1953_v24 = vadd.f32 %v9521_v30, %v1485_v14  ;;  %v9664_v8 = vadd.s32 6, %v9621_v17  ;;  %v2255_v31 = vadd.f32 %v9461_v61, %v9476_v57  ;;  %vm9852_vm12 = vmand %vm3679_vm15, %vm3680_vm0 }
 0x183   : > { %v1489_v48 = vadd.f32 %v9436_v21, %v1250_v35  ;;  %v1949_v60 = vadd.f32 %v9497_v49, %v1481_v38  ;;  %v9667_v21 = vadd.s32 9, %v9621_v17  ;;  %v2254_v49 = vadd.f32 %v9453_v36, %v9466_v11 }
 0x184   : > { %v9624_v58 = vpop.f32.mrf.mxu0  ;;  %v2252_v35 = vadd.f32 %v9456_v41, %v9471_v12  ;;  %v9680_v30 = vadd.s32 8, %v9621_v17  ;;  %v2253_v32 = vadd.f32 %v9463_v19, %v1945_v4  ;;  %v2258_v14 = vadd.f32 %v9468_v44, %v9485_v63 }
 0x185   : > { %v9626_v51 = vpop.f32.mrf.mxu1  ;;  %v2256_v36 = vadd.f32 %v9473_v54, %v9490_v62  ;;  %v1957_v41 = vadd.f32 %v9538_v25, %v1489_v48  ;;  %v2259_v61 = vadd.f32 %v9480_v10, %v9495_v6  ;;  %v2257_v11 = vadd.f32 %v9482_v50, %v1949_v60  ;;  %v11262_v62 = vld [vmem:[#allocation8_spill] sm:$0xff] }
 0x186   : > { %v9631_v53 = vpop.f32.mrf.mxu0  ;;  %11261 = vst [vmem:[#allocation34_spill] sm:$0xff] %v9680_v30  ;;  %v2262_v12 = vadd.f32 %v9487_v56, %v9509_v18  ;;  %v2260_v57 = vadd.f32 %v9492_v27, %v9514_v7  ;;  %v2263_v44 = vadd.f32 %v9499_v2, %v9519_v20  ;;  %v2261_v63 = vadd.f32 %v9504_v42, %v1953_v24  ;;  %v11263_v18 = vld [vmem:[#allocation9_spill] sm:$0xff]  ;;  %v11264_v7 = vld [vmem:[#allocation10_spill] sm:$0xff]  ;;  %v11269_v48 = vld [vmem:[#allocation12_spill] sm:$0xff] }
 0x187   : > { %v9633_v9 = vpop.f32.mrf.mxu1  ;;  %v2266_v54 = vadd.f32 %v9511_v0, %v9528_v34  ;;  %v2264_v10 = vadd.f32 %v11262_v62, %v9530_v26  ;;  %v1961_v50 = vadd.f32 %v9550_v3, %v1493_v1  ;;  %v2493_v56 = vadd.f32 %v9561_v45, %v2254_v49  ;;  %v11265_v26 = vld [vmem:[#allocation23_spill] sm:$0xff]  ;;  %v11266_v3 = vld [vmem:[#allocation14_spill] sm:$0xff]  ;;  %v11271_v49 = vld [vmem:[#allocation17_spill] sm:$0xff] }
 0x188   : > { %v9651_v52 = vpop.f32.mrf.mxu0  ;;  %v2491_v27 = vadd.f32 %v9565_v29, %v2252_v35  ;;  %v2494_v2 = vadd.f32 %v9569_v37, %v2255_v31  ;;  %v2267_v0 = vadd.f32 %v11263_v18, %v9534_v40  ;;  %v2265_v20 = vadd.f32 %v11264_v7, %v1957_v41  ;;  %v11267_v45 = vld [vmem:[#allocation11_spill] sm:$0xff]  ;;  %v11268_v29 = vld [vmem:[#allocation16_spill] sm:$0xff]  ;;  %v11270_v1 = vld [vmem:[#allocation26_spill] sm:$0xff] }
 0x189   : > { %v9653_v22 = vpop.f32.mrf.mxu1  ;;  %v2492_v34 = vadd.f32 %v9573_v43, %v2253_v32  ;;  %v2497_v25 = vadd.f32 %v11265_v26, %v2258_v14  ;;  %v2270_v4 = vadd.f32 %v11267_v45, %v11266_v3  ;;  %v2268_v37 = vadd.f32 %v11269_v48, %v11268_v29  ;;  %v11272_v35 = vld [vmem:[#allocation13_spill] sm:$0xff]  ;;  %v11273_v31 = vld [vmem:[#allocation28_spill] sm:$0xff]  ;;  %v11274_v14 = vld [vmem:[#allocation30_spill] sm:$0xff] }
 0x18a   : > { %v9675_v38 = vpop.f32.mrf.mxu0  ;;  %v2495_v60 = vadd.f32 %v9579_v16, %v2256_v36  ;;  %v2498_v40 = vadd.f32 %v11270_v1, %v2259_v61  ;;  %v2271_v43 = vadd.f32 %v11272_v35, %v11271_v49  ;;  %v2496_v32 = vadd.f32 %v11273_v31, %v2257_v11  ;;  %v11275_v18 = vld [vmem:[#allocation19_spill] sm:$0xff]  ;;  %v11278_v45 = vld [vmem:[#allocation18_spill] sm:$0xff]  ;;  %v11279_v16 = vld [vmem:[#allocation20_spill] sm:$0xff] }
 0x18b   : > { %v9677_v33 = vpop.f32.mrf.mxu1  ;;  %v2501_v41 = vadd.f32 %v11274_v14, %v2262_v12  ;;  %v9729_v7 = vsel %vm11226_vm8, %v11275_v18, 0  ;;  %v11277_v26 = vld [vmem:[#allocation15_spill] sm:$0xff]  ;;  %v2961_v29 = vadd.f32 %v11278_v45, %v2493_v56  ;;  %v2959_v36 = vadd.f32 %v11279_v16, %v2491_v27  ;;  %v11280_v61 = vld [vmem:[#allocation21_spill] sm:$0xff]  ;;  %v11281_v30 = vld [vmem:[#allocation22_spill] sm:$0xff] }
 0x18c   : > { %v7865_v19 = vpop.f32.mrf.mxu0  ;;  %11276 = vst [vmem:[#allocation8_spill] sm:$0xff] %v9729_v7  ;;  %v2269_v3 = vadd.f32 %v11277_v26, %v1961_v50  ;;  %v2962_v48 = vadd.f32 %v11280_v61, %v2494_v2  ;;  %v2960_v49 = vadd.f32 %v11281_v30, %v2492_v34  ;;  %v11282_v35 = vld [vmem:[#allocation24_spill] sm:$0xff]  ;;  %v2502_v14 = vadd.f32 %v9604_v46, %v2263_v44  ;;  %v11284_v18 = vld [vmem:[#allocation25_spill] sm:$0xff]  ;;  %v11285_v50 = vld [vmem:[#allocation27_spill] sm:$0xff] }
 0x18d   : > { %v9702_v6 = vpop.f32.mrf.mxu1  ;;  %v9737_v11 = vadd.f32 %v11282_v35, %v2497_v25  ;;  %v11283_v12 = vld [vmem:[#allocation32_spill] sm:$0xff]  ;;  %v9742_v7 = vadd.f32 %v11284_v18, %v2495_v60  ;;  %v9745_v26 = vadd.f32 %v11285_v50, %v2498_v40  ;;  %v2500_v56 = vadd.f32 %v9614_v5, %v2261_v63  ;;  %v9752_v30 = vld [vmem:[%s11215_s2] ss:$0 sm:$0xff]  ;;  %v7403_v46 = vld [vmem:[%s11216_s3 + $0x10] sm:$0xf] }
 0x18e   : > { %v2476_v42 = vpop.f32.mrf.mxu0  ;;  %v2499_v31 = vadd.f32 %v11283_v12, %v2260_v57  ;;  %v2505_v27 = vadd.f32 %v9624_v58, %v2266_v54  ;;  %v11286_v57 = vld [vmem:[#allocation29_spill] sm:$0xff]  ;;  %v11287_v34 = vld [vmem:[#allocation31_spill] sm:$0xff]  ;;  %v2503_v5 = vadd.f32 %v9631_v53, %v2264_v10  ;;  %8086 = vmatprep.subr.msk.bf16.mxu0 %vm11226_vm8, %v7403_v46  ;;  %v2506_v54 = vadd.f32 %v9651_v52, %v2267_v0 }
 0x18f   : > { %v2944_v62 = vpop.f32.mrf.mxu1  ;;  %v9758_v44 = vadd.f32 %v11286_v57, %v2496_v32  ;;  %v9761_v25 = vadd.f32 %v11287_v34, %v2501_v41  ;;  %v2504_v60 = vadd.f32 %v9675_v38, %v2265_v20  ;;  %v2509_v40 = vadd.f32 %v7865_v19, %v2270_v4  ;;  %v11288_v45 = vld [vmem:[#allocation33_spill] sm:$0xff] }
 0x190   : > { %v7866_v24 = vpop.f32.mrf.mxu0  ;;  %v2507_v32 = vadd.f32 %v2476_v42, %v2268_v37  ;;  %v9770_v16 = vadd.f32 %v11288_v45, %v2499_v31  ;;  %v9773_v53 = vadd.f32 %v9606_v23, %v2502_v14  ;;  %vm3348_vm1 = vcmp.ge.s32.totalorder %v9644_v13, 0 }
 0x191   : > { %v7888_v63 = vpop.f32.mrf.mxu1  ;;  %vm3358_vm2 = vcmp.lt.s32.totalorder %v9644_v13, 16  ;;  %v9779_v52 = vadd.f32 %v9616_v28, %v2500_v56  ;;  %v9782_v38 = vadd.f32 %v9626_v51, %v2505_v27  ;;  %v2510_v19 = vadd.f32 %v7866_v24, %v2271_v43 }
 0x192   : > { %v2479_v1 = vpop.f32.mrf.mxu0  ;;  %v9793_v20 = vadd.f32 %v9633_v9, %v2503_v5  ;;  %v9797_v24 = vadd.f32 %v9653_v22, %v2506_v54  ;;  %v9800_v15 = vadd.f32 %v9677_v33, %v2504_v60  ;;  %v9803_v43 = vadd.f32 %v9702_v6, %v2509_v40  ;;  %vm9864_vm13 = vmand %vm3348_vm1, %vm3358_vm2 }
 0x193   : > { %v2508_v42 = vadd.f32 %v2479_v1, %v2269_v3  ;;  %v2947_v4 = vpop.f32.mrf.mxu1  ;;  %v9805_v3 = vadd.f32 %v2944_v62, %v2507_v32  ;;  %v9821_v62 = vld [vmem:[%s11216_s3 + $0xc] sm:$0xf]  ;;  %v9828_v12 = vsel %vm11226_vm8, %v7403_v46, 0  ;;  %vm3351_vm14 = vcmp.ge.s32.totalorder %v9647_v59, 0 }
 0x194   : > { %v7893_v2 = vpop.f32.mrf.mxu0  ;;  %v9836_v57 = vsel %vm11226_vm8, %v9821_v62, 0  ;;  %vm3350_vm1 = vcmp.ge.s32.totalorder %v9656_v47, 0  ;;  %vm3360_vm2 = vcmp.lt.s32.totalorder %v9656_v47, 16  ;;  %vm9884_vm8 = vmor %vm3476_vm5, %vm3477_vm10  ;;  %vm3353_vm10 = vcmp.ge.s32.totalorder %v9659_v39, 0 }
 0x195   : > { %v3269_v58 = vadd.f32 %v7893_v2, %v2961_v29  ;;  %v9825_v17 = vadd.f32 %v2947_v4, %v2508_v42 }
 0x196   : > { %v3188_v41 = vpop.f32.mrf.mxu0 }
 0x197   : > { %v3296_v10 = vadd.f32 %v9752_v30, %v3269_v58  ;;  %v3267_v29 = vadd.f32 %v3188_v41, %v2959_v36 }
 0x198   : > { %v7894_v0 = vpop.f32.mrf.mxu0 }
 0x199   : > { %v3316_v28 = vmax.f32 %v3296_v10, 0.0  ;;  %v3294_v51 = vadd.f32 %v9752_v30, %v3267_v29  ;;  %v3270_v37 = vadd.f32 %v7894_v0, %v2962_v48  ;;  %v9823_v48 = vadd.f32 %v7888_v63, %v2510_v19 }
 0x19a   : > { %v3191_v36 = vpop.f32.mrf.mxu0 }
 0x19b   : > { %v3398_v22 = vsel %vm9788_vm3, %v3316_v28, 0.0  ;;  %v3314_v33 = vmax.f32 %v3294_v51, 0.0  ;;  %v3297_v61 = vadd.f32 %v9752_v30, %v3270_v37  ;;  %v3268_v6 = vadd.f32 %v3191_v36, %v2960_v49  ;;  %v3682_v51 = vld [vmem:[#allocation2] sm:$0xf] }
 0x19c   : > { %v7514_v1 = vpack.c.bf16 %v3398_v22, %v3398_v22  ;;  %v7897_v35 = vpop.f32.mrf.mxu0 }
 0x19d   : > { %v3396_v31 = vsel %vm9811_vm9, %v3314_v33, 0.0  ;;  %v3317_v14 = vmax.f32 %v3297_v61, 0.0  ;;  %v3295_v49 = vadd.f32 %v9752_v30, %v3268_v6  ;;  %v3273_v18 = vadd.f32 %v7897_v35, %v9737_v11 }
 0x19e   : > { %v3497_v50 = vshrl.u32 %v7514_v1, 16  ;;  %v3500_v56 = vshll.u32 %v7514_v1, 16  ;;  %v7512_v27 = vpack.c.bf16 %v3396_v31, %v3396_v31  ;;  %v3204_v2 = vpop.f32.mrf.mxu0  ;;  %v3696_v31 = vld [vmem:[#allocation2 + $0x14] sm:$0x1] }
 0x19f   : > { %v3399_v46 = vsel %vm9788_vm3, %v3317_v14, 0.0  ;;  %v3315_v34 = vmax.f32 %v3295_v49, 0.0  ;;  %v3300_v5 = vadd.f32 %v9752_v30, %v3273_v18  ;;  %v3271_v63 = vadd.f32 %v3204_v2, %v9742_v7  ;;  %v3692_v7 = vld [vmem:[#allocation2 + $0xc] sm:$0xf] }
 0x1a0   : > { %v3499_v58 = vrot.slane %v3497_v50, 7  ;;  %v3480_v54 = vshrl.u32 %v7512_v27, 16  ;;  %v3483_v60 = vshll.u32 %v7512_v27, 16  ;;  %v7515_v11 = vpack.c.bf16 %v3399_v46, %v3399_v46  ;;  %v7898_v32 = vpop.f32.mrf.mxu0 }
 0x1a1   : > { %v3397_v45 = vsel %vm9811_vm9, %v3315_v34, 0.0  ;;  %v3320_v10 = vmax.f32 %v3300_v5, 0.0  ;;  %v3298_v29 = vadd.f32 %v9752_v30, %v3271_v63  ;;  %v3274_v55 = vadd.f32 %v7898_v32, %v9745_v26  ;;  %vm9874_vm9 = vmand %vm3687_vm6, %vm3476_vm5  ;;  %v3689_v32 = vld [vmem:[#allocation2 + $0x8] sm:$0x1] }
 0x1a2   : > { %v3502_v19 = vor.u32 %v3500_v56, %v3499_v58  ;;  %v3503_v42 = vrot.slane %v3499_v58, 4  ;;  %v3482_v23 = vrot.slane %v3480_v54, 7  ;;  %v3505_v0 = vshrl.u32 %v7515_v11, 16  ;;  %v3207_v28 = vpop.f32.mrf.mxu0  ;;  %vm9923_vm5 = vmand %vm3687_vm6, %vm3680_vm0 }
 0x1a3   : > { %v3508_v37 = vshll.u32 %v7515_v11, 16  ;;  %v7513_v9 = vpack.c.bf16 %v3397_v45, %v3397_v45  ;;  %v3402_v36 = vsel %vm9846_vm11, %v3320_v10, 0.0  ;;  %v3318_v26 = vmax.f32 %v3298_v29, 0.0  ;;  %vm9950_vm6 = vmand %vm3350_vm1, %vm3360_vm2 }
 0x1a4   : > { %vm3361_vm3 = vcmp.lt.s32.totalorder %v9647_v59, 16  ;;  %v3693_v22 = vsel %vm9852_vm12, %v3502_v19, %v3692_v7  ;;  %v3485_v33 = vor.u32 %v3483_v60, %v3482_v23  ;;  %v3486_v61 = vrot.slane %v3482_v23, 4  ;;  %v7901_v1 = vpop.f32.mrf.mxu0 }
 0x1a5   : > { %v3507_v6 = vrot.slane %v3505_v0, 7  ;;  %3694 = vst [vmem:[#allocation2 + $0xc] sm:$0xf] %v3693_v22  ;;  %v3488_v14 = vshrl.u32 %v7513_v9, 16  ;;  %v3491_v49 = vshll.u32 %v7513_v9, 16  ;;  %v7518_v18 = vpack.c.bf16 %v3402_v36, %v3402_v36  ;;  %vm9936_vm0 = vmand %vm3351_vm14, %vm3361_vm3 }
 0x1a6   : > { %v3400_v50 = vsel %vm9864_vm13, %v3318_v26, 0.0  ;;  %v3683_v56 = vsel %vm9852_vm12, %v3485_v33, %v3682_v51  ;;  %v3220_v34 = vpop.f32.mrf.mxu0  ;;  %v3301_v54 = vadd.f32 %v9752_v30, %v3274_v55  ;;  %v3706_v51 = vld [vmem:[#allocation2 + $0x24] sm:$0xf]  ;;  %vm3362_vm14 = vcmp.lt.s32.totalorder %v9664_v8, 16 }
 0x1a7   : > { %v3510_v27 = vor.u32 %v3508_v37, %v3507_v6  ;;  %v3512_v2 = vrot.slane %v3507_v6, 4  ;;  %v7516_v46 = vpack.c.bf16 %v3400_v50, %v3400_v50  ;;  %3684 = vst [vmem:[#allocation2] sm:$0xf] %v3683_v56  ;;  %v3490_v5 = vrot.slane %v3488_v14, 7 }
 0x1a8   : > { %v3531_v63 = vshrl.u32 %v7518_v18, 16  ;;  %v3534_v58 = vshll.u32 %v7518_v18, 16  ;;  %v7902_v10 = vpop.f32.mrf.mxu0  ;;  %v3321_v0 = vmax.f32 %v3301_v54, 0.0  ;;  %v3277_v37 = vadd.f32 %v7901_v1, %v9761_v25 }
 0x1a9   : > { %v3511_v60 = vsel %vm9884_vm8, %v3503_v42, %v3510_v27  ;;  %v3697_v11 = vsel %vm9874_vm9, %v3512_v2, %v3696_v31  ;;  %v3514_v7 = vshrl.u32 %v7516_v46, 16  ;;  %v3517_v45 = vshll.u32 %v7516_v46, 16  ;;  %v3699_v31 = vld [vmem:[#allocation2 + $0x18] sm:$0xf] }
 0x1aa   : > { %3695 = vst.msk [vmem:[#allocation2 + $0x10] sm:$0xf] %vm3679_vm15, %v3511_v60  ;;  %3698 = vst [vmem:[#allocation2 + $0x14] sm:$0x1] %v3697_v11  ;;  %v3493_v29 = vor.u32 %v3491_v49, %v3490_v5  ;;  %v3495_v19 = vrot.slane %v3490_v5, 4  ;;  %v9898_v23 = vrot.slane %v3531_v63, 7  ;;  %v3272_v42 = vadd.f32 %v3207_v28, %v9758_v44  ;;  %v3223_v36 = vpop.f32.mrf.mxu0 }
 0x1ab   : > { %v9900_v55 = vrot.slane %v3514_v7, 7  ;;  %v3275_v9 = vadd.f32 %v3220_v34, %v9770_v16  ;;  %v3403_v16 = vsel %vm9846_vm11, %v3321_v0, 0.0  ;;  %v3304_v40 = vadd.f32 %v9752_v30, %v3277_v37 }
 0x1ac   : > { %v3494_v26 = vsel %vm9884_vm8, %v3486_v61, %v3493_v29  ;;  %v3690_v22 = vsel %vm9874_vm9, %v3495_v19, %v3689_v32  ;;  %v3536_v33 = vor.u32 %v3534_v58, %v9898_v23  ;;  %v3537_v6 = vrot.slane %v9898_v23, 4  ;;  %v3758_v14 = vld [vmem:[#allocation2 + $0xc] sm:$0x1]  ;;  %v9917_v61 = vpop.f32.mrf.mxu0 }
 0x1ad   : > { %3686 = vst.msk [vmem:[#allocation2 + $0x4] sm:$0xf] %vm3679_vm15, %v3494_v26  ;;  %3691 = vst [vmem:[#allocation2 + $0x8] sm:$0x1] %v3690_v22  ;;  %v3519_v44 = vor.u32 %v3517_v45, %v9900_v55  ;;  %v3520_v25 = vrot.slane %v9900_v55, 4  ;;  %v3299_v28 = vadd.f32 %v9752_v30, %v3272_v42  ;;  %v3759_v1 = vsel %vm9874_vm9, 0, %v3758_v14 }
 0x1ae   : > { %v3707_v18 = vsel %vm9852_vm12, %v3536_v33, %v3706_v51  ;;  %v7519_v50 = vpack.c.bf16 %v3403_v16, %v3403_v16  ;;  %3760 = vst [vmem:[#allocation2 + $0xc] sm:$0x1] %v3759_v1  ;;  %v3755_v56 = vld [vmem:[#allocation2] sm:$0x1]  ;;  %v3302_v34 = vadd.f32 %v9752_v30, %v3275_v9  ;;  %v3278_v5 = vadd.f32 %v7902_v10, %v9773_v53  ;;  %v9942_v63 = vpop.f32.mrf.mxu0  ;;  %v3710_v42 = vld [vmem:[#allocation2 + $0x2c] sm:$0x1] }
 0x1af   : > { %3708 = vst [vmem:[#allocation2 + $0x24] sm:$0xf] %v3707_v18  ;;  %v3700_v27 = vsel %vm9852_vm12, %v3519_v44, %v3699_v31  ;;  %v3319_v2 = vmax.f32 %v3299_v28, 0.0  ;;  %v3756_v58 = vsel %vm9874_vm9, 0, %v3755_v56  ;;  %v3324_v11 = vmax.f32 %v3304_v40, 0.0 }
 0x1b0   : > { %3701 = vst [vmem:[#allocation2 + $0x18] sm:$0xf] %v3700_v27  ;;  %v3539_v54 = vshrl.u32 %v7519_v50, 16  ;;  %v3542_v60 = vshll.u32 %v7519_v50, 16  ;;  %3757 = vst [vmem:[#allocation2] sm:$0x1] %v3756_v58  ;;  %v3305_v45 = vadd.f32 %v9752_v30, %v3278_v5  ;;  %v3276_v10 = vadd.f32 %v3223_v36, %v9779_v52  ;;  %v9962_v51 = vpop.f32.mrf.mxu0 }
 0x1b1   : > { %v3789_v32 = vld [vmem:[#allocation2 + $0x14] sm:$0x1]  ;;  %v3401_v53 = vsel %vm9864_vm13, %v3319_v2, 0.0  ;;  %v3322_v7 = vmax.f32 %v3302_v34, 0.0  ;;  %v3406_v47 = vsel %vm9936_vm0, %v3324_v11, 0.0  ;;  %vm3363_vm11 = vcmp.lt.s32.totalorder %v9659_v39, 16 }
 0x1b2   : > { %v3790_v29 = vsel %vm9923_vm5, 0, %v3789_v32  ;;  %v3541_v19 = vrot.slane %v3539_v54, 7  ;;  %v7517_v0 = vpack.c.bf16 %v3401_v53, %v3401_v53  ;;  %v7522_v37 = vpack.c.bf16 %v3406_v47, %v3406_v47  ;;  %v3703_v56 = vld [vmem:[#allocation2 + $0x20] sm:$0x1]  ;;  %v3239_v2 = vpop.f32.mrf.mxu0  ;;  %v3720_v32 = vld [vmem:[#allocation2 + $0x3c] sm:$0xf]  ;;  %vm10020_vm2 = vmand %vm3353_vm10, %vm3363_vm11 }
 0x1b3   : > { %3791 = vst [vmem:[#allocation2 + $0x14] sm:$0x1] %v3790_v29  ;;  %v3404_v4 = vsel %vm9950_vm6, %v3322_v7, 0.0  ;;  %v3325_v9 = vmax.f32 %v3305_v45, 0.0  ;;  %v3303_v26 = vadd.f32 %v9752_v30, %v3276_v10  ;;  %vm3352_vm13 = vcmp.ge.s32.totalorder %v9664_v8, 0 }
 0x1b4   : > { %v3786_v52 = vld [vmem:[#allocation2 + $0x8] sm:$0x1]  ;;  %v3544_v36 = vor.u32 %v3542_v60, %v3541_v19  ;;  %v3546_v22 = vrot.slane %v3541_v19, 4  ;;  %v3522_v33 = vshrl.u32 %v7517_v0, 16  ;;  %v3525_v31 = vshll.u32 %v7517_v0, 16 }
 0x1b5   : > { %v3787_v14 = vsel %vm9923_vm5, 0, %v3786_v52  ;;  %v3565_v44 = vshrl.u32 %v7522_v37, 16  ;;  %v3568_v16 = vshll.u32 %v7522_v37, 16  ;;  %v7520_v28 = vpack.c.bf16 %v3404_v4, %v3404_v4  ;;  %v3713_v0 = vld [vmem:[#allocation2 + $0x30] sm:$0xf]  ;;  %v7909_v37 = vpop.f32.mrf.mxu0 }
 0x1b6   : > { %3788 = vst [vmem:[#allocation2 + $0x8] sm:$0x1] %v3787_v14  ;;  %v3764_v1 = vld [vmem:[#allocation2 + $0x24] sm:$0x1]  ;;  %v3545_v18 = vsel %vm9884_vm8, %v3537_v6, %v3544_v36  ;;  %v3711_v50 = vsel %vm9874_vm9, %v3546_v22, %v3710_v42  ;;  %v3524_v40 = vrot.slane %v3522_v33, 7  ;;  %v3407_v27 = vsel %vm9936_vm0, %v3325_v9, 0.0  ;;  %vm10034_vm0 = vmand %vm3352_vm13, %vm3362_vm14 }
 0x1b7   : > { %v3765_v34 = vsel %vm9874_vm9, 0, %v3764_v1  ;;  %v3761_v5 = vld [vmem:[#allocation2 + $0x18] sm:$0x1]  ;;  %3709 = vst.msk [vmem:[#allocation2 + $0x28] sm:$0xf] %vm3679_vm15, %v3545_v18  ;;  %v3567_v23 = vrot.slane %v3565_v44, 7  ;;  %v7523_v46 = vpack.c.bf16 %v3407_v27, %v3407_v27  ;;  %v3281_v36 = vadd.f32 %v9917_v61, %v9782_v38 }
 0x1b8   : > { %3712 = vst [vmem:[#allocation2 + $0x2c] sm:$0x1] %v3711_v50  ;;  %v3548_v58 = vshrl.u32 %v7520_v28, 16  ;;  %v3551_v54 = vshll.u32 %v7520_v28, 16  ;;  %3766 = vst [vmem:[#allocation2 + $0x24] sm:$0x1] %v3765_v34  ;;  %v3527_v60 = vor.u32 %v3525_v31, %v3524_v40  ;;  %v3279_v22 = vadd.f32 %v9942_v63, %v9793_v20  ;;  %v3252_v63 = vpop.f32.mrf.mxu0 }
 0x1b9   : > { %v3762_v6 = vsel %vm9874_vm9, 0, %v3761_v5  ;;  %v3529_v11 = vrot.slane %v3524_v40, 4  ;;  %v3570_v53 = vor.u32 %v3568_v16, %v3567_v23  ;;  %v3571_v7 = vrot.slane %v3567_v23, 4  ;;  %v3724_v31 = vld [vmem:[#allocation2 + $0x44] sm:$0x1] }
 0x1ba   : > { %3763 = vst [vmem:[#allocation2 + $0x18] sm:$0x1] %v3762_v6  ;;  %v9986_v45 = vrot.slane %v3548_v58, 7  ;;  %v3323_v10 = vmax.f32 %v3303_v26, 0.0  ;;  %v3528_v29 = vsel %vm9884_vm8, %v3520_v25, %v3527_v60  ;;  %v3573_v47 = vshrl.u32 %v7523_v46, 16 }
 0x1bb   : > { %v3704_v19 = vsel %vm9874_vm9, %v3529_v11, %v3703_v56  ;;  %v3576_v42 = vshll.u32 %v7523_v46, 16  ;;  %vm3355_vm3 = vcmp.ge.s32.totalorder %v9667_v21, 0  ;;  %vm3365_vm1 = vcmp.lt.s32.totalorder %v9667_v21, 16  ;;  %3702 = vst.msk [vmem:[#allocation2 + $0x1c] sm:$0xf] %vm3679_vm15, %v3528_v29 }
 0x1bc   : > { %3705 = vst [vmem:[#allocation2 + $0x20] sm:$0x1] %v3704_v19  ;;  %v3721_v55 = vsel %vm9852_vm12, %v3570_v53, %v3720_v32  ;;  %v3553_v4 = vor.u32 %v3551_v54, %v9986_v45  ;;  %v3554_v25 = vrot.slane %v9986_v45, 4  ;;  %v3405_v9 = vsel %vm9950_vm6, %v3323_v10, 0.0  ;;  %v3717_v27 = vld [vmem:[#allocation2 + $0x38] sm:$0x1]  ;;  %vm10065_vm11 = vmand %vm3355_vm3, %vm3365_vm1 }
 0x1bd   : > { %3722 = vst [vmem:[#allocation2 + $0x3c] sm:$0xf] %v3721_v55  ;;  %v3575_v26 = vrot.slane %v3573_v47, 7  ;;  %v7521_v52 = vpack.c.bf16 %v3405_v9, %v3405_v9  ;;  %v3282_v14 = vadd.f32 %v9962_v51, %v9797_v24  ;;  %v3280_v44 = vadd.f32 %v3239_v2, %v9800_v15  ;;  %v11313_v45 = vld [vmem:[#allocation34_spill] sm:$0xff] }
 0x1be   : > { %v3714_v33 = vsel %vm9852_vm12, %v3553_v4, %v3713_v0  ;;  %v3285_v59 = vadd.f32 %v7909_v37, %v9803_v43  ;;  %v3308_v61 = vadd.f32 %v9752_v30, %v3281_v36  ;;  %v3306_v15 = vadd.f32 %v9752_v30, %v3279_v22 }
 0x1bf   : > { %v3795_v16 = vld [vmem:[#allocation2 + $0x2c] sm:$0x1]  ;;  %3715 = vst [vmem:[#allocation2 + $0x30] sm:$0xf] %v3714_v33  ;;  %v3578_v28 = vor.u32 %v3576_v42, %v3575_v26  ;;  %v3580_v1 = vrot.slane %v3575_v26, 4  ;;  %v3556_v18 = vshrl.u32 %v7521_v52, 16  ;;  %v3309_v43 = vadd.f32 %v9752_v30, %v3282_v14 }
 0x1c0   : > { %v3559_v38 = vshll.u32 %v7521_v52, 16  ;;  %v3796_v20 = vsel %vm9923_vm5, 0, %v3795_v16  ;;  %v3307_v56 = vadd.f32 %v9752_v30, %v3280_v44  ;;  %v3328_v2 = vmax.f32 %v3308_v61, 0.0 }
 0x1c1   : > { %3797 = vst [vmem:[#allocation2 + $0x2c] sm:$0x1] %v3796_v20  ;;  %v3579_v51 = vsel %vm9884_vm8, %v3571_v7, %v3578_v28  ;;  %v3725_v50 = vsel %vm9874_vm9, %v3580_v1, %v3724_v31  ;;  %v3558_v40 = vrot.slane %v3556_v18, 7  ;;  %v3326_v34 = vmax.f32 %v3306_v15, 0.0  ;;  %v7910_v28 = vpop.f32.mrf.mxu0  ;;  %v3734_v18 = vld [vmem:[#allocation2 + $0x54] sm:$0xf] }
 0x1c2   : > { %3723 = vst.msk [vmem:[#allocation2 + $0x40] sm:$0xf] %vm3679_vm15, %v3579_v51  ;;  %3726 = vst [vmem:[#allocation2 + $0x44] sm:$0x1] %v3725_v50  ;;  %v3329_v5 = vmax.f32 %v3309_v43, 0.0  ;;  %v3312_v23 = vadd.f32 %v9752_v30, %v3285_v59  ;;  %v3327_v60 = vmax.f32 %v3307_v56, 0.0  ;;  %v3283_v8 = vadd.f32 %v3252_v63, %v9805_v3 }
 0x1c3   : > { %v3792_v58 = vld [vmem:[#allocation2 + $0x20] sm:$0x1]  ;;  %v3561_v54 = vor.u32 %v3559_v38, %v3558_v40  ;;  %v3563_v6 = vrot.slane %v3558_v40, 4  ;;  %v3410_v46 = vsel %vm10020_vm2, %v3328_v2, 0.0  ;;  %v3408_v53 = vsel %vm10034_vm0, %v3326_v34, 0.0 }
 0x1c4   : > { %v3793_v11 = vsel %vm9923_vm5, 0, %v3792_v58  ;;  %v3770_v32 = vld [vmem:[#allocation2 + $0x3c] sm:$0x1]  ;;  %v3411_v7 = vsel %vm10020_vm2, %v3329_v5, 0.0  ;;  %vm3354_vm6 = vcmp.ge.s32.totalorder %v11313_v45, 0  ;;  %vm3364_vm10 = vcmp.lt.s32.totalorder %v11313_v45, 16 }
 0x1c5   : > { %3794 = vst [vmem:[#allocation2 + $0x20] sm:$0x1] %v3793_v11  ;;  %v3771_v3 = vsel %vm9874_vm9, 0, %v3770_v32  ;;  %v3562_v10 = vsel %vm9884_vm8, %v3554_v25, %v3561_v54  ;;  %v3718_v29 = vsel %vm9874_vm9, %v3563_v6, %v3717_v27  ;;  %v7526_v19 = vpack.c.bf16 %v3410_v46, %v3410_v46  ;;  %v3727_v43 = vld [vmem:[#allocation2 + $0x48] sm:$0xf]  ;;  %v3255_v6 = vpop.f32.mrf.mxu0  ;;  %vm10101_vm14 = vmand %vm3354_vm6, %vm3364_vm10 }
 0x1c6   : > { %3772 = vst [vmem:[#allocation2 + $0x3c] sm:$0x1] %v3771_v3  ;;  %v3767_v0 = vld [vmem:[#allocation2 + $0x30] sm:$0x1]  ;;  %3716 = vst.msk [vmem:[#allocation2 + $0x34] sm:$0xf] %vm3679_vm15, %v3562_v10  ;;  %v7524_v47 = vpack.c.bf16 %v3408_v53, %v3408_v53  ;;  %v7527_v42 = vpack.c.bf16 %v3411_v7, %v3411_v7  ;;  %v3310_v50 = vadd.f32 %v9752_v30, %v3283_v8 }
 0x1c7   : > { %3719 = vst [vmem:[#allocation2 + $0x38] sm:$0x1] %v3718_v29  ;;  %v3409_v37 = vsel %vm10034_vm0, %v3327_v60, 0.0  ;;  %v3332_v55 = vmax.f32 %v3312_v23, 0.0  ;;  %v3768_v25 = vsel %vm9874_vm9, 0, %v3767_v0  ;;  %v3599_v9 = vshrl.u32 %v7526_v19, 16 }
 0x1c8   : > { %v3602_v26 = vshll.u32 %v7526_v19, 16  ;;  %v7525_v52 = vpack.c.bf16 %v3409_v37, %v3409_v37  ;;  %3769 = vst [vmem:[#allocation2 + $0x30] sm:$0x1] %v3768_v25  ;;  %v3582_v36 = vshrl.u32 %v7524_v47, 16  ;;  %v3585_v22 = vshll.u32 %v7524_v47, 16 }
 0x1c9   : > { %v3607_v33 = vshrl.u32 %v7527_v42, 16  ;;  %v3610_v31 = vshll.u32 %v7527_v42, 16  ;;  %v3801_v14 = vld [vmem:[#allocation2 + $0x44] sm:$0x1]  ;;  %v3601_v44 = vrot.slane %v3599_v9, 7  ;;  %v3414_v21 = vsel %vm10065_vm11, %v3332_v55, 0.0 }
 0x1ca   : > { %v3590_v59 = vshrl.u32 %v7525_v52, 16  ;;  %v3593_v16 = vshll.u32 %v7525_v52, 16  ;;  %v3802_v1 = vsel %vm9923_vm5, 0, %v3801_v14  ;;  %v3584_v38 = vrot.slane %v3582_v36, 7  ;;  %v3738_v63 = vld [vmem:[#allocation2 + $0x5c] sm:$0x1] }
 0x1cb   : > { %v3609_v20 = vrot.slane %v3607_v33, 7  ;;  %v7530_v61 = vpack.c.bf16 %v3414_v21, %v3414_v21  ;;  %3803 = vst [vmem:[#allocation2 + $0x44] sm:$0x1] %v3802_v1  ;;  %v3604_v24 = vor.u32 %v3602_v26, %v3601_v44  ;;  %v3605_v15 = vrot.slane %v3601_v44, 4  ;;  %v3731_v2 = vld [vmem:[#allocation2 + $0x50] sm:$0x1] }
 0x1cc   : > { %v3592_v51 = vrot.slane %v3590_v59, 7  ;;  %v3587_v40 = vor.u32 %v3585_v22, %v3584_v38  ;;  %v3588_v39 = vrot.slane %v3584_v38, 4  ;;  %vm4059_vm13 = vcmask 64512   ;;  %v4349_v60 = vld [vmem:[#allocation2] sm:$0xe] }
 0x1cd   : > { %v3612_v56 = vor.u32 %v3610_v31, %v3609_v20  ;;  %v3614_v27 = vrot.slane %v3609_v20, 4  ;;  %v3735_v5 = vsel %vm9852_vm12, %v3604_v24, %v3734_v18  ;;  %v3633_v54 = vshrl.u32 %v7530_v61, 16  ;;  %v3748_v53 = vld [vmem:[#allocation2 + $0x6c] sm:$0xf]  ;;  %v10086_v7 = vld [vmem:[#allocation2 + $0x4] sm:$0xf] }
 0x1ce   : > { %v3798_v34 = vld [vmem:[#allocation2 + $0x38] sm:$0x1]  ;;  %v3595_v23 = vor.u32 %v3593_v16, %v3592_v51  ;;  %v3597_v58 = vrot.slane %v3592_v51, 4  ;;  %3736 = vst [vmem:[#allocation2 + $0x54] sm:$0xf] %v3735_v5  ;;  %v3728_v8 = vsel %vm9852_vm12, %v3587_v40, %v3727_v43  ;;  %v3636_v0 = vshll.u32 %v7530_v61, 16 }
 0x1cf   : > { %v3799_v11 = vsel %vm9923_vm5, 0, %v3798_v34  ;;  %v3613_v32 = vsel %vm9884_vm8, %v3605_v15, %v3612_v56  ;;  %v3739_v46 = vsel %vm9874_vm9, %v3614_v27, %v3738_v63  ;;  %v10088_v3 = vld [vmem:[#allocation2 + $0x8] sm:$0x1]  ;;  %3729 = vst [vmem:[#allocation2 + $0x48] sm:$0xf] %v3728_v8  ;;  %v10095_v19 = vrot.slane %v3633_v54, 7 }
 0x1d0   : > { %3800 = vst [vmem:[#allocation2 + $0x38] sm:$0x1] %v3799_v11  ;;  %3737 = vst.msk [vmem:[#allocation2 + $0x58] sm:$0xf] %vm3679_vm15, %v3613_v32  ;;  %v3596_v10 = vsel %vm9884_vm8, %v3588_v39, %v3595_v23  ;;  %v3732_v29 = vsel %vm9874_vm9, %v3597_v58, %v3731_v2  ;;  %v10105_v42 = vld [vmem:[#allocation2 + $0x10] sm:$0xf]  ;;  %v3286_v25 = vadd.f32 %v7910_v28, %v9823_v48 }
 0x1d1   : > { %3740 = vst [vmem:[#allocation2 + $0x5c] sm:$0x1] %v3739_v46  ;;  %v4350_v37 = vld [vmem:[#allocation2 + $0xc] sm:$0xe]  ;;  %3730 = vst.msk [vmem:[#allocation2 + $0x4c] sm:$0xf] %vm3679_vm15, %v3596_v10  ;;  %v3284_v9 = vadd.f32 %v3255_v6, %v9825_v17  ;;  %v3638_v45 = vor.u32 %v3636_v0, %v10095_v19 }
 0x1d2   : > { %3733 = vst [vmem:[#allocation2 + $0x50] sm:$0x1] %v3732_v29  ;;  %v3330_v55 = vmax.f32 %v3310_v50, 0.0  ;;  %v7361_v26 = vrot.slane %v4349_v60, 9  ;;  %v10110_v52 = vld [vmem:[#allocation2 + $0x14] sm:$0x1]  ;;  %v3313_v14 = vadd.f32 %v9752_v30, %v3286_v25 }
 0x1d3   : > { %v3639_v36 = vrot.slane %v10095_v19, 4  ;;  %v4375_v22 = vrot.slane %v10086_v7, 5  ;;  %v4378_v33 = vrot.slane %v10088_v3, 5  ;;  %v3311_v48 = vadd.f32 %v9752_v30, %v3284_v9  ;;  %v10120_v17 = vld [vmem:[#allocation2] sm:$0xf] }
 0x1d4   : > { %v3412_v31 = vsel %vm10101_vm14, %v3330_v55, 0.0  ;;  %v7362_v44 = vrot.slane %v4350_v37, 9  ;;  %v3749_v59 = vsel %vm9852_vm12, %v3638_v45, %v3748_v53  ;;  %v3333_v18 = vmax.f32 %v3313_v14, 0.0  ;;  %v3741_v54 = vld [vmem:[#allocation2 + $0x60] sm:$0xf] }
 0x1d5   : > { %v7528_v16 = vpack.c.bf16 %v3412_v31, %v3412_v31  ;;  %v4376_v28 = vsel %vm8667_vm7, %v7361_v26, %v4375_v22  ;;  %v4377_v1 = vrot.slane %v4375_v22, 4  ;;  %3750 = vst [vmem:[#allocation2 + $0x6c] sm:$0xf] %v3749_v59  ;;  %v3331_v38 = vmax.f32 %v3311_v48, 0.0  ;;  %v3776_v24 = vld [vmem:[#allocation2 + $0x54] sm:$0x1] }
 0x1d6   : > { %v4382_v20 = vrot.slane %v10105_v42, 5  ;;  %v4385_v61 = vrot.slane %v10110_v52, 5  ;;  %v3842_v63 = vshrl.u32 %v10120_v17, 16  ;;  %v3777_v51 = vsel %vm9874_vm9, 0, %v3776_v24  ;;  %v3773_v50 = vld [vmem:[#allocation2 + $0x48] sm:$0x1] }
 0x1d7   : > { %v3616_v30 = vshrl.u32 %v7528_v16, 16  ;;  %v3619_v15 = vshll.u32 %v7528_v16, 16  ;;  %v4379_v43 = vsel %vm8667_vm7, %v4377_v1, %v4378_v33  ;;  %v3415_v39 = vsel %vm10065_vm11, %v3333_v18, 0.0  ;;  %3778 = vst [vmem:[#allocation2 + $0x54] sm:$0x1] %v3777_v51 }
 0x1d8   : > { %v3807_v40 = vld [vmem:[#allocation2 + $0x5c] sm:$0x1]  ;;  %v7370_v56 = vcombine.low %v4376_v28, %v4379_v43  ;;  %v4383_v27 = vsel %vm8667_vm7, %v7362_v44, %v4382_v20  ;;  %v3774_v2 = vsel %vm9874_vm9, 0, %v3773_v50  ;;  %v7531_v58 = vpack.c.bf16 %v3415_v39, %v3415_v39  ;;  %v3752_v10 = vld [vmem:[#allocation2 + $0x74] sm:$0x1] }
 0x1d9   : > { %v3808_v34 = vsel %vm9923_vm5, 0, %v3807_v40  ;;  %v3804_v5 = vld [vmem:[#allocation2 + $0x50] sm:$0x1]  ;;  %v10141_v23 = vrot.slane %v3616_v30, 7  ;;  %3775 = vst [vmem:[#allocation2 + $0x48] sm:$0x1] %v3774_v2 }
 0x1da   : > { %3809 = vst [vmem:[#allocation2 + $0x5c] sm:$0x1] %v3808_v34  ;;  %v3805_v4 = vsel %vm9923_vm5, 0, %v3804_v5  ;;  %v3413_v6 = vsel %vm10101_vm14, %v3331_v38, 0.0  ;;  %7949 = vmatprep.mubr.msk.bf16.mxu0 %vm4059_vm13, %v7370_v56  ;;  %v4384_v60 = vrot.slane %v4382_v20, 4  ;;  %v3844_v11 = vrot.slane %v3842_v63, 4 }
 0x1db   : > { %3806 = vst [vmem:[#allocation2 + $0x50] sm:$0x1] %v3805_v4  ;;  %v3621_v8 = vor.u32 %v3619_v15, %v10141_v23  ;;  %v3622_v32 = vrot.slane %v10141_v23, 4  ;;  %v3641_v46 = vshrl.u32 %v7531_v58, 16  ;;  %v3644_v53 = vshll.u32 %v7531_v58, 16 }
 0x1dc   : > { %v7529_v29 = vpack.c.bf16 %v3413_v6, %v3413_v6  ;;  %v4386_v0 = vsel %vm8667_vm7, %v4384_v60, %v4385_v61  ;;  %v3845_v37 = vshll.u32 %v10120_v17, 16  ;;  %v3851_v47 = vshll.u32 %v10086_v7, 16  ;;  %v3782_v55 = vld [vmem:[#allocation2 + $0x6c] sm:$0x1]  ;;  %v10164_v44 = vld [vmem:[%s11216_s3 + $0x18] sm:$0xf] }
 0x1dd   : > { %v3742_v25 = vsel %vm9852_vm12, %v3621_v8, %v3741_v54  ;;  %v3643_v9 = vrot.slane %v3641_v46, 7  ;;  %v7371_v26 = vcombine.low %v4383_v27, %v4386_v0  ;;  %v3855_v45 = vshrl.u32 %v10086_v7, 16  ;;  %v10157_v22 = vld [vmem:[#allocation2 + $0xc] sm:$0xf]  ;;  %v3745_v30 = vld [vmem:[#allocation2 + $0x68] sm:$0x1] }
 0x1de   : > { %v3783_v33 = vsel %vm9874_vm9, 0, %v3782_v55  ;;  %3743 = vst [vmem:[#allocation2 + $0x60] sm:$0xf] %v3742_v25  ;;  %v3624_v31 = vshrl.u32 %v7529_v29, 16  ;;  %v3627_v14 = vshll.u32 %v7529_v29, 16  ;;  %v3847_v48 = vrot.slane %v3845_v37, 5 }
 0x1df   : > { %3784 = vst [vmem:[#allocation2 + $0x6c] sm:$0x1] %v3783_v33  ;;  %v3646_v41 = vor.u32 %v3644_v53, %v3643_v9  ;;  %v3648_v59 = vrot.slane %v3643_v9, 4  ;;  %7950 = vmatmul.mubr.msk.bf16.vlgmr.msra.gmra.mxu0 %vm4059_vm13, %v7371_v26  ;;  %v3853_v16 = vrot.slane %v3851_v47, 5  ;;  %v3857_v28 = vrot.slane %v3855_v45, 4 }
 0x1e0   : > { %v3626_v1 = vrot.slane %v3624_v31, 7  ;;  %v3848_v18 = vor.u32 %v3847_v48, %v3844_v11  ;;  %v3861_v38 = vshll.u32 %v10088_v3, 16  ;;  %v3866_v20 = vshrl.u32 %v10157_v22, 16  ;;  %7984 = vmatpush3.bf16.msra.mxu0 %v9828_v12  ;;  %v4351_v51 = vld [vmem:[#allocation2 + $0x18] sm:$0xe] }
 0x1e1   : > { %v3647_v61 = vsel %vm9884_vm8, %v3639_v36, %v3646_v41  ;;  %v3753_v24 = vsel %vm9874_vm9, %v3648_v59, %v3752_v10  ;;  %v3858_v15 = vor.u32 %v3857_v28, %v3853_v16  ;;  %v3869_v43 = vshll.u32 %v10157_v22, 16  ;;  %v10181_v56 = vld [vmem:[#allocation2 + $0x28] sm:$0xf]  ;;  %v4352_v27 = vld [vmem:[#allocation2 + $0x24] sm:$0xe] }
 0x1e2   : > { %vm11319_vm12 = vcmask 1043456   ;;  %3751 = vst.msk [vmem:[#allocation2 + $0x70] sm:$0xf] %vm3679_vm15, %v3647_v61  ;;  %3754 = vst [vmem:[#allocation2 + $0x74] sm:$0x1] %v3753_v24  ;;  %v3629_v3 = vor.u32 %v3627_v14, %v3626_v1  ;;  %v3631_v12 = vrot.slane %v3626_v1, 4 }
 0x1e3   : > { %8088 = vmatprep.subr.msk.bf16.mxu0 %vm11319_vm12, %v10164_v44  ;;  %v3849_v63 = vrot.slane %v3848_v18, 4  ;;  %v3863_v19 = vrot.slane %v3861_v38, 5  ;;  %v3859_v50 = vrot.slane %v3858_v15, 4  ;;  %v3868_v36 = vrot.slane %v3866_v20, 4  ;;  %v10190_v4 = vld [vmem:[#allocation2 + $0x1c] sm:$0xf] }
 0x1e4   : > { %v3871_v40 = vrot.slane %v3869_v43, 5  ;;  %v3875_v39 = vshll.u32 %v10105_v42, 16  ;;  %v3630_v2 = vsel %vm9884_vm8, %v3622_v32, %v3629_v3  ;;  %v3746_v34 = vsel %vm9874_vm9, %v3631_v12, %v3745_v30  ;;  %v10192_v54 = vld [vmem:[#allocation2 + $0x20] sm:$0x1]  ;;  %v10198_v32 = vld [vmem:[#allocation2 + $0x2c] sm:$0x1]  ;;  %vm11322_vm8 = vmmov %vm11319_vm12 }
 0x1e5   : > { %v3854_v23 = vsel %vm8513_vm4, %v3849_v63, %v3853_v16  ;;  %v3879_v58 = vshrl.u32 %v10105_v42, 16  ;;  %v3779_v6 = vld [vmem:[#allocation2 + $0x60] sm:$0x1]  ;;  %3744 = vst.msk [vmem:[#allocation2 + $0x64] sm:$0xf] %vm3679_vm15, %v3630_v2  ;;  %v3864_v35 = vsel %vm8513_vm4, %v3859_v50, %v3863_v19  ;;  %v3885_v8 = vshll.u32 %v10110_v52, 16  ;;  %vm11323_vm15 = vmmov %vm11322_vm8 }
 0x1e6   : > { %3747 = vst [vmem:[#allocation2 + $0x68] sm:$0x1] %v3746_v34  ;;  %v3872_v60 = vor.u32 %v3871_v40, %v3868_v36  ;;  %v3877_v11 = vrot.slane %v3875_v39, 5  ;;  %v3780_v46 = vsel %vm9874_vm9, 0, %v3779_v6  ;;  %v7329_v53 = vcombine.low %v3854_v23, %v3864_v35  ;;  %v10202_v0 = vld [vmem:[#allocation2 + $0x18] sm:$0xf]  ;;  %vm11324_vm9 = vmmov %vm11322_vm8 }
 0x1e7   : > { %v3881_v10 = vrot.slane %v3879_v58, 4  ;;  %v7363_v29 = vrot.slane %v4351_v51, 9  ;;  %3781 = vst [vmem:[#allocation2 + $0x60] sm:$0x1] %v3780_v46  ;;  %v3887_v47 = vrot.slane %v3885_v8, 5  ;;  %v4389_v55 = vrot.slane %v10190_v4, 5 }
 0x1e8   : > { %v3873_v37 = vrot.slane %v3872_v60, 4  ;;  %v4392_v25 = vrot.slane %v10192_v54, 5  ;;  %7913 = vmatprep.mubr.msk.bf16.mxu1 %vm4059_vm13, %v7329_v53  ;;  %v7364_v9 = vrot.slane %v4352_v27, 9  ;;  %v4396_v26 = vrot.slane %v10181_v56, 5  ;;  %v10214_v41 = vld [vmem:[#allocation2 + $0x24] sm:$0xf] }
 0x1e9   : > { %v3882_v52 = vor.u32 %v3881_v10, %v3877_v11  ;;  %v4399_v13 = vrot.slane %v10198_v32, 5  ;;  %v3813_v45 = vld [vmem:[#allocation2 + $0x74] sm:$0x1]  ;;  %v4390_v31 = vsel %vm8667_vm7, %v7363_v29, %v4389_v55  ;;  %v4391_v14 = vrot.slane %v4389_v55, 4  ;;  %v4353_v36 = vld [vmem:[#allocation2 + $0x30] sm:$0xe] }
 0x1ea   : > { %v3878_v33 = vsel %vm8513_vm4, %v3873_v37, %v3877_v11  ;;  %v3890_v48 = vshrl.u32 %v10202_v0, 16  ;;  %v3814_v59 = vsel %vm9923_vm5, 0, %v3813_v45  ;;  %v4397_v28 = vsel %vm8667_vm7, %v7364_v9, %v4396_v26  ;;  %v10231_v50 = vld [vmem:[#allocation2 + $0x34] sm:$0xf]  ;;  %v10236_v34 = vld [vmem:[#allocation2 + $0x38] sm:$0x1] }
 0x1eb   : > { %v3883_v16 = vrot.slane %v3882_v52, 4  ;;  %v4398_v1 = vrot.slane %v4396_v26, 4  ;;  %3815 = vst [vmem:[#allocation2 + $0x74] sm:$0x1] %v3814_v59  ;;  %v4393_v18 = vsel %vm8667_vm7, %v4391_v14, %v4392_v25  ;;  %v3893_v20 = vshll.u32 %v10202_v0, 16  ;;  %v11321_v60 = vld [vmem:[#allocation8_spill] sm:$0xff] }
 0x1ec   : > { %v3892_v38 = vrot.slane %v3890_v48, 4  ;;  %v3899_v61 = vshll.u32 %v10190_v4, 16  ;;  %v7372_v15 = vcombine.low %v4390_v31, %v4393_v18  ;;  %v3903_v3 = vshrl.u32 %v10190_v4, 16  ;;  %v4354_v35 = vld [vmem:[#allocation2 + $0x3c] sm:$0xe] }
 0x1ed   : > { %v3810_v24 = vld [vmem:[#allocation2 + $0x68] sm:$0x1]  ;;  %v3888_v30 = vsel %vm8513_vm4, %v3883_v16, %v3887_v47  ;;  %v4400_v43 = vsel %vm8667_vm7, %v4398_v1, %v4399_v13  ;;  %v3895_v51 = vrot.slane %v3893_v20, 5  ;;  %v3909_v27 = vshll.u32 %v10192_v54, 16  ;;  %v10245_v53 = vld [vmem:[#allocation2 + $0x40] sm:$0xf] }
 0x1ee   : > { %v3811_v12 = vsel %vm9923_vm5, 0, %v3810_v24  ;;  %v7330_v63 = vcombine.low %v3878_v33, %v3888_v30  ;;  %v7373_v19 = vcombine.low %v4397_v28, %v4400_v43  ;;  %7953 = vmatprep.mubr.msk.bf16.mxu0 %vm4059_vm13, %v7372_v15  ;;  %v3901_v40 = vrot.slane %v3899_v61, 5  ;;  %v10247_v55 = vld [vmem:[#allocation2 + $0x44] sm:$0x1]  ;;  %v10249_v25 = vld [vmem:[#allocation2 + $0x30] sm:$0xf]  ;;  %vm11325_vm5 = vmmov %vm11322_vm8 }
 0x1ef   : > { %3812 = vst [vmem:[#allocation2 + $0x68] sm:$0x1] %v3811_v12  ;;  %v3905_v39 = vrot.slane %v3903_v3, 4  ;;  %v3914_v2 = vshrl.u32 %v10214_v41, 16  ;;  %v3896_v49 = vor.u32 %v3895_v51, %v3892_v38  ;;  %v3917_v23 = vshll.u32 %v10214_v41, 16  ;;  %vm11326_vm3 = vmmov %vm11325_vm5 }
 0x1f0   : > { %7914 = vmatmul.mubr.msk.bf16.vlgmr.msra.gmra.mxu1 %vm4059_vm13, %v7330_v63  ;;  %7954 = vmatmul.mubr.msk.bf16.gmra.mxu0 %vm4059_vm13, %v7373_v19  ;;  %v3923_v58 = vshll.u32 %v10181_v56, 16  ;;  %v3927_v6 = vshrl.u32 %v10181_v56, 16  ;;  %v3911_v54 = vrot.slane %v3909_v27, 5  ;;  %v3933_v46 = vshll.u32 %v10198_v32, 16  ;;  %v10262_v38 = vld [vmem:[#allocation2 + $0x3c] sm:$0xf]  ;;  %vm11327_vm1 = vmmov %vm11326_vm3 }
 0x1f1   : > { %7930 = vmatpush3.bf16.msra.mxu1 %v11321_v60  ;;  %v3906_v11 = vor.u32 %v3905_v39, %v3901_v40  ;;  %v3916_v8 = vrot.slane %v3914_v2, 4  ;;  %v3897_v10 = vrot.slane %v3896_v49, 4  ;;  %v3919_v29 = vrot.slane %v3917_v23, 5  ;;  %v10281_v23 = vld [vmem:[#allocation2 + $0x4c] sm:$0xf]  ;;  %vm11328_vm2 = vmmov %vm11327_vm1 }
 0x1f2   : > { %v3925_v37 = vrot.slane %v3923_v58, 5  ;;  %v3929_v47 = vrot.slane %v3927_v6, 4  ;;  %8085 = vmatprep.subr.msk.bf16.mxu1 %vm11322_vm8, %v9821_v62  ;;  %v3935_v9 = vrot.slane %v3933_v46, 5  ;;  %v7365_v26 = vrot.slane %v4353_v36, 9  ;;  %vm11329_vm0 = vmmov %vm11327_vm1 }
 0x1f3   : > { %v3907_v52 = vrot.slane %v3906_v11, 4  ;;  %v4403_v13 = vrot.slane %v10231_v50, 5  ;;  %v3902_v32 = vsel %vm8513_vm4, %v3897_v10, %v3901_v40  ;;  %v3920_v45 = vor.u32 %v3919_v29, %v3916_v8  ;;  %v4355_v40 = vld [vmem:[#allocation2 + $0x48] sm:$0xe]  ;;  %v4356_v11 = vld [vmem:[#allocation2 + $0x54] sm:$0xe] }
 0x1f4   : > { %v3930_v33 = vor.u32 %v3929_v47, %v3925_v37  ;;  %v4406_v31 = vrot.slane %v10236_v34, 5  ;;  %v7366_v62 = vrot.slane %v4354_v35, 9  ;;  %v4410_v18 = vrot.slane %v10245_v53, 5  ;;  %v10288_v29 = vld [vmem:[#allocation2 + $0x58] sm:$0xf] }
 0x1f5   : > { %v3912_v14 = vsel %vm8513_vm4, %v3907_v52, %v3911_v54  ;;  %v4404_v48 = vsel %vm8667_vm7, %v7365_v26, %v4403_v13  ;;  %v4405_v59 = vrot.slane %v4403_v13, 4  ;;  %v3921_v28 = vrot.slane %v3920_v45, 4  ;;  %v10290_v26 = vld [vmem:[#allocation2 + $0x5c] sm:$0x1] }
 0x1f6   : > { %v7331_v16 = vcombine.low %v3902_v32, %v3912_v14  ;;  %v3931_v1 = vrot.slane %v3930_v33, 4  ;;  %v4413_v61 = vrot.slane %v10247_v55, 5  ;;  %v3938_v24 = vshrl.u32 %v10249_v25, 16 }
 0x1f7   : > { %v4407_v20 = vsel %vm8667_vm7, %v4405_v59, %v4406_v31  ;;  %v3941_v30 = vshll.u32 %v10249_v25, 16  ;;  %v3926_v15 = vsel %vm8513_vm4, %v3921_v28, %v3925_v37  ;;  %v4411_v12 = vsel %vm8667_vm7, %v7366_v62, %v4410_v18  ;;  %v10298_v62 = vld [vmem:[#allocation2 + $0x48] sm:$0xf] }
 0x1f8   : > { %7917 = vmatprep.mubr.msk.bf16.mxu1 %vm4059_vm13, %v7331_v16  ;;  %v3936_v43 = vsel %vm8513_vm4, %v3931_v1, %v3935_v9  ;;  %v7374_v3 = vcombine.low %v4404_v48, %v4407_v20  ;;  %v4412_v19 = vrot.slane %v4410_v18, 4  ;;  %v3940_v51 = vrot.slane %v3938_v24, 4 }
 0x1f9   : > { %v7332_v63 = vcombine.low %v3926_v15, %v3936_v43  ;;  %v3943_v36 = vrot.slane %v3941_v30, 5  ;;  %v3947_v39 = vshll.u32 %v10231_v50, 16  ;;  %v3951_v27 = vshrl.u32 %v10231_v50, 16 }
 0x1fa   : > { %7957 = vmatprep.mubr.msk.bf16.mxu0 %vm4059_vm13, %v7374_v3  ;;  %v3957_v2 = vshll.u32 %v10236_v34, 16  ;;  %v3962_v49 = vshrl.u32 %v10262_v38, 16  ;;  %v4414_v58 = vsel %vm8667_vm7, %v4412_v19, %v4413_v61  ;;  %v3965_v35 = vshll.u32 %v10262_v38, 16  ;;  %v3839_v34 = vld [vmem:[#allocation2 + $0x50] sm:$0x1] }
 0x1fb   : > { %7918 = vmatmul.mubr.msk.bf16.gmra.mxu1 %vm4059_vm13, %v7332_v63  ;;  %v3944_v6 = vor.u32 %v3943_v36, %v3940_v51  ;;  %v3971_v60 = vshll.u32 %v10245_v53, 16  ;;  %v7375_v54 = vcombine.low %v4411_v12, %v4414_v58  ;;  %v3949_v8 = vrot.slane %v3947_v39, 5  ;;  %v4794_v36 = vld [vmem:[#allocation2 + $0xc] sm:$0xf] }
 0x1fc   : > { %v3953_v46 = vrot.slane %v3951_v27, 4  ;;  %v3959_v10 = vrot.slane %v3957_v2, 5  ;;  %v3964_v47 = vrot.slane %v3962_v49, 4  ;;  %v3967_v52 = vrot.slane %v3965_v35, 5 }
 0x1fd   : > { %v3945_v37 = vrot.slane %v3944_v6, 4  ;;  %v3973_v9 = vrot.slane %v3971_v60, 5  ;;  %7958 = vmatmul.mubr.msk.bf16.gmra.mxu0 %vm4059_vm13, %v7375_v54  ;;  %v3975_v32 = vshrl.u32 %v10245_v53, 16  ;;  %v3981_v45 = vshll.u32 %v10247_v55, 16  ;;  %v10322_v54 = vld [vmem:[#allocation2 + $0x10] sm:$0xf] }
 0x1fe   : > { %v3954_v13 = vor.u32 %v3953_v46, %v3949_v8  ;;  %v7367_v33 = vrot.slane %v4355_v40, 9  ;;  %v3968_v14 = vor.u32 %v3967_v52, %v3964_v47  ;;  %v4417_v48 = vrot.slane %v10281_v23, 5 }
 0x1ff   : > { %v3950_v31 = vsel %vm8513_vm4, %v3945_v37, %v3949_v8  ;;  %v4420_v59 = vrot.slane %v3839_v34, 5  ;;  %v3977_v28 = vrot.slane %v3975_v32, 4  ;;  %v3983_v1 = vrot.slane %v3981_v45, 5  ;;  %v10324_v8 = vld [vmem:[#allocation2 + $0x14] sm:$0x1] }
 0x200   : > { %v3955_v16 = vrot.slane %v3954_v13, 4  ;;  %v7368_v18 = vrot.slane %v4356_v11, 9  ;;  %v3969_v20 = vrot.slane %v3968_v14, 4  ;;  %v4418_v61 = vsel %vm8667_vm7, %v7367_v33, %v4417_v48  ;;  %v10326_v13 = vld [vmem:[#allocation2 + $0x54] sm:$0xf] }
 0x201   : > { %v4419_v24 = vrot.slane %v4417_v48, 4  ;;  %v4424_v55 = vrot.slane %v10288_v29, 5  ;;  %v3978_v15 = vor.u32 %v3977_v28, %v3973_v9  ;;  %v4427_v43 = vrot.slane %v10290_v26, 5 }
 0x202   : > { %v3960_v30 = vsel %vm8513_vm4, %v3955_v16, %v3959_v10  ;;  %v3986_v3 = vshrl.u32 %v10298_v62, 16  ;;  %v3974_v63 = vsel %vm8513_vm4, %v3969_v20, %v3973_v9  ;;  %v3989_v49 = vshll.u32 %v10298_v62, 16 }
 0x203   : > { %v7333_v12 = vcombine.low %v3950_v31, %v3960_v30  ;;  %v4421_v19 = vsel %vm8667_vm7, %v4419_v24, %v4420_v59  ;;  %v4425_v51 = vsel %vm8667_vm7, %v7368_v18, %v4424_v55  ;;  %v3979_v40 = vrot.slane %v3978_v15, 4 }
 0x204   : > { %v7376_v39 = vcombine.low %v4418_v61, %v4421_v19  ;;  %v4426_v27 = vrot.slane %v4424_v55, 4  ;;  %v3988_v2 = vrot.slane %v3986_v3, 4  ;;  %v3995_v58 = vshll.u32 %v10281_v23, 16 }
 0x205   : > { %7921 = vmatprep.mubr.msk.bf16.mxu1 %vm4059_vm13, %v7333_v12  ;;  %v3999_v6 = vshrl.u32 %v10281_v23, 16  ;;  %v4005_v35 = vshll.u32 %v3839_v34, 16  ;;  %v3984_v60 = vsel %vm8513_vm4, %v3979_v40, %v3983_v1  ;;  %v4819_v46 = vshrl.u32 %v4794_v36, 16 }
 0x206   : > { %7961 = vmatprep.mubr.msk.bf16.mxu0 %vm4059_vm13, %v7376_v39  ;;  %v4428_v11 = vsel %vm8667_vm7, %v4426_v27, %v4427_v43  ;;  %v4822_v10 = vshll.u32 %v4794_v36, 16  ;;  %v7334_v37 = vcombine.low %v3974_v63, %v3984_v60  ;;  %v3991_v52 = vrot.slane %v3989_v49, 5  ;;  %v4797_v36 = vld [vmem:[#allocation2 + $0x18] sm:$0xf]  ;;  %v10344_v49 = vld [vmem:[#allocation2 + $0x1c] sm:$0xf] }
 0x207   : > { %v7377_v47 = vcombine.low %v4425_v51, %v4428_v11  ;;  %v3997_v9 = vrot.slane %v3995_v58, 5  ;;  %v4001_v34 = vrot.slane %v3999_v6, 4  ;;  %v4007_v32 = vrot.slane %v4005_v35, 5 }
 0x208   : > { %v4821_v45 = vrot.slane %v4819_v46, 4  ;;  %v4824_v33 = vrot.slane %v4822_v10, 5  ;;  %7922 = vmatmul.mubr.msk.bf16.gmra.mxu1 %vm4059_vm13, %v7334_v37  ;;  %v3992_v31 = vor.u32 %v3991_v52, %v3988_v2  ;;  %v4828_v14 = vshll.u32 %v10322_v54, 16  ;;  %v10348_v37 = vld [vmem:[#allocation2 + $0x20] sm:$0x1] }
 0x209   : > { %7962 = vmatmul.mubr.msk.bf16.gmra.mxu0 %vm4059_vm13, %v7377_v47  ;;  %v4832_v48 = vshrl.u32 %v10322_v54, 16  ;;  %v4838_v59 = vshll.u32 %v10324_v8, 16  ;;  %v4002_v16 = vor.u32 %v4001_v34, %v3997_v9  ;;  %v4010_v1 = vshrl.u32 %v10326_v13, 16 }
 0x20a   : > { %v4825_v28 = vor.u32 %v4824_v33, %v4821_v45  ;;  %v4013_v18 = vshll.u32 %v10326_v13, 16  ;;  %v3993_v20 = vrot.slane %v3992_v31, 4  ;;  %v4830_v61 = vrot.slane %v4828_v14, 5  ;;  %v10354_v45 = vld [vmem:[#allocation2 + $0x28] sm:$0xf] }
 0x20b   : > { %v4834_v24 = vrot.slane %v4832_v48, 4  ;;  %v4840_v55 = vrot.slane %v4838_v59, 5  ;;  %v4003_v30 = vrot.slane %v4002_v16, 4  ;;  %v4012_v43 = vrot.slane %v4010_v1, 4  ;;  %v10361_v1 = vld [vmem:[#allocation2 + $0x2c] sm:$0x1] }
 0x20c   : > { %v4826_v15 = vrot.slane %v4825_v28, 4  ;;  %v4015_v3 = vrot.slane %v4013_v18, 5  ;;  %v3998_v12 = vsel %vm8513_vm4, %v3993_v20, %v3997_v9  ;;  %v4019_v19 = vshll.u32 %v10288_v29, 16 }
 0x20d   : > { %v4835_v63 = vor.u32 %v4834_v24, %v4830_v61  ;;  %v4023_v51 = vshrl.u32 %v10288_v29, 16  ;;  %v4008_v40 = vsel %vm8513_vm4, %v4003_v30, %v4007_v32  ;;  %v4029_v2 = vshll.u32 %v10290_v26, 16  ;;  %v4800_v32 = vld [vmem:[#allocation2 + $0x24] sm:$0xf] }
 0x20e   : > { %v4831_v39 = vsel %vm8513_vm4, %v4826_v15, %v4830_v61  ;;  %v4016_v27 = vor.u32 %v4015_v3, %v4012_v43  ;;  %v7335_v58 = vcombine.low %v3998_v12, %v4008_v40  ;;  %v4021_v35 = vrot.slane %v4019_v19, 5  ;;  %v4803_v19 = vld [vmem:[#allocation2 + $0x30] sm:$0xf] }
 0x20f   : > { %v4836_v6 = vrot.slane %v4835_v63, 4  ;;  %v4025_v60 = vrot.slane %v4023_v51, 4  ;;  %v4031_v46 = vrot.slane %v4029_v2, 5  ;;  %v7345_v10 = vcombine.low %v10120_v17, %v10086_v7 }
 0x210   : > { %v4017_v11 = vrot.slane %v4016_v27, 4  ;;  %v4843_v47 = vshrl.u32 %v4797_v36, 16  ;;  %7925 = vmatprep.mubr.msk.bf16.mxu1 %vm4059_vm13, %v7335_v58  ;;  %v4846_v9 = vshll.u32 %v4797_v36, 16  ;;  %v4852_v34 = vshll.u32 %v10344_v49, 16  ;;  %v10368_v27 = vld [vmem:[#allocation2 + $0x34] sm:$0xf] }
 0x211   : > { %v4841_v52 = vsel %vm8513_vm4, %v4836_v6, %v4840_v55  ;;  %v4026_v26 = vor.u32 %v4025_v60, %v4021_v35  ;;  %v4856_v17 = vshrl.u32 %v10344_v49, 16  ;;  %v4862_v16 = vshll.u32 %v10348_v37, 16 }
 0x212   : > { %v7404_v33 = vcombine.low %v4831_v39, %v4841_v52  ;;  %v4022_v31 = vsel %vm8513_vm4, %v4017_v11, %v4021_v35  ;;  %v4845_v7 = vrot.slane %v4843_v47, 4  ;;  %v4848_v48 = vrot.slane %v4846_v9, 5  ;;  %v10378_v47 = vld [vmem:[#allocation2 + $0x38] sm:$0x1] }
 0x213   : > { %v4027_v14 = vrot.slane %v4026_v26, 4  ;;  %v4854_v59 = vrot.slane %v4852_v34, 5  ;;  %v4858_v28 = vrot.slane %v4856_v17, 4  ;;  %v4867_v18 = vshrl.u32 %v4800_v32, 16 }
 0x214   : > { %7985 = vmatprep.mubr.msk.bf16.mxu0 %vm4059_vm13, %v7404_v33  ;;  %v4870_v20 = vshll.u32 %v4800_v32, 16  ;;  %v4876_v61 = vshll.u32 %v10354_v45, 16  ;;  %v4849_v55 = vor.u32 %v4848_v48, %v4845_v7  ;;  %v4864_v30 = vrot.slane %v4862_v16, 5  ;;  %v10384_v33 = vld [vmem:[#allocation2 + $0x40] sm:$0xf] }
 0x215   : > { %v4032_v24 = vsel %vm8513_vm4, %v4027_v14, %v4031_v46  ;;  %v4880_v15 = vshrl.u32 %v10354_v45, 16  ;;  %v4859_v3 = vor.u32 %v4858_v28, %v4854_v59  ;;  %v4869_v12 = vrot.slane %v4867_v18, 4  ;;  %v10392_v16 = vld [vmem:[#allocation2 + $0x44] sm:$0x1] }
 0x216   : > { %v7336_v43 = vcombine.low %v4022_v31, %v4032_v24  ;;  %v4872_v63 = vrot.slane %v4870_v20, 5  ;;  %v4850_v51 = vrot.slane %v4849_v55, 4  ;;  %v4878_v36 = vrot.slane %v4876_v61, 5 }
 0x217   : > { %v4882_v40 = vrot.slane %v4880_v15, 4  ;;  %v4886_v39 = vshll.u32 %v10361_v1, 16  ;;  %v4860_v2 = vrot.slane %v4859_v3, 4  ;;  %v7346_v6 = vcombine.low %v10157_v22, %v10105_v42  ;;  %v4806_v22 = vld [vmem:[#allocation2 + $0x3c] sm:$0xf] }
 0x218   : > { %7926 = vmatmul.mubr.msk.bf16.gmra.mxu1 %vm4059_vm13, %v7336_v43  ;;  %v4873_v58 = vor.u32 %v4872_v63, %v4869_v12  ;;  %v7347_v35 = vcombine.low %v10202_v0, %v10190_v4  ;;  %v4855_v60 = vsel %vm8513_vm4, %v4850_v51, %v4854_v59  ;;  %v4891_v52 = vshrl.u32 %v4803_v19, 16  ;;  %v4809_v63 = vld [vmem:[#allocation2 + $0x48] sm:$0xf] }
 0x219   : > { %7931 = vmatprep.mubr.msk.bf16.mxu1 %vm4059_vm13, %v7345_v10  ;;  %v4883_v11 = vor.u32 %v4882_v40, %v4878_v36  ;;  %v4888_v46 = vrot.slane %v4886_v39, 5  ;;  %v4865_v26 = vsel %vm8513_vm4, %v4860_v2, %v4864_v30  ;;  %v4894_v34 = vshll.u32 %v4803_v19, 16  ;;  %v10398_v30 = vld [vmem:[%s11216_s3 + $0x14] sm:$0xf]  ;;  %v10406_v39 = vld [vmem:[#allocation2 + $0x4c] sm:$0xf] }
 0x21a   : > { %v4874_v9 = vrot.slane %v4873_v58, 4  ;;  %v4900_v42 = vshll.u32 %v10368_v27, 16  ;;  %v7405_v32 = vcombine.low %v4855_v60, %v4865_v26  ;;  %v4893_v0 = vrot.slane %v4891_v52, 4  ;;  %v10414_v52 = vld [vmem:[#allocation2 + $0x50] sm:$0x1] }
 0x21b   : > { %v4884_v4 = vrot.slane %v4883_v11, 4  ;;  %v4904_v10 = vshrl.u32 %v10368_v27, 16  ;;  %v4896_v7 = vrot.slane %v4894_v34, 5  ;;  %v4910_v14 = vshll.u32 %v10378_v47, 16  ;;  %v4812_v34 = vld [vmem:[#allocation2 + $0x54] sm:$0xf] }
 0x21c   : > { %v4879_v31 = vsel %vm8513_vm4, %v4874_v9, %v4878_v36  ;;  %v4902_v17 = vrot.slane %v4900_v42, 5  ;;  %7986 = vmatmul.mubr.msk.bf16.vlgmr.msra.gmra.mxu0 %vm4059_vm13, %v7405_v32  ;;  %v4915_v28 = vshrl.u32 %v4806_v22, 16  ;;  %v4918_v18 = vshll.u32 %v4806_v22, 16  ;;  %v10422_v32 = vld [vmem:[#allocation2 + $0x58] sm:$0xf] }
 0x21d   : > { %v4889_v48 = vsel %vm8513_vm4, %v4884_v4, %v4888_v46  ;;  %v4906_v59 = vrot.slane %v4904_v10, 4  ;;  %v4897_v61 = vor.u32 %v4896_v7, %v4893_v0  ;;  %v4912_v24 = vrot.slane %v4910_v14, 5  ;;  %v10428_v14 = vld [vmem:[#allocation2 + $0x5c] sm:$0x1] }
 0x21e   : > { %v7406_v20 = vcombine.low %v4879_v31, %v4889_v48  ;;  %v4924_v55 = vshll.u32 %v10384_v33, 16  ;;  %v4917_v43 = vrot.slane %v4915_v28, 4  ;;  %v4920_v3 = vrot.slane %v4918_v18, 5 }
 0x21f   : > { %v4907_v15 = vor.u32 %v4906_v59, %v4902_v17  ;;  %v4928_v12 = vshrl.u32 %v10384_v33, 16  ;;  %v4898_v19 = vrot.slane %v4897_v61, 4  ;;  %v4934_v36 = vshll.u32 %v10392_v16, 16 }
 0x220   : > { %7989 = vmatprep.mubr.msk.bf16.mxu0 %vm4059_vm13, %v7406_v20  ;;  %7932 = vmatmul.mubr.msk.bf16.vlgmr.msra.gmra.mxu1 %vm4059_vm13, %v7346_v6  ;;  %v4926_v51 = vrot.slane %v4924_v55, 5  ;;  %v7348_v40 = vcombine.low %v10214_v41, %v10181_v56  ;;  %v4921_v58 = vor.u32 %v4920_v3, %v4917_v43  ;;  %v7349_v11 = vcombine.low %v10249_v25, %v10231_v50  ;;  %v4815_v3 = vld [vmem:[#allocation2 + $0x60] sm:$0xf] }
 0x221   : > { %7966 = vmatpush3.bf16.msra.mxu1 %v9836_v57  ;;  %7935 = vmatprep.mubr.msk.bf16.mxu1 %vm4059_vm13, %v7347_v35  ;;  %v4908_v2 = vrot.slane %v4907_v15, 4  ;;  %v4930_v60 = vrot.slane %v4928_v12, 4  ;;  %v4903_v6 = vsel %vm8513_vm4, %v4898_v19, %v4902_v17  ;;  %v4936_v46 = vrot.slane %v4934_v36, 5  ;;  %v10437_v36 = vld [vmem:[#allocation2 + $0x64] sm:$0xf] }
 0x222   : > { %v4939_v26 = vshrl.u32 %v4809_v63, 16  ;;  %v4942_v56 = vshll.u32 %v4809_v63, 16  ;;  %8087 = vmatprep.subr.msk.bf16.mxu1 %vm11323_vm15, %v10398_v30  ;;  %v4922_v41 = vrot.slane %v4921_v58, 4  ;;  %v4948_v9 = vshll.u32 %v10406_v39, 16 }
 0x223   : > { %v4913_v57 = vsel %vm8513_vm4, %v4908_v2, %v4912_v24  ;;  %v4931_v35 = vor.u32 %v4930_v60, %v4926_v51  ;;  %v4952_v22 = vshrl.u32 %v10406_v39, 16  ;;  %v4958_v31 = vshll.u32 %v10414_v52, 16 }
 0x224   : > { %v7407_v50 = vcombine.low %v4903_v6, %v4913_v57  ;;  %v4941_v25 = vrot.slane %v4939_v26, 4  ;;  %v4944_v42 = vrot.slane %v4942_v56, 5  ;;  %v4927_v4 = vsel %vm8513_vm4, %v4922_v41, %v4926_v51 }
 0x225   : > { %v4932_v0 = vrot.slane %v4931_v35, 4  ;;  %v4950_v10 = vrot.slane %v4948_v9, 5  ;;  %v4954_v17 = vrot.slane %v4952_v22, 4  ;;  %v4963_v48 = vshrl.u32 %v4812_v34, 16 }
 0x226   : > { %7990 = vmatmul.mubr.msk.bf16.gmra.mxu0 %vm4059_vm13, %v7407_v50  ;;  %v4945_v7 = vor.u32 %v4944_v42, %v4941_v25  ;;  %v4966_v59 = vshll.u32 %v4812_v34, 16  ;;  %v4960_v18 = vrot.slane %v4958_v31, 5  ;;  %v4972_v20 = vshll.u32 %v10422_v32, 16 }
 0x227   : > { %v4937_v28 = vsel %vm8513_vm4, %v4932_v0, %v4936_v46  ;;  %v4976_v61 = vshrl.u32 %v10422_v32, 16  ;;  %v4955_v15 = vor.u32 %v4954_v17, %v4950_v10  ;;  %v4965_v43 = vrot.slane %v4963_v48, 4 }
 0x228   : > { %v7408_v24 = vcombine.low %v4927_v4, %v4937_v28  ;;  %7936 = vmatmul.mubr.msk.bf16.gmra.mxu1 %vm4059_vm13, %v7348_v40  ;;  %v4946_v55 = vrot.slane %v4945_v7, 4  ;;  %v4968_v12 = vrot.slane %v4966_v59, 5  ;;  %v4974_v63 = vrot.slane %v4972_v20, 5  ;;  %v7487_v4 = vld [vmem:[%s11216_s3 + $0x20] sm:$0xf] }
 0x229   : > { %7939 = vmatprep.mubr.msk.bf16.mxu1 %vm4059_vm13, %v7349_v11  ;;  %v4978_v19 = vrot.slane %v4976_v61, 4  ;;  %v4982_v51 = vshll.u32 %v10428_v14, 16  ;;  %v4956_v58 = vrot.slane %v4955_v15, 4  ;;  %v7350_v40 = vcombine.low %v10262_v38, %v10245_v53  ;;  %v10444_v11 = vld [vmem:[#allocation2 + $0x68] sm:$0x1] }
 0x22a   : > { %7993 = vmatprep.mubr.msk.bf16.mxu0 %vm4059_vm13, %v7408_v24  ;;  %v4951_v2 = vsel %vm8513_vm4, %v4946_v55, %v4950_v10  ;;  %v4969_v60 = vor.u32 %v4968_v12, %v4965_v43  ;;  %v4987_v26 = vshrl.u32 %v4815_v3, 16  ;;  %v4990_v57 = vshll.u32 %v4815_v3, 16  ;;  %v8203_v3 = vld [vmem:[#allocation2 + $0x18] sm:$0xff]  }
 0x22b   : > { %v4979_v6 = vor.u32 %v4978_v19, %v4974_v63  ;;  %v4984_v46 = vrot.slane %v4982_v51, 5  ;;  %v4961_v56 = vsel %vm8513_vm4, %v4956_v58, %v4960_v18  ;;  %v4996_v41 = vshll.u32 %v10437_v36, 16  ;;  %v5176_v18 = vld [vmem:[#allocation2 + $0xc] sm:$0xe]  ;;  %v5177_v51 = vld [vmem:[#allocation2 + $0x18] sm:$0xe] }
 0x22c   : > { %v5000_v35 = vshrl.u32 %v10437_v36, 16  ;;  %v7409_v9 = vcombine.low %v4951_v2, %v4961_v56  ;;  %v4970_v34 = vrot.slane %v4969_v60, 4  ;;  %v4989_v25 = vrot.slane %v4987_v26, 4 }
 0x22d   : > { %v4980_v50 = vrot.slane %v4979_v6, 4  ;;  %v4992_v42 = vrot.slane %v4990_v57, 5  ;;  %v4998_v53 = vrot.slane %v4996_v41, 5  ;;  %v5006_v22 = vshll.u32 %v10444_v11, 16  ;;  %v8207_v41 = vld [vmem:[#allocation2 + $0x30] sm:$0xff]  }
 0x22e   : > { %v5002_v38 = vrot.slane %v5000_v35, 4  ;;  %7994 = vmatmul.mubr.msk.bf16.gmra.mxu0 %vm4059_vm13, %v7409_v9  ;;  %v4975_v0 = vsel %vm8513_vm4, %v4970_v34, %v4974_v63  ;;  %v7351_v31 = vcombine.low %v10298_v62, %v10281_v23  ;;  %v5514_v7 = vsel %vm11324_vm9, %v10164_v44, 0  ;;  %v8208_v35 = vld [vmem:[#allocation2 + $0x18] sm:$0xff]   ;;  %v5179_v9 = vld [vmem:[#allocation2 + $0x30] sm:$0xe]  ;;  %v8209_v34 = vld [vmem:[#allocation2 + $0x24] sm:$0xff]  }
 0x22f   : > { %v4985_v10 = vsel %vm8513_vm4, %v4980_v50, %v4984_v46  ;;  %v4993_v48 = vor.u32 %v4992_v42, %v4989_v25  ;;  %v5008_v28 = vrot.slane %v5006_v22, 5  ;;  %8020 = vmatpush3.bf16.msra.mxu0 %v5514_v7  ;;  %v5210_v23 = vrot.slane %v10322_v54, 5  ;;  %v10510_v50 = vld [vmem:[%s11216_s3 + $0x1c] sm:$0xf] }
 0x230   : > { %v7410_v17 = vcombine.low %v4975_v0, %v4985_v10  ;;  %7940 = vmatmul.mubr.msk.bf16.gmra.mxu1 %vm4059_vm13, %v7350_v40  ;;  %v5003_v59 = vor.u32 %v5002_v38, %v4998_v53  ;;  %8090 = vmatprep.subr.msk.bf16.mxu0 %vm11325_vm5, %v7487_v4  ;;  %v5213_v44 = vrot.slane %v10324_v8, 5  ;;  %v7420_v55 = vrot.slane %v5176_v18, 9  ;;  %v8205_v8 = vld [vmem:[#allocation2 + $0xc] sm:$0xff]   ;;  %v5178_v40 = vld [vmem:[#allocation2 + $0x24] sm:$0xe] }
 0x231   : > { %7943 = vmatprep.mubr.msk.bf16.mxu1 %vm4059_vm13, %v7351_v31  ;;  %v4994_v20 = vrot.slane %v4993_v48, 4  ;;  %v5212_v15 = vrot.slane %v5210_v23, 4  ;;  %v7352_v12 = vcombine.low %v10326_v13, %v10288_v29  ;;  %v5217_v29 = vrot.slane %v10344_v49, 5  ;;  %v8206_v49 = vld [vmem:[#allocation2 + $0x24] sm:$0xff]   ;;  %v5180_v0 = vld [vmem:[#allocation2 + $0x3c] sm:$0xe] }
 0x232   : > { %7997 = vmatprep.mubr.msk.bf16.mxu0 %vm4059_vm13, %v7410_v17  ;;  %v5004_v61 = vrot.slane %v5003_v59, 4  ;;  %v10477_v63 = vsel %vm8667_vm7, %v7420_v55, %v5210_v23  ;;  %v5220_v13 = vrot.slane %v10348_v37, 5  ;;  %v7421_v2 = vrot.slane %v5177_v51, 9  ;;  %v8210_v59 = vld [vmem:[#allocation2 + $0x3c] sm:$0xff]   ;;  %v8211_v18 = vld [vmem:[#allocation2 + $0x48] sm:$0xff]  }
 0x233   : > { %v4999_v62 = vsel %vm8513_vm4, %v4994_v20, %v4998_v53  ;;  %v10481_v54 = vsel %vm8667_vm7, %v5212_v15, %v5213_v44  ;;  %v5219_v58 = vrot.slane %v5217_v29, 4  ;;  %v5224_v60 = vrot.slane %v10354_v45, 5  ;;  %v8212_v20 = vld [vmem:[#allocation2 + $0x30] sm:$0xff]   ;;  %v8213_v44 = vld [vmem:[#allocation2 + $0x3c] sm:$0xff]  }
 0x234   : > { %v5009_v24 = vsel %vm8513_vm4, %v5004_v61, %v5008_v28  ;;  %v7429_v19 = vcombine.low %v10477_v63, %v10481_v54  ;;  %v5227_v6 = vrot.slane %v10361_v1, 5  ;;  %v10495_v46 = vsel %vm8667_vm7, %v7421_v2, %v5217_v29  ;;  %v5181_v28 = vld [vmem:[#allocation2 + $0x48] sm:$0xe]  ;;  %v5182_v15 = vld [vmem:[#allocation2 + $0x54] sm:$0xe] }
 0x235   : > { %v7411_v43 = vcombine.low %v4999_v62, %v5009_v24  ;;  %v10499_v26 = vsel %vm8667_vm7, %v5219_v58, %v5220_v13  ;;  %v7422_v56 = vrot.slane %v5178_v40, 9  ;;  %v5226_v57 = vrot.slane %v5224_v60, 4  ;;  %v5183_v13 = vld [vmem:[#allocation2 + $0x60] sm:$0xe]  ;;  %v10571_v2 = vld [vmem:[#allocation2 + $0x20] sm:$0x1] }
 0x236   : > { %v7430_v37 = vcombine.low %v10495_v46, %v10499_v26  ;;  %v5315_v45 = vsel %vm11326_vm3, %v10398_v30, 0  ;;  %v6150_v1 = vsel %vm11327_vm1, %v7487_v4, 0  ;;  %v5231_v30 = vrot.slane %v10368_v27, 5  ;;  %v8214_v58 = vld [vmem:[#allocation2 + $0x54] sm:$0xff]   ;;  %v10637_v54 = vld [vmem:[#allocation2 + $0x50] sm:$0x1] }
 0x237   : > { %7998 = vmatmul.mubr.msk.bf16.gmra.mxu0 %vm4059_vm13, %v7411_v43  ;;  %v10514_v25 = vsel %vm8667_vm7, %v7422_v56, %v5224_v60  ;;  %v10518_v42 = vsel %vm8667_vm7, %v5226_v57, %v5227_v6  ;;  %v5234_v53 = vrot.slane %v10378_v47, 5  ;;  %v7423_v22 = vrot.slane %v5179_v9, 9  ;;  %v8216_v56 = vld [vmem:[#allocation2 + $0x48] sm:$0xff]   ;;  %v6016_v46 = vld [vmem:[#allocation2 + $0x54] sm:$0xe] }
 0x238   : > { %8021 = vmatprep.mubr.msk.bf16.mxu0 %vm4059_vm13, %v8203_v3  ;;  %7944 = vmatmul.mubr.msk.bf16.gmra.mxu1 %vm4059_vm13, %v7352_v12  ;;  %v7431_v38 = vcombine.low %v10514_v25, %v10518_v42  ;;  %v5233_v4 = vrot.slane %v5231_v30, 4  ;;  %v5238_v27 = vrot.slane %v10384_v33, 5  ;;  %v5241_v47 = vrot.slane %v10392_v16, 5 }
 0x239   : > { %7967 = vmatprep.mubr.msk.bf16.mxu1 %vm4059_vm13, %v8205_v8  ;;  %v10533_v10 = vsel %vm8667_vm7, %v7423_v22, %v5231_v30  ;;  %v7424_v17 = vrot.slane %v5180_v0, 9  ;;  %v5245_v61 = vrot.slane %v10406_v39, 5  ;;  %v5248_v23 = vrot.slane %v10414_v52, 5  ;;  %v10559_v52 = vld [vmem:[#allocation2 + $0x1c] sm:$0xf] }
 0x23a   : > { %v10537_v31 = vsel %vm8667_vm7, %v5233_v4, %v5234_v53  ;;  %v5240_v48 = vrot.slane %v5238_v27, 4  ;;  %v7425_v24 = vrot.slane %v5181_v28, 9  ;;  %v5252_v43 = vrot.slane %v10422_v32, 5  ;;  %v10599_v30 = vld [vmem:[#allocation2 + $0x28] sm:$0xf] }
 0x23b   : > { %v7432_v7 = vcombine.low %v10533_v10, %v10537_v31  ;;  %v10543_v33 = vsel %vm8667_vm7, %v7424_v17, %v5238_v27  ;;  %v5247_v55 = vrot.slane %v5245_v61, 4  ;;  %v5255_v39 = vrot.slane %v10428_v14, 5  ;;  %v10603_v22 = vld [vmem:[#allocation2 + $0x34] sm:$0xf]  ;;  %v10607_v27 = vld [vmem:[#allocation2 + $0x2c] sm:$0x1] }
 0x23c   : > { %v10547_v16 = vsel %vm8667_vm7, %v5240_v48, %v5241_v47  ;;  %v10563_v3 = vsel %vm8667_vm7, %v7425_v24, %v5245_v61  ;;  %v7426_v51 = vrot.slane %v5182_v15, 9  ;;  %v5254_v29 = vrot.slane %v5252_v43, 4  ;;  %v10610_v17 = vld [vmem:[#allocation2 + $0x38] sm:$0x1]  ;;  %v8218_v48 = vld [vmem:[#allocation2 + $0x6c] sm:$0xff]  }
 0x23d   : > { %v7433_v62 = vcombine.low %v10543_v33, %v10547_v16  ;;  %v10567_v12 = vsel %vm8667_vm7, %v5247_v55, %v5248_v23  ;;  %v5259_v32 = vrot.slane %v10437_v36, 5  ;;  %v5262_v14 = vrot.slane %v10444_v11, 5  ;;  %v8217_v11 = vld [vmem:[#allocation2 + $0x54] sm:$0xff]   ;;  %v6012_v23 = vld [vmem:[#allocation2 + $0x24] sm:$0xe] }
 0x23e   : > { %v7434_v8 = vcombine.low %v10563_v3, %v10567_v12  ;;  %v6045_v40 = vrot.slane %v10559_v52, 5  ;;  %v10578_v60 = vsel %vm8667_vm7, %v7426_v51, %v5252_v43  ;;  %v10582_v6 = vsel %vm8667_vm7, %v5254_v29, %v5255_v39  ;;  %v6013_v55 = vld [vmem:[#allocation2 + $0x30] sm:$0xe]  ;;  %v10620_v15 = vld [vmem:[#allocation2 + $0x40] sm:$0xf] }
 0x23f   : > { %8022 = vmatmul.mubr.msk.bf16.vlgmr.msra.gmra.mxu0 %vm4059_vm13, %v8206_v49  ;;  %v8215_v49 = vld [vmem:[#allocation2 + $0x60] sm:$0xff]   ;;  %v7435_v57 = vcombine.low %v10578_v60, %v10582_v6  ;;  %v5261_v36 = vrot.slane %v5259_v32, 4  ;;  %v6052_v47 = vrot.slane %v10599_v30, 5  ;;  %v6059_v28 = vrot.slane %v10603_v22, 5 }
 0x240   : > { %8025 = vmatprep.mubr.msk.bf16.mxu0 %vm4059_vm13, %v8207_v41  ;;  %7968 = vmatmul.mubr.msk.bf16.vlgmr.msra.gmra.mxu1 %vm4059_vm13, %v8208_v35  ;;  %v7427_v41 = vrot.slane %v5183_v13, 9  ;;  %v6048_v35 = vrot.slane %v10571_v2, 5  ;;  %v6055_v61 = vrot.slane %v10607_v27, 5  ;;  %v7480_v39 = vrot.slane %v6012_v23, 9  ;;  %v10628_v29 = vld [vmem:[#allocation2 + $0x44] sm:$0x1] }
 0x241   : > { %8002 = vmatpush3.bf16.msra.mxu1 %v5315_v45  ;;  %7971 = vmatprep.mubr.msk.bf16.mxu1 %vm4059_vm13, %v8209_v34  ;;  %v6011_v45 = vld [vmem:[#allocation2 + $0x18] sm:$0xe]  ;;  %v10596_v9 = vsel %vm8667_vm7, %v5261_v36, %v5262_v14  ;;  %v6047_v34 = vrot.slane %v6045_v40, 4  ;;  %v6054_v24 = vrot.slane %v6052_v47, 4  ;;  %v6061_v43 = vrot.slane %v6059_v28, 4 }
 0x242   : > { %8056 = vmatpush3.bf16.msra.mxu0 %v6150_v1  ;;  %8089 = vmatprep.subr.msk.bf16.mxu1 %vm11328_vm2, %v10510_v50  ;;  %v10592_v1 = vsel %vm8667_vm7, %v7427_v41, %v5259_v32  ;;  %v7479_v4 = vrot.slane %v6011_v45, 9  ;;  %v10630_v13 = vld [vmem:[#allocation2 + $0x4c] sm:$0xf]  ;;  %v7481_v32 = vrot.slane %v6013_v55, 9  ;;  %v6053_v63 = vsel %vm8667_vm7, %v7480_v39, %v6052_v47  ;;  %v6015_v45 = vld [vmem:[#allocation2 + $0x48] sm:$0xe] }
 0x243   : > { %v7436_v53 = vcombine.low %v10592_v1, %v10596_v9  ;;  %v6049_v0 = vsel %vm8667_vm7, %v6047_v34, %v6048_v35  ;;  %v6056_v51 = vsel %vm8667_vm7, %v6054_v24, %v6055_v61  ;;  %v5896_v36 = vsel %vm11329_vm0, %v10510_v50, 0  ;;  %v10654_v47 = vld [vmem:[#allocation2 + $0x64] sm:$0xf]  ;;  %v6017_v24 = vld [vmem:[#allocation2 + $0x60] sm:$0xe] }
 0x244   : > { %v6076_v34 = vrot.slane %v10637_v54, 5  ;;  %v7483_v26 = vrot.slane %v6015_v45, 9  ;;  %v5632_v55 = vld [vmem:[#allocation2 + $0x24] sm:$0xf]  ;;  %v5687_v33 = vshll.u32 %v10599_v30, 16  ;;  %v5691_v16 = vshrl.u32 %v10599_v30, 16 }
 0x245   : > { %v5697_v3 = vshll.u32 %v10607_v27, 16  ;;  %v5721_v6 = vshll.u32 %v10610_v17, 16  ;;  %v5739_v27 = vshrl.u32 %v10620_v15, 16  ;;  %vm6779_vm6 = vcmask 1042434  }
 0x246   : > { %vm6781_vm10 = vcmask 1043459   ;;  %vm6783_vm11 = vcmask 1044484   ;;  %vm6785_vm14 = vcmask 1045509   ;;  %vm6787_vm12 = vcmask 1046534  }
 0x247   : > { %8026 = vmatmul.mubr.msk.bf16.gmra.mxu0 %vm4059_vm13, %v8210_v59  ;;  %v6046_v59 = vsel %vm8667_vm7, %v7479_v4, %v6045_v40  ;;  %v6060_v40 = vsel %vm8667_vm7, %v7481_v32, %v6059_v28  ;;  %v5629_v4 = vld [vmem:[#allocation2 + $0x18] sm:$0xf]  ;;  %v10662_v28 = vld [vmem:[#allocation2 + $0x5c] sm:$0x1]  ;;  %v10676_v32 = vld [vmem:[#allocation2 + $0x70] sm:$0xf] }
 0x248   : > { %8029 = vmatprep.mubr.msk.bf16.mxu0 %vm4059_vm13, %v8211_v18  ;;  %7972 = vmatmul.mubr.msk.bf16.gmra.mxu1 %vm4059_vm13, %v8212_v20  ;;  %v7488_v18 = vcombine.low %v6046_v59, %v6049_v0  ;;  %v8219_v20 = vld [vmem:[#allocation2 + $0x60] sm:$0xff]   ;;  %v10652_v0 = vld [vmem:[#allocation2 + $0x58] sm:$0xf]  ;;  %v6083_v39 = vrot.slane %v10662_v28, 5  ;;  %vm6789_vm8 = vcmask 1047559  }
 0x249   : > { %7975 = vmatprep.mubr.msk.bf16.mxu1 %vm4059_vm13, %v8213_v44  ;;  %v6062_v44 = vrot.slane %v10610_v17, 5  ;;  %v6080_v42 = vrot.slane %v10652_v0, 5 }
 0x24b   : > { %v6063_v14 = vsel %vm8667_vm7, %v6061_v43, %v6062_v44  ;;  %v7484_v43 = vrot.slane %v6016_v46, 9 }
 0x24c   : > { %v7490_v41 = vcombine.low %v6060_v40, %v6063_v14  ;;  %v5663_v14 = vshll.u32 %v10559_v52, 16 }
 0x24d   : > { %v6081_v45 = vsel %vm8667_vm7, %v7484_v43, %v6080_v42  ;;  %v5638_v43 = vld [vmem:[#allocation2 + $0x3c] sm:$0xf] }
 0x24e   : > { %v5665_v31 = vrot.slane %v5663_v14, 5 }
 0x24f   : > { %8030 = vmatmul.mubr.msk.bf16.gmra.mxu0 %vm4059_vm13, %v8214_v58  ;;  %v6066_v58 = vrot.slane %v10620_v15, 5 }
 0x250   : > { %8033 = vmatprep.mubr.msk.bf16.mxu0 %vm4059_vm13, %v8215_v49  ;;  %7976 = vmatmul.mubr.msk.bf16.gmra.mxu1 %vm4059_vm13, %v8216_v56  ;;  %v6069_v49 = vrot.slane %v10628_v29, 5  ;;  %v6073_v56 = vrot.slane %v10630_v13, 5 }
 0x251   : > { %7979 = vmatprep.mubr.msk.bf16.mxu1 %vm4059_vm13, %v8217_v11  ;;  %v6014_v11 = vld [vmem:[#allocation2 + $0x3c] sm:$0xe]  ;;  %v6068_v35 = vrot.slane %v6066_v58, 4 }
 0x252   : > { %v7482_v50 = vrot.slane %v6014_v11, 9  ;;  %v6075_v59 = vrot.slane %v6073_v56, 4  ;;  %v6074_v44 = vsel %vm8667_vm7, %v7483_v26, %v6073_v56  ;;  %v6082_v56 = vrot.slane %v6080_v42, 4 }
 0x253   : > { %v5681_v11 = vshll.u32 %v5632_v55, 16  ;;  %v5673_v42 = vshll.u32 %v10571_v2, 16  ;;  %v5693_v2 = vrot.slane %v5691_v16, 4  ;;  %v5644_v16 = vld [vmem:[#allocation2 + $0x54] sm:$0xf] }
 0x254   : > { %v6067_v61 = vsel %vm8667_vm7, %v7482_v50, %v6066_v58  ;;  %v6077_v25 = vsel %vm8667_vm7, %v6075_v59, %v6076_v34  ;;  %v7485_v34 = vrot.slane %v6017_v24, 9  ;;  %v5711_v24 = vshll.u32 %v10603_v22, 16 }
 0x255   : > { %v7492_v58 = vcombine.low %v6074_v44, %v6077_v25 }
 0x257   : > { %8034 = vmatmul.mubr.msk.bf16.gmra.mxu0 %vm4059_vm13, %v8218_v48  ;;  %v6070_v48 = vsel %vm8667_vm7, %v6068_v35, %v6069_v49  ;;  %v5667_v49 = vshrl.u32 %v10559_v52, 16  ;;  %v5635_v35 = vld [vmem:[#allocation2 + $0x30] sm:$0xf]  ;;  %v6094_v52 = vrot.slane %v10676_v32, 5 }
 0x258   : > { %8057 = vmatprep.mubr.msk.bf16.mxu0 %vm4059_vm13, %v7488_v18  ;;  %7980 = vmatmul.mubr.msk.bf16.gmra.mxu1 %vm4059_vm13, %v8219_v20  ;;  %v5654_v18 = vshrl.u32 %v5629_v4, 16  ;;  %v5657_v20 = vshll.u32 %v5629_v4, 16  ;;  %v7491_v23 = vcombine.low %v6067_v61, %v6070_v48  ;;  %v6084_v4 = vsel %vm8667_vm7, %v6082_v56, %v6083_v39 }
 0x259   : > { %8003 = vmatprep.mubr.msk.bf16.mxu1 %vm4059_vm13, %v7429_v19  ;;  %v7489_v19 = vcombine.low %v6053_v63, %v6056_v51  ;;  %v10679_v63 = vld [vmem:[#allocation2 + $0x74] sm:$0x1]  ;;  %v5669_v59 = vrot.slane %v5667_v49, 4  ;;  %v5702_v46 = vshrl.u32 %v5635_v35, 16  ;;  %v5705_v26 = vshll.u32 %v5635_v35, 16 }
 0x25a   : > { %v5659_v40 = vrot.slane %v5657_v20, 5  ;;  %v6097_v10 = vrot.slane %v10679_v63, 5  ;;  %v5683_v20 = vrot.slane %v5681_v11, 5  ;;  %v6096_v25 = vrot.slane %v6094_v52, 4  ;;  %v5641_v11 = vld [vmem:[#allocation2 + $0x48] sm:$0xf] }
 0x25b   : > { %v5704_v14 = vrot.slane %v5702_v46, 4  ;;  %v5707_v30 = vrot.slane %v5705_v26, 5  ;;  %v5713_v56 = vrot.slane %v5711_v24, 5  ;;  %v5763_v46 = vshrl.u32 %v10630_v13, 16 }
 0x25c   : > { %v6098_v39 = vsel %vm8667_vm7, %v6096_v25, %v6097_v10  ;;  %v5723_v26 = vrot.slane %v5721_v6, 5  ;;  %v5741_v25 = vrot.slane %v5739_v27, 4  ;;  %v5745_v24 = vshll.u32 %v10628_v29, 16 }
 0x25d   : > { %v5708_v12 = vor.u32 %v5707_v30, %v5704_v14  ;;  %v5793_v6 = vshll.u32 %v10662_v28, 16  ;;  %v5831_v28 = vshll.u32 %v10676_v32, 16 }
 0x25f   : > { %8058 = vmatmul.mubr.msk.bf16.vlgmr.msra.gmra.mxu0 %vm4059_vm13, %v7489_v19  ;;  %v5656_v19 = vrot.slane %v5654_v18, 4 }
 0x260   : > { %8061 = vmatprep.mubr.msk.bf16.mxu0 %vm4059_vm13, %v7490_v41  ;;  %8004 = vmatmul.mubr.msk.bf16.vlgmr.msra.gmra.mxu1 %vm4059_vm13, %v7430_v37  ;;  %v10664_v37 = vld [vmem:[#allocation2 + $0x68] sm:$0x1] }
 0x261   : > { %8038 = vmatpush3.bf16.msra.mxu1 %v5896_v36  ;;  %8007 = vmatprep.mubr.msk.bf16.mxu1 %vm4059_vm13, %v7431_v38  ;;  %v6087_v38 = vrot.slane %v10654_v47, 5  ;;  %v6090_v51 = vrot.slane %v10664_v37, 5  ;;  %v5678_v36 = vshrl.u32 %v5632_v55, 16  ;;  %v5660_v48 = vor.u32 %v5659_v40, %v5656_v19 }
 0x262   : > { %v5715_v55 = vshrl.u32 %v10603_v22, 16  ;;  %v10710_v19 = vrot.slane %v5687_v33, 5  ;;  %v5675_v22 = vrot.slane %v5673_v42, 5  ;;  %v5726_v40 = vshrl.u32 %v5638_v43, 16  ;;  %v5647_v42 = vld [vmem:[#allocation2 + $0x60] sm:$0xf] }
 0x263   : > { %v6089_v41 = vrot.slane %v6087_v38, 4  ;;  %v5680_v18 = vrot.slane %v5678_v36, 4  ;;  %v6088_v61 = vsel %vm8667_vm7, %v7485_v34, %v6087_v38  ;;  %v5729_v36 = vshll.u32 %v5638_v43, 16 }
 0x264   : > { %v5694_v60 = vor.u32 %v5693_v2, %v10710_v19  ;;  %v5777_v43 = vshll.u32 %v5644_v16, 16  ;;  %v5798_v14 = vshrl.u32 %v5647_v42, 16  ;;  %v5801_v30 = vshll.u32 %v5647_v42, 16 }
 0x265   : > { %v6091_v50 = vsel %vm8667_vm7, %v6089_v41, %v6090_v51  ;;  %v5670_v51 = vor.u32 %v5669_v59, %v5665_v31  ;;  %v5684_v38 = vor.u32 %v5683_v20, %v5680_v18  ;;  %v5717_v41 = vrot.slane %v5715_v55, 4 }
 0x266   : > { %v5731_v10 = vrot.slane %v5729_v36, 5  ;;  %v5709_v59 = vrot.slane %v5708_v12, 4  ;;  %v5774_v55 = vshrl.u32 %v5644_v16, 16  ;;  %v5787_v2 = vshrl.u32 %v10652_v0, 16  ;;  %v5650_v12 = vld [vmem:[#allocation2 + $0x6c] sm:$0xf] }
 0x267   : > { %8062 = vmatmul.mubr.msk.bf16.gmra.mxu0 %vm4059_vm13, %v7491_v23  ;;  %v7494_v23 = vcombine.low %v6088_v61, %v6091_v50  ;;  %v5685_v34 = vrot.slane %v5684_v38, 4  ;;  %v5718_v50 = vor.u32 %v5717_v41, %v5713_v56  ;;  %v5747_v41 = vrot.slane %v5745_v24, 5 }
 0x268   : > { %8065 = vmatprep.mubr.msk.bf16.mxu0 %vm4059_vm13, %v7492_v58  ;;  %8008 = vmatmul.mubr.msk.bf16.gmra.mxu1 %vm4059_vm13, %v7432_v7  ;;  %v6018_v7 = vld [vmem:[#allocation2 + $0x6c] sm:$0xe]  ;;  %v5661_v58 = vrot.slane %v5660_v48, 4  ;;  %v5699_v48 = vrot.slane %v5697_v3, 5  ;;  %v5714_v9 = vsel %vm8513_vm4, %v5709_v59, %v5713_v56  ;;  %v5811_v56 = vshrl.u32 %v10654_v47, 16 }
 0x269   : > { %8011 = vmatprep.mubr.msk.bf16.mxu1 %vm4059_vm13, %v7433_v62  ;;  %v7493_v62 = vcombine.low %v6081_v45, %v6084_v4  ;;  %v7486_v44 = vrot.slane %v6018_v7, 9  ;;  %v5671_v45 = vrot.slane %v5670_v51, 4  ;;  %v5753_v4 = vshll.u32 %v5641_v11, 16 }
 0x26a   : > { %v5735_v7 = vshll.u32 %v10620_v15, 16  ;;  %v5690_v18 = vsel %vm8513_vm4, %v5685_v34, %v10710_v19  ;;  %v5695_v15 = vrot.slane %v5694_v60, 4  ;;  %v5769_v51 = vshll.u32 %v10637_v54, 16 }
 0x26b   : > { %v6095_v49 = vsel %vm8667_vm7, %v7486_v44, %v6094_v52  ;;  %v5676_v21 = vsel %vm8513_vm4, %v5671_v45, %v5675_v22  ;;  %v5750_v52 = vshrl.u32 %v5641_v11, 16  ;;  %v5755_v33 = vrot.slane %v5753_v4, 5 }
 0x26c   : > { %v7495_v35 = vcombine.low %v6095_v49, %v6098_v39  ;;  %v5737_v61 = vrot.slane %v5735_v7, 5  ;;  %v5700_v1 = vsel %vm8513_vm4, %v5695_v15, %v5699_v48  ;;  %v5783_v19 = vshll.u32 %v10652_v0, 16 }
 0x26d   : > { %v5752_v20 = vrot.slane %v5750_v52, 4  ;;  %v7464_v22 = vcombine.low %v5690_v18, %v5700_v1  ;;  %v5807_v49 = vshll.u32 %v10654_v47, 16  ;;  %v5776_v36 = vrot.slane %v5774_v55, 4 }
 0x26e   : > { %v5742_v38 = vor.u32 %v5741_v25, %v5737_v61  ;;  %v5779_v11 = vrot.slane %v5777_v43, 5  ;;  %v5800_v45 = vrot.slane %v5798_v14, 4  ;;  %v5803_v3 = vrot.slane %v5801_v30, 5 }
 0x26f   : > { %8066 = vmatmul.mubr.msk.bf16.gmra.mxu0 %vm4059_vm13, %v7493_v62  ;;  %v5756_v39 = vor.u32 %v5755_v33, %v5752_v20  ;;  %v5785_v34 = vrot.slane %v5783_v19, 5  ;;  %v5789_v60 = vrot.slane %v5787_v2, 4  ;;  %v5817_v59 = vshll.u32 %v10664_v37, 16 }
 0x270   : > { %8069 = vmatprep.mubr.msk.bf16.mxu0 %vm4059_vm13, %v7494_v23  ;;  %8012 = vmatmul.mubr.msk.bf16.gmra.mxu1 %vm4059_vm13, %v7434_v8  ;;  %v5666_v8 = vsel %vm8513_vm4, %v5661_v58, %v5665_v31  ;;  %v5759_v31 = vshll.u32 %v10630_v13, 16  ;;  %v5719_v13 = vrot.slane %v5718_v50, 4  ;;  %v5765_v23 = vrot.slane %v5763_v46, 4 }
 0x271   : > { %8015 = vmatprep.mubr.msk.bf16.mxu1 %vm4059_vm13, %v7435_v57  ;;  %v5728_v57 = vrot.slane %v5726_v40, 4  ;;  %v7463_v17 = vcombine.low %v5666_v8, %v5676_v21  ;;  %v5757_v54 = vrot.slane %v5756_v39, 4  ;;  %v5743_v8 = vrot.slane %v5742_v38, 4 }
 0x272   : > { %v5724_v44 = vsel %vm8513_vm4, %v5719_v13, %v5723_v26  ;;  %v5809_v21 = vrot.slane %v5807_v49, 5  ;;  %v5780_v4 = vor.u32 %v5779_v11, %v5776_v36  ;;  %v5822_v50 = vshrl.u32 %v5650_v12, 16 }
 0x273   : > { %v5732_v62 = vor.u32 %v5731_v10, %v5728_v57  ;;  %v7465_v29 = vcombine.low %v5714_v9, %v5724_v44  ;;  %v5813_v57 = vrot.slane %v5811_v56, 4  ;;  %v5748_v52 = vsel %vm8513_vm4, %v5743_v8, %v5747_v41 }
 0x274   : > { %v5825_v10 = vshll.u32 %v5650_v12, 16  ;;  %v5804_v48 = vor.u32 %v5803_v3, %v5800_v45  ;;  %v5835_v46 = vshrl.u32 %v10676_v32, 16  ;;  %v5795_v26 = vrot.slane %v5793_v6, 5 }
 0x275   : > { %v5733_v58 = vrot.slane %v5732_v62, 4  ;;  %v5814_v18 = vor.u32 %v5813_v57, %v5809_v21  ;;  %v5781_v20 = vrot.slane %v5780_v4, 4  ;;  %v5824_v33 = vrot.slane %v5822_v50, 4 }
 0x276   : > { %v5827_v16 = vrot.slane %v5825_v10, 5  ;;  %v5805_v13 = vrot.slane %v5804_v48, 4  ;;  %v5819_v62 = vrot.slane %v5817_v59, 5  ;;  %v5833_v37 = vrot.slane %v5831_v28, 5 }
 0x277   : > { %8070 = vmatmul.mubr.msk.bf16.gmra.mxu0 %vm4059_vm13, %v7495_v35  ;;  %v5771_v35 = vrot.slane %v5769_v51, 5  ;;  %v5738_v0 = vsel %vm8513_vm4, %v5733_v58, %v5737_v61  ;;  %v5837_v25 = vrot.slane %v5835_v46, 4  ;;  %v5815_v42 = vrot.slane %v5814_v18, 4 }
 0x278   : > { %8016 = vmatmul.mubr.msk.bf16.gmra.mxu1 %vm4059_vm13, %v7436_v53  ;;  %v5761_v53 = vrot.slane %v5759_v31, 5  ;;  %v5790_v31 = vor.u32 %v5789_v60, %v5785_v34  ;;  %v5786_v32 = vsel %vm8513_vm4, %v5781_v20, %v5785_v34  ;;  %v5828_v9 = vor.u32 %v5827_v16, %v5824_v33 }
 0x279   : > { %8039 = vmatprep.mubr.msk.bf16.mxu1 %vm4059_vm13, %v7463_v17  ;;  %v7466_v17 = vcombine.low %v5738_v0, %v5748_v52  ;;  %v5820_v44 = vsel %vm8513_vm4, %v5815_v42, %v5819_v62  ;;  %v5838_v24 = vor.u32 %v5837_v25, %v5833_v37  ;;  %vm6777_vm7 = vcmask 1041409  }
 0x27a   : > { %v5766_v40 = vor.u32 %v5765_v23, %v5761_v53  ;;  %v5762_v7 = vsel %vm8513_vm4, %v5757_v54, %v5761_v53  ;;  %v5791_v61 = vrot.slane %v5790_v31, 4  ;;  %v5841_v53 = vshll.u32 %v10679_v63, 16 }
 0x27b   : > { %v5810_v23 = vsel %vm8513_vm4, %v5805_v13, %v5809_v21  ;;  %v5829_v39 = vrot.slane %v5828_v9, 4  ;;  %v5839_v14 = vrot.slane %v5838_v24, 4 }
 0x27c   : > { %v5767_v47 = vrot.slane %v5766_v40, 4  ;;  %v5796_v1 = vsel %vm8513_vm4, %v5791_v61, %v5795_v26  ;;  %v7469_v43 = vcombine.low %v5810_v23, %v5820_v44  ;;  %v5843_v51 = vrot.slane %v5841_v53, 5 }
 0x27d   : > { %v7468_v55 = vcombine.low %v5786_v32, %v5796_v1  ;;  %v5834_v30 = vsel %vm8513_vm4, %v5829_v39, %v5833_v37 }
 0x27e   : > { %v5772_v27 = vsel %vm8513_vm4, %v5767_v47, %v5771_v35  ;;  %v5844_v63 = vsel %vm8513_vm4, %v5839_v14, %v5843_v51  ;;  %vm6520_vm4 = vcmask 58368  }
 0x27f   : > { %v7467_v15 = vcombine.low %v5762_v7, %v5772_v27  ;;  %v7470_v58 = vcombine.low %v5834_v30, %v5844_v63 }
 0x280   : > { %8040 = vmatmul.mubr.msk.bf16.vlgmr.msra.gmra.mxu1 %vm4059_vm13, %v7464_v22 }
 0x281   : > { %8043 = vmatprep.mubr.msk.bf16.mxu1 %vm4059_vm13, %v7465_v29 }
 0x288   : > { %8044 = vmatmul.mubr.msk.bf16.gmra.mxu1 %vm4059_vm13, %v7466_v17 }
 0x289   : > { %8047 = vmatprep.mubr.msk.bf16.mxu1 %vm4059_vm13, %v7467_v15 }
 0x290   : > { %8048 = vmatmul.mubr.msk.bf16.gmra.mxu1 %vm4059_vm13, %v7468_v55 }
 0x291   : > { %8051 = vmatprep.mubr.msk.bf16.mxu1 %vm4059_vm13, %v7469_v43 }
 0x298   : > { %8052 = vmatmul.mubr.msk.bf16.gmra.mxu1 %vm4059_vm13, %v7470_v58 }
 0x29f   : > { %v10787_v38 = vpop.f32.mrf.mxu0 }
 0x2a1   : > { %v10789_v19 = vpop.f32.mrf.mxu0 }
 0x2a3   : > { %v10791_v2 = vpop.f32.mrf.mxu0 }
 0x2a5   : > { %v4519_v22 = vpop.f32.mrf.mxu0 }
 0x2b0   : > { %v7915_v40 = vpop.f32.mrf.mxu1  ;;  %v7955_v49 = vpop.f32.mrf.mxu0 }
 0x2b2   : > { %v4122_v56 = vpop.f32.mrf.mxu1  ;;  %v4532_v29 = vpop.f32.mrf.mxu0 }
 0x2b4   : > { %v7916_v41 = vpop.f32.mrf.mxu1  ;;  %v7956_v36 = vpop.f32.mrf.mxu0 }
 0x2b6   : > { %v4125_v11 = vpop.f32.mrf.mxu1  ;;  %v4535_v54 = vpop.f32.mrf.mxu0 }
 0x2bb   : > { %v7919_v5 = vpop.f32.mrf.mxu1 }
 0x2bd   : > { %v4138_v35 = vpop.f32.mrf.mxu1  ;;  %v7959_v45 = vpop.f32.mrf.mxu0 }
 0x2bf   : > { %v7920_v3 = vpop.f32.mrf.mxu1  ;;  %v4548_v12 = vpop.f32.mrf.mxu0 }
 0x2c1   : > { %v4141_v0 = vpop.f32.mrf.mxu1  ;;  %v7960_v8 = vpop.f32.mrf.mxu0 }
 0x2c3   : > { %v4551_v60 = vpop.f32.mrf.mxu0 }
 0x2c8   : > { %v7923_v34 = vpop.f32.mrf.mxu1 }
 0x2c9   : > { %v7963_v6 = vpop.f32.mrf.mxu0 }
 0x2ca   : > { %v4154_v47 = vpop.f32.mrf.mxu1 }
 0x2cb   : > { %v10793_v57 = vpop.f32.mrf.mxu0 }
 0x2cc   : > { %v7924_v21 = vpop.f32.mrf.mxu1 }
 0x2cd   : > { %v10795_v4 = vpop.f32.mrf.mxu0 }
 0x2ce   : > { %v4157_v52 = vpop.f32.mrf.mxu1 }
 0x2cf   : > { %v10797_v10 = vpop.f32.mrf.mxu0 }
 0x2d8   : > { %v7927_v50 = vpop.f32.mrf.mxu1 }
 0x2da   : > { %v4170_v7 = vpop.f32.mrf.mxu1 }
 0x2dc   : > { %v7928_v27 = vpop.f32.mrf.mxu1  ;;  %v10799_v48 = vpop.f32.mrf.mxu0 }
 0x2de   : > { %v4173_v59 = vpop.f32.mrf.mxu1  ;;  %v10801_v31 = vpop.f32.mrf.mxu0 }
 0x2e0   : > { %v7933_v28 = vpop.f32.mrf.mxu1  ;;  %v10805_v17 = vpop.f32.mrf.mxu0 }
 0x2e1   : > { %v10803_v46 = vadd.f32 %v7933_v28, %v7915_v40 }
 0x2e2   : > { %v4286_v26 = vpop.f32.mrf.mxu1  ;;  %v10809_v15 = vpop.f32.mrf.mxu0 }
 0x2e3   : > { %v10807_v18 = vadd.f32 %v4286_v26, %v4122_v56 }
 0x2e4   : > { %v7934_v20 = vpop.f32.mrf.mxu1 }
 0x2e5   : > { %v10811_v33 = vadd.f32 %v7934_v20, %v7916_v41 }
 0x2e6   : > { %v4289_v16 = vpop.f32.mrf.mxu1  ;;  %v10813_v13 = vpop.f32.mrf.mxu0 }
 0x2e7   : > { %v4290_v62 = vadd.f32 %v4289_v16, %v4125_v11 }
 0x2e8   : > { %v7937_v61 = vpop.f32.mrf.mxu1  ;;  %v10815_v37 = vpop.f32.mrf.mxu0 }
 0x2e9   : > { %v4311_v25 = vadd.f32 %v7937_v61, %v7919_v5  ;;  %v10817_v42 = vadd.f32 %v4519_v22, %v4290_v62 }
 0x2ea   : > { %v4302_v32 = vpop.f32.mrf.mxu1  ;;  %v7992_v1 = vpop.f32.mrf.mxu0 }
 0x2eb   : > { %v4303_v9 = vadd.f32 %v4302_v32, %v4138_v35  ;;  %v10819_v53 = vadd.f32 %v7955_v49, %v4311_v25 }
 0x2ec   : > { %v7938_v23 = vpop.f32.mrf.mxu1  ;;  %v5116_v44 = vpop.f32.mrf.mxu0 }
 0x2ed   : > { %v4314_v24 = vadd.f32 %v7938_v23, %v7920_v3  ;;  %v10821_v55 = vadd.f32 %v4532_v29, %v4303_v9 }
 0x2ee   : > { %v4305_v43 = vpop.f32.mrf.mxu1  ;;  %v7995_v51 = vpop.f32.mrf.mxu0 }
 0x2ef   : > { %v4306_v39 = vadd.f32 %v4305_v43, %v4141_v0  ;;  %v4586_v14 = vadd.f32 %v7956_v36, %v4314_v24 }
 0x2f0   : > { %v7941_v30 = vpop.f32.mrf.mxu1  ;;  %v5129_v58 = vpop.f32.mrf.mxu0 }
 0x2f1   : > { %v4327_v63 = vadd.f32 %v7941_v30, %v7923_v34  ;;  %v4584_v40 = vadd.f32 %v4535_v54, %v4306_v39 }
 0x2f2   : > { %v4318_v22 = vpop.f32.mrf.mxu1  ;;  %v7996_v41 = vpop.f32.mrf.mxu0 }
 0x2f3   : > { %v4319_v56 = vadd.f32 %v4318_v22, %v4154_v47  ;;  %v4589_v11 = vadd.f32 %v7959_v45, %v4327_v63 }
 0x2f4   : > { %v7942_v5 = vpop.f32.mrf.mxu1  ;;  %v5132_v35 = vpop.f32.mrf.mxu0 }
 0x2f5   : > { %v4330_v49 = vadd.f32 %v7942_v5, %v7924_v21  ;;  %v4587_v28 = vadd.f32 %v4548_v12, %v4319_v56 }
 0x2f6   : > { %v4321_v26 = vpop.f32.mrf.mxu1 }
 0x2f7   : > { %v4322_v3 = vadd.f32 %v4321_v26, %v4157_v52  ;;  %v7999_v29 = vpop.f32.mrf.mxu0  ;;  %v4590_v20 = vadd.f32 %v7960_v8, %v4330_v49 }
 0x2f8   : > { %v7945_v16 = vpop.f32.mrf.mxu1 }
 0x2f9   : > { %v4343_v0 = vadd.f32 %v7945_v16, %v7927_v50  ;;  %v5145_v62 = vpop.f32.mrf.mxu0  ;;  %v4588_v36 = vadd.f32 %v4551_v60, %v4322_v3 }
 0x2fa   : > { %v4334_v61 = vpop.f32.mrf.mxu1 }
 0x2fb   : > { %v4335_v34 = vadd.f32 %v4334_v61, %v4170_v7  ;;  %v8000_v25 = vpop.f32.mrf.mxu0  ;;  %v4593_v54 = vadd.f32 %v7963_v6, %v4343_v0 }
 0x2fc   : > { %v7946_v32 = vpop.f32.mrf.mxu1 }
 0x2fd   : > { %v4346_v47 = vadd.f32 %v7946_v32, %v7928_v27  ;;  %v5148_v9 = vpop.f32.mrf.mxu0  ;;  %v4591_v45 = vadd.f32 %v10793_v57, %v4335_v34 }
 0x2fe   : > { %v4337_v21 = vpop.f32.mrf.mxu1 }
 0x2ff   : > { %v4338_v23 = vadd.f32 %v4337_v21, %v4173_v59  ;;  %v10824_v12 = vpop.f32.mrf.mxu0  ;;  %v4594_v52 = vadd.f32 %v10795_v4, %v4346_v47 }
 0x300   : > { %v10827_v8 = vpop.f32.mrf.mxu1 }
 0x301   : > { %v10829_v50 = vpop.f32.mrf.mxu0  ;;  %v4592_v60 = vadd.f32 %v10797_v10, %v4338_v23 }
 0x302   : > { %v10832_v7 = vpop.f32.mrf.mxu1 }
 0x303   : > { %v10834_v6 = vpop.f32.mrf.mxu0 }
 0x304   : > { %v10836_v27 = vpop.f32.mrf.mxu1 }
 0x305   : > { %v10838_v24 = vpop.f32.mrf.mxu0 }
 0x306   : > { %v10840_v57 = vpop.f32.mrf.mxu1 }
 0x307   : > { %v10842_v59 = vpop.f32.mrf.mxu0 }
 0x308   : > { %v10844_v43 = vpop.f32.mrf.mxu1 }
 0x309   : > { %v10846_v4 = vpop.f32.mrf.mxu0 }
 0x30a   : > { %v10848_v39 = vpop.f32.mrf.mxu1 }
 0x30b   : > { %v10850_v63 = vpop.f32.mrf.mxu0 }
 0x30c   : > { %v7974_v30 = vpop.f32.mrf.mxu1 }
 0x30d   : > { %v4785_v10 = vadd.f32 %v7974_v30, %v4586_v14  ;;  %v10856_v16 = vpop.f32.mrf.mxu0 }
 0x30e   : > { %v4734_v22 = vpop.f32.mrf.mxu1  ;;  %11330 = vst [vmem:[#allocation9_spill] sm:$0xff] %v10856_v16 }
 0x30f   : > { %v4783_v56 = vadd.f32 %v4734_v22, %v4584_v40  ;;  %v10852_v5 = vadd.f32 %v7992_v1, %v4785_v10  ;;  %v10862_v14 = vpop.f32.mrf.mxu0 }
 0x310   : > { %v7977_v49 = vpop.f32.mrf.mxu1  ;;  %11331 = vst [vmem:[#allocation10_spill] sm:$0xff] %v10862_v14 }
 0x311   : > { %v4788_v26 = vadd.f32 %v7977_v49, %v4589_v11  ;;  %v10854_v3 = vadd.f32 %v5116_v44, %v4783_v56  ;;  %v10868_v10 = vpop.f32.mrf.mxu0 }
 0x312   : > { %v4747_v0 = vpop.f32.mrf.mxu1  ;;  %11332 = vst [vmem:[#allocation23_spill] sm:$0xff] %v10868_v10 }
 0x313   : > { %v4786_v61 = vadd.f32 %v4747_v0, %v4587_v28  ;;  %v10858_v34 = vadd.f32 %v7995_v51, %v4788_v26 }
 0x314   : > { %v7978_v32 = vpop.f32.mrf.mxu1 }
 0x315   : > { %v4789_v47 = vadd.f32 %v7978_v32, %v4590_v20  ;;  %v10860_v21 = vadd.f32 %v5129_v58, %v4786_v61  ;;  %v10870_v58 = vpop.f32.mrf.mxu0 }
 0x316   : > { %v4750_v23 = vpop.f32.mrf.mxu1  ;;  %11333 = vst [vmem:[#allocation14_spill] sm:$0xff] %v10870_v58 }
 0x317   : > { %v4787_v40 = vadd.f32 %v4750_v23, %v4588_v36  ;;  %v10864_v1 = vadd.f32 %v7996_v41, %v4789_v47  ;;  %v10872_v32 = vpop.f32.mrf.mxu0 }
 0x318   : > { %v7981_v30 = vpop.f32.mrf.mxu1  ;;  %11334 = vst [vmem:[#allocation11_spill] sm:$0xff] %v10872_v32  ;;  %v4582_v32 = vadd.f32 %v10791_v2, %v10811_v33  ;;  %v4784_v2 = vadd.f32 %v10844_v43, %v10819_v53 }
 0x319   : > { %v4792_v11 = vadd.f32 %v7981_v30, %v4593_v54  ;;  %v10866_v44 = vadd.f32 %v5132_v35, %v4787_v40  ;;  %v8035_v47 = vpop.f32.mrf.mxu0 }
 0x31a   : > { %v4763_v22 = vpop.f32.mrf.mxu1  ;;  %v4781_v10 = vadd.f32 %v10836_v27, %v4582_v32 }
 0x31b   : > { %v4790_v28 = vadd.f32 %v4763_v22, %v4591_v45  ;;  %v5174_v51 = vadd.f32 %v7999_v29, %v4792_v11  ;;  %v5598_v30 = vpop.f32.mrf.mxu0 }
 0x31c   : > { %v7982_v56 = vpop.f32.mrf.mxu1  ;;  %v5163_v27 = vadd.f32 %v10805_v17, %v4781_v10  ;;  %v5166_v17 = vadd.f32 %v10813_v13, %v4784_v2 }
 0x31d   : > { %v4793_v49 = vadd.f32 %v7982_v56, %v4594_v52  ;;  %v5172_v20 = vadd.f32 %v5145_v62, %v4790_v28  ;;  %v8036_v11 = vpop.f32.mrf.mxu0  ;;  %v4579_v56 = vadd.f32 %v10789_v19, %v10807_v18 }
 0x31e   : > { %v4766_v26 = vpop.f32.mrf.mxu1 }
 0x31f   : > { %v4791_v0 = vadd.f32 %v4766_v26, %v4592_v60  ;;  %v5175_v61 = vadd.f32 %v8000_v25, %v4793_v49  ;;  %v5601_v22 = vpop.f32.mrf.mxu0  ;;  %v4581_v25 = vadd.f32 %v10787_v38, %v10803_v46 }
 0x320   : > { %v8005_v36 = vpop.f32.mrf.mxu1 }
 0x321   : > { %v5173_v41 = vadd.f32 %v5148_v9, %v4791_v0  ;;  %v4780_v28 = vadd.f32 %v10827_v8, %v4581_v25  ;;  %v8059_v49 = vpop.f32.mrf.mxu0  ;;  %v4778_v0 = vadd.f32 %v10832_v7, %v4579_v56  ;;  %v4779_v8 = vadd.f32 %v10840_v57, %v10817_v42 }
 0x322   : > { %v5351_v54 = vpop.f32.mrf.mxu1  ;;  %v4782_v42 = vadd.f32 %v10848_v39, %v10821_v55 }
 0x323   : > { %v5162_v38 = vadd.f32 %v10799_v48, %v4780_v28  ;;  %v6186_v25 = vpop.f32.mrf.mxu0  ;;  %v5160_v18 = vadd.f32 %v10801_v31, %v4778_v0 }
 0x324   : > { %v8006_v35 = vpop.f32.mrf.mxu1 }
 0x325   : > { %v5416_v19 = vadd.f32 %v8005_v36, %v5162_v38  ;;  %v5414_v7 = vadd.f32 %v5351_v54, %v5160_v18  ;;  %v8060_v57 = vpop.f32.mrf.mxu0  ;;  %v6356_v36 = vlaneseq  ;;  %v5417_v32 = vadd.f32 %v8006_v35, %v5163_v27 }
 0x326   : > { %v5354_v23 = vpop.f32.mrf.mxu1 }
 0x327   : > { %v5615_v53 = vadd.f32 %v10824_v12, %v5416_v19  ;;  %v5613_v55 = vadd.f32 %v10829_v50, %v5414_v7  ;;  %v5616_v28 = vadd.f32 %v10834_v6, %v5417_v32  ;;  %v11339_v32 = vld [vmem:[#allocation23_spill] sm:$0xff] }
 0x328   : > { %v8009_v40 = vpop.f32.mrf.mxu1 }
 0x329   : > { %v5420_v54 = vadd.f32 %v8009_v40, %v5166_v17 }
 0x32a   : > { %v5367_v45 = vpop.f32.mrf.mxu1 }
 0x32c   : > { %v8010_v29 = vpop.f32.mrf.mxu1 }
 0x32e   : > { %v10874_v52 = vpop.f32.mrf.mxu1 }
 0x330   : > { %v10876_v62 = vpop.f32.mrf.mxu1 }
 0x332   : > { %v10878_v60 = vpop.f32.mrf.mxu1 }
 0x334   : > { %v10882_v9 = vpop.f32.mrf.mxu1 }
 0x336   : > { %v10887_v26 = vpop.f32.mrf.mxu1 }
 0x337   : > { %11335 = vst [vmem:[#allocation16_spill] sm:$0xff] %v10887_v26 }
 0x338   : > { %v8017_v58 = vpop.f32.mrf.mxu1 }
 0x339   : > { %v5428_v46 = vadd.f32 %v8017_v58, %v5174_v51  ;;  %v5161_v58 = vadd.f32 %v10809_v15, %v4779_v8  ;;  %v6189_v15 = vpop.f32.mrf.mxu0  ;;  %v5419_v8 = vadd.f32 %v10874_v52, %v10854_v3  ;;  %v5424_v3 = vadd.f32 %v10876_v62, %v10858_v34 }
 0x33a   : > { %v5399_v14 = vpop.f32.mrf.mxu1  ;;  %v5422_v52 = vadd.f32 %v10878_v60, %v10860_v21 }
 0x33b   : > { %v5426_v16 = vadd.f32 %v5399_v14, %v5172_v20  ;;  %v10897_v26 = vadd.f32 %v8035_v47, %v5428_v46  ;;  %v8314_v14 = vmov 1983009808   ;;  %v5415_v10 = vadd.f32 %v5354_v23, %v5161_v58  ;;  %v8063_v46 = vpop.f32.mrf.mxu0 }
 0x33c   : > { %v8018_v33 = vpop.f32.mrf.mxu1  ;;  %v6354_v20 = vunpack.c.l.s4 %v8314_v14 }
 0x33d   : > { %v5429_v48 = vadd.f32 %v8018_v33, %v5175_v61  ;;  %v10902_v51 = vadd.f32 %v5598_v30, %v5426_v16  ;;  %v5164_v30 = vadd.f32 %v10815_v37, %v4782_v42  ;;  %v5614_v38 = vadd.f32 %v10838_v24, %v5415_v10  ;;  %v11337_v42 = vld [vmem:[#allocation9_spill] sm:$0xff]  ;;  %v11340_v10 = vld [vmem:[#allocation14_spill] sm:$0xff] }
 0x33e   : > { %v5402_v31 = vpop.f32.mrf.mxu1  ;;  %v6355_v35 = vunpack.c.0.s8 %v6354_v20  ;;  %v11336_v34 = vld [vmem:[#allocation16_spill] sm:$0xff] }
 0x33f   : > { %v5427_v47 = vadd.f32 %v5402_v31, %v5173_v41  ;;  %v10908_v43 = vadd.f32 %v8036_v11, %v5429_v48  ;;  %v10918_v41 = vld [vmem:[%s11217_s4] ss:$0 sm:$0xff]  ;;  %v6357_v11 = vshrl.u32 %v6356_v36, 7  ;;  %v5418_v50 = vadd.f32 %v5367_v45, %v5164_v30  ;;  %v6202_v48 = vpop.f32.mrf.mxu0  ;;  %v11338_v36 = vld [vmem:[#allocation10_spill] sm:$0xff] }
 0x340   : > { %v8041_v16 = vpop.f32.mrf.mxu1  ;;  %v5619_v45 = vadd.f32 %v10842_v59, %v5420_v54  ;;  %v5425_v59 = vadd.f32 %v10882_v9, %v10864_v1  ;;  %v5423_v62 = vadd.f32 %v11336_v34, %v10866_v44  ;;  %v10956_v44 = vadd.f32 %v11338_v36, %v5424_v3 }
 0x341   : > { %v5997_v61 = vadd.f32 %v8041_v16, %v5615_v53  ;;  %v10912_v39 = vadd.f32 %v5601_v22, %v5427_v47  ;;  %v5421_v22 = vadd.f32 %v8010_v29, %v10852_v5  ;;  %v10932_v6 = vsub.s32 %v6355_v35, %v6357_v11  ;;  %v11341_v35 = vld [vmem:[#allocation11_spill] sm:$0xff] }
 0x342   : > { %v5932_v12 = vpop.f32.mrf.mxu1  ;;  %v5617_v18 = vadd.f32 %v10846_v4, %v5418_v50  ;;  %v10959_v47 = vadd.f32 %v11339_v32, %v5422_v52  ;;  %v10969_v11 = vadd.f32 %v11341_v35, %v5423_v62 }
 0x343   : > { %v6251_v13 = vadd.f32 %v8059_v49, %v5997_v61  ;;  %v5995_v23 = vadd.f32 %v5932_v12, %v5613_v55  ;;  %v5620_v2 = vadd.f32 %v10850_v63, %v5421_v22  ;;  %v5618_v63 = vadd.f32 %v11337_v42, %v5419_v8  ;;  %v8064_v55 = vpop.f32.mrf.mxu0 }
 0x344   : > { %v8042_v56 = vpop.f32.mrf.mxu1  ;;  %v10964_v61 = vadd.f32 %v11340_v10, %v5425_v59 }
 0x345   : > { %v6274_v40 = vadd.f32 %v10918_v41, %v6251_v13  ;;  %v6249_v37 = vadd.f32 %v6186_v25, %v5995_v23  ;;  %v5998_v0 = vadd.f32 %v8042_v56, %v5616_v28 }
 0x346   : > { %v5935_v5 = vpop.f32.mrf.mxu1 }
 0x347   : > { %v6290_v29 = vmax.f32 %v6274_v40, 0.0  ;;  %v6272_v49 = vadd.f32 %v10918_v41, %v6249_v37  ;;  %v6252_v24 = vadd.f32 %v8060_v57, %v5998_v0  ;;  %v5996_v25 = vadd.f32 %v5935_v5, %v5614_v38 }
 0x348   : > { %v8045_v19 = vpop.f32.mrf.mxu1 }
 0x349   : > { %6306 = vst.msk [vmem:[%s10930_s25 + $0x10] sm:$0xff] %vm4059_vm13, %v6290_v29  ;;  %v6288_v33 = vmax.f32 %v6272_v49, 0.0  ;;  %v6275_v7 = vadd.f32 %v10918_v41, %v6252_v24  ;;  %v6250_v27 = vadd.f32 %v6189_v15, %v5996_v25  ;;  %v6321_v21 = vsel %vm4059_vm13, %v6290_v29, -inf }
 0x34a   : > { %v6001_v60 = vadd.f32 %v8045_v19, %v5619_v45  ;;  %v5948_v4 = vpop.f32.mrf.mxu1 }
 0x34b   : > { %6304 = vst.msk [vmem:[%s10930_s25] sm:$0xff] %vm4059_vm13, %v6288_v33  ;;  %v6320_v1 = vsel %vm4059_vm13, %v6288_v33, -inf  ;;  %v6291_v9 = vmax.f32 %v6275_v7, 0.0  ;;  %v6273_v57 = vadd.f32 %v10918_v41, %v6250_v27  ;;  %v5999_v58 = vadd.f32 %v5948_v4, %v5617_v18 }
 0x34c   : > { %v6322_v31 = vmax.f32 %v6320_v1, %v6321_v21  ;;  %v6255_v14 = vadd.f32 %v8063_v46, %v6001_v60  ;;  %v8046_v20 = vpop.f32.mrf.mxu1 }
 0x34d   : > { %6307 = vst.msk [vmem:[%s10930_s25 + $0x18] sm:$0xff] %vm4059_vm13, %v6291_v9  ;;  %v6289_v53 = vmax.f32 %v6273_v57, 0.0  ;;  %v6253_v17 = vadd.f32 %v6202_v48, %v5999_v58  ;;  %v6002_v16 = vadd.f32 %v8046_v20, %v5620_v2  ;;  %v6324_v13 = vsel %vm4059_vm13, %v6291_v9, -inf }
 0x34e   : > { %v6352_v15 = vcombine.high %v6322_v31, %v6322_v31  ;;  %v6359_v54 = vrot.slane %v6322_v31, %v10932_v6  ;;  %v6278_v30 = vadd.f32 %v10918_v41, %v6255_v14  ;;  %v5951_v12 = vpop.f32.mrf.mxu1 }
 0x34f   : > { %6305 = vst.msk [vmem:[%s10930_s25 + $0x8] sm:$0xff] %vm4059_vm13, %v6289_v53  ;;  %v6323_v23 = vsel %vm4059_vm13, %v6289_v53, -inf  ;;  %v6276_v28 = vadd.f32 %v10918_v41, %v6253_v17  ;;  %v10976_v50 = vadd.f32 %v8064_v55, %v6002_v16  ;;  %v10980_v8 = vadd.f32 %v5951_v12, %v5618_v63 }
 0x350   : > { %v6366_v22 = vrot.slane %v6352_v15, %v10932_v6  ;;  %v6367_v56 = vcombine.high %v6359_v54, %v6359_v54  ;;  %v6521_v40 = vsel %vm6520_vm4, %v6359_v54, -inf  ;;  %v6325_v37 = vmax.f32 %v6323_v23, %v6324_v13 }
 0x351   : > { %v6522_v0 = vrot.slane %v6521_v40, 4  ;;  %v6294_v38 = vmax.f32 %v6278_v30, 0.0  ;;  %v6292_v46 = vmax.f32 %v6276_v28, 0.0 }
 0x352   : > { %v6368_v5 = vcombine.high %v6366_v22, %v6366_v22  ;;  %v6528_v45 = vsel %vm6520_vm4, %v6367_v56, -inf  ;;  %v6535_v29 = vsel %vm6520_vm4, %v6366_v22, -inf  ;;  %v6369_v49 = vcombine.high %v6325_v37, %v6325_v37 }
 0x353   : > { %v6523_v24 = vmax.f32 %v6521_v40, %v6522_v0  ;;  %v6529_v25 = vrot.slane %v6528_v45, 4  ;;  %v6536_v3 = vrot.slane %v6535_v29, 4  ;;  %v6376_v52 = vrot.slane %v6325_v37, %v10932_v6  ;;  %6310 = vst.msk [vmem:[%s10930_s25 + $0x30] sm:$0xff] %vm4059_vm13, %v6294_v38  ;;  %6308 = vst.msk [vmem:[%s10930_s25 + $0x20] sm:$0xff] %vm4059_vm13, %v6292_v46 }
 0x354   : > { %v6542_v19 = vsel %vm6520_vm4, %v6368_v5, -inf  ;;  %v6383_v18 = vrot.slane %v6369_v49, %v10932_v6  ;;  %v6327_v2 = vsel %vm4059_vm13, %v6294_v38, -inf  ;;  %v6326_v59 = vsel %vm4059_vm13, %v6292_v46, -inf  ;;  %v6205_v5 = vpop.f32.mrf.mxu0 }
 0x355   : > { %v6524_v33 = vrot.slane %v6523_v24, 2  ;;  %v6530_v7 = vmax.f32 %v6528_v45, %v6529_v25  ;;  %v6537_v27 = vmax.f32 %v6535_v29, %v6536_v3  ;;  %v6543_v48 = vrot.slane %v6542_v19, 4  ;;  %v8049_v25 = vpop.f32.mrf.mxu1 }
 0x356   : > { %v6384_v34 = vcombine.high %v6376_v52, %v6376_v52  ;;  %v6385_v62 = vcombine.high %v6383_v18, %v6383_v18  ;;  %v6549_v21 = vsel %vm6520_vm4, %v6376_v52, -inf  ;;  %v6563_v60 = vsel %vm6520_vm4, %v6383_v18, -inf }
 0x357   : > { %v6525_v4 = vmax.f32 %v6523_v24, %v6524_v33  ;;  %v6531_v42 = vrot.slane %v6530_v7, 2  ;;  %v6538_v63 = vrot.slane %v6537_v27, 2  ;;  %v6544_v1 = vmax.f32 %v6542_v19, %v6543_v48 }
 0x358   : > { %v6550_v9 = vrot.slane %v6549_v21, 4  ;;  %v6556_v57 = vsel %vm6520_vm4, %v6384_v34, -inf  ;;  %v6564_v58 = vrot.slane %v6563_v60, 4  ;;  %v6570_v31 = vsel %vm6520_vm4, %v6385_v62, -inf }
 0x359   : > { %v6526_v14 = vrot.slane %v6525_v4, 1  ;;  %v6532_v20 = vmax.f32 %v6530_v7, %v6531_v42  ;;  %v6539_v36 = vmax.f32 %v6537_v27, %v6538_v63  ;;  %v6545_v32 = vrot.slane %v6544_v1, 2 }
 0x35a   : > { %v6551_v53 = vmax.f32 %v6549_v21, %v6550_v9  ;;  %v6557_v17 = vrot.slane %v6556_v57, 4  ;;  %v6565_v16 = vmax.f32 %v6563_v60, %v6564_v58  ;;  %v6571_v10 = vrot.slane %v6570_v31, 4  ;;  %v8067_v21 = vpop.f32.mrf.mxu0 }
 0x35b   : > { %v6527_v55 = vmax.f32 %v6525_v4, %v6526_v14  ;;  %v6533_v15 = vrot.slane %v6532_v20, 1  ;;  %v6540_v54 = vrot.slane %v6539_v36, 1  ;;  %v6546_v30 = vmax.f32 %v6544_v1, %v6545_v32  ;;  %v5964_v1 = vpop.f32.mrf.mxu1 }
 0x35c   : > { %v6552_v12 = vrot.slane %v6551_v53, 2  ;;  %v6558_v35 = vmax.f32 %v6556_v57, %v6557_v17  ;;  %v6566_v13 = vrot.slane %v6565_v16, 2  ;;  %v6572_v23 = vmax.f32 %v6570_v31, %v6571_v10  ;;  %v6218_v10 = vpop.f32.mrf.mxu0 }
 0x35d   : > { %v6534_v28 = vmax.f32 %v6532_v20, %v6533_v15  ;;  %v6541_v22 = vmax.f32 %v6539_v36, %v6540_v54  ;;  %v6547_v56 = vrot.slane %v6546_v30, 1  ;;  %v6328_v40 = vmax.f32 %v6326_v59, %v6327_v2 }
 0x35e   : > { %v6553_v37 = vmax.f32 %v6551_v53, %v6552_v12  ;;  %v6559_v0 = vrot.slane %v6558_v35, 2  ;;  %v6567_v38 = vmax.f32 %v6565_v16, %v6566_v13  ;;  %v6573_v46 = vrot.slane %v6572_v23, 2  ;;  %v8050_v12 = vpop.f32.mrf.mxu1 }
 0x35f   : > { %v6548_v45 = vmax.f32 %v6546_v30, %v6547_v56  ;;  %v6778_v29 = vsel %vm6777_vm7, %v6534_v28, %v6527_v55  ;;  %v6386_v49 = vcombine.high %v6328_v40, %v6328_v40  ;;  %v6393_v24 = vrot.slane %v6328_v40, %v10932_v6 }
 0x360   : > { %v6780_v3 = vsel %vm6779_vm6, %v6541_v22, %v6778_v29  ;;  %v6554_v52 = vrot.slane %v6553_v37, 1  ;;  %v6560_v19 = vmax.f32 %v6558_v35, %v6559_v0  ;;  %v6568_v18 = vrot.slane %v6567_v38, 1 }
 0x361   : > { %v11000_v33 = vmax.f32 %v6572_v23, %v6573_v46  ;;  %v6782_v2 = vsel %vm6781_vm10, %v6548_v45, %v6780_v3  ;;  %v6400_v59 = vrot.slane %v6386_v49, %v10932_v6  ;;  %v6401_v7 = vcombine.high %v6393_v24, %v6393_v24 }
 0x362   : > { %v6555_v27 = vmax.f32 %v6553_v37, %v6554_v52  ;;  %v6561_v48 = vrot.slane %v6560_v19, 1  ;;  %v6577_v34 = vsel %vm6520_vm4, %v6393_v24, -inf  ;;  %v6279_v62 = vadd.f32 %v10918_v41, %v10976_v50 }
 0x363   : > { %v6569_v60 = vmax.f32 %v6567_v38, %v6568_v18  ;;  %v6402_v4 = vcombine.high %v6400_v59, %v6400_v59  ;;  %v6578_v42 = vrot.slane %v6577_v34, 4  ;;  %v6584_v63 = vsel %vm6520_vm4, %v6401_v7, -inf }
 0x364   : > { %v6562_v9 = vmax.f32 %v6560_v19, %v6561_v48  ;;  %v6784_v57 = vsel %vm6783_vm11, %v6555_v27, %v6782_v2  ;;  %v6585_v58 = vrot.slane %v6584_v63, 4  ;;  %v6591_v31 = vsel %vm6520_vm4, %v6400_v59, -inf  ;;  %v5967_v19 = vpop.f32.mrf.mxu1 }
 0x365   : > { %v6575_v14 = vrot.slane %v11000_v33, 1  ;;  %v6579_v20 = vmax.f32 %v6577_v34, %v6578_v42  ;;  %v6592_v36 = vrot.slane %v6591_v31, 4  ;;  %v6598_v50 = vsel %vm6520_vm4, %v6402_v4, -inf }
 0x366   : > { %v6786_v32 = vsel %vm6785_vm14, %v6562_v9, %v6784_v57  ;;  %v6586_v53 = vmax.f32 %v6584_v63, %v6585_v58  ;;  %v6599_v17 = vrot.slane %v6598_v50, 4  ;;  %v6295_v16 = vmax.f32 %v6279_v62, 0.0 }
 0x367   : > { %v11014_v55 = vsel %vm6787_vm12, %v6569_v60, %v6786_v32  ;;  %v6580_v15 = vrot.slane %v6579_v20, 2  ;;  %v6593_v54 = vmax.f32 %v6591_v31, %v6592_v36  ;;  %v6254_v30 = vadd.f32 %v6205_v5, %v10980_v8  ;;  %v8068_v5 = vpop.f32.mrf.mxu0 }
 0x368   : > { %v6587_v35 = vrot.slane %v6586_v53, 2  ;;  %v6600_v13 = vmax.f32 %v6598_v50, %v6599_v17  ;;  %6311 = vst.msk [vmem:[%s10930_s25 + $0x38] sm:$0xff] %vm4059_vm13, %v6295_v16  ;;  %v6330_v23 = vsel %vm4059_vm13, %v6295_v16, -inf  ;;  %v6005_v28 = vadd.f32 %v8049_v25, %v10956_v44 }
 0x369   : > { %v6581_v22 = vmax.f32 %v6579_v20, %v6580_v15  ;;  %v6594_v56 = vrot.slane %v6593_v54, 2  ;;  %v6277_v40 = vadd.f32 %v10918_v41, %v6254_v30  ;;  %v6003_v37 = vadd.f32 %v5964_v1, %v10959_v47  ;;  %v6221_v9 = vpop.f32.mrf.mxu0  ;;  %v8053_v20 = vpop.f32.mrf.mxu1 }
 0x36a   : > { %v6588_v0 = vmax.f32 %v6586_v53, %v6587_v35  ;;  %v6601_v38 = vrot.slane %v6600_v13, 2  ;;  %v6259_v46 = vadd.f32 %v8067_v21, %v6005_v28  ;;  %v6006_v8 = vadd.f32 %v8050_v12, %v10964_v61 }
 0x36b   : > { %v6582_v45 = vrot.slane %v6581_v22, 1  ;;  %v6595_v29 = vmax.f32 %v6593_v54, %v6594_v56  ;;  %v6293_v49 = vmax.f32 %v6277_v40, 0.0  ;;  %v6257_v24 = vadd.f32 %v6218_v10, %v6003_v37  ;;  %v8071_v12 = vpop.f32.mrf.mxu0 }
 0x36c   : > { %v6589_v3 = vrot.slane %v6588_v0, 1  ;;  %v6602_v52 = vmax.f32 %v6600_v13, %v6601_v38  ;;  %v6282_v44 = vadd.f32 %v10918_v41, %v6259_v46  ;;  %v6260_v25 = vadd.f32 %v8068_v5, %v6006_v8 }
 0x36d   : > { %v6583_v18 = vmax.f32 %v6581_v22, %v6582_v45  ;;  %v6596_v2 = vrot.slane %v6595_v29, 1  ;;  %6309 = vst.msk [vmem:[%s10930_s25 + $0x28] sm:$0xff] %vm4059_vm13, %v6293_v49  ;;  %v6329_v47 = vsel %vm4059_vm13, %v6293_v49, -inf  ;;  %v6280_v61 = vadd.f32 %v10918_v41, %v6257_v24 }
 0x36e   : > { %v6590_v59 = vmax.f32 %v6588_v0, %v6589_v3  ;;  %v6603_v7 = vrot.slane %v6602_v52, 1  ;;  %v6331_v27 = vmax.f32 %v6329_v47, %v6330_v23  ;;  %v6298_v48 = vmax.f32 %v6282_v44, 0.0 }
 0x36f   : > { %v6597_v34 = vmax.f32 %v6595_v29, %v6596_v2  ;;  %v6296_v62 = vmax.f32 %v6280_v61, 0.0  ;;  %v11030_v21 = vadd.f32 %v10918_v41, %v6260_v25  ;;  %v6004_v60 = vadd.f32 %v5967_v19, %v10969_v11 }
 0x370   : > { %v6604_v4 = vmax.f32 %v6602_v52, %v6603_v7  ;;  %v6791_v42 = vsel %vm6777_vm7, %v6590_v59, %v6583_v18  ;;  %v6403_v63 = vcombine.high %v6331_v27, %v6331_v27  ;;  %v6410_v1 = vrot.slane %v6331_v27, %v10932_v6  ;;  %6314 = vst.msk [vmem:[%s10930_s25 + $0x50] sm:$0xff] %vm4059_vm13, %v6298_v48 }
 0x371   : > { %v11038_v57 = vmax.f32 %v11000_v33, %v6575_v14  ;;  %v6792_v58 = vsel %vm6779_vm6, %v6597_v34, %v6791_v42  ;;  %6312 = vst.msk [vmem:[%s10930_s25 + $0x40] sm:$0xff] %vm4059_vm13, %v6296_v62  ;;  %v6332_v31 = vsel %vm4059_vm13, %v6296_v62, -inf  ;;  %v6299_v11 = vmax.f32 %v11030_v21, 0.0 }
 0x372   : > { %v6417_v36 = vrot.slane %v6403_v63, %v10932_v6  ;;  %v6418_v50 = vcombine.high %v6410_v1, %v6410_v1  ;;  %v6605_v32 = vsel %vm6520_vm4, %v6410_v1, -inf  ;;  %v6333_v53 = vsel %vm4059_vm13, %v6298_v48, -inf  ;;  %v5980_v63 = vpop.f32.mrf.mxu1 }
 0x373   : > { %v6606_v17 = vrot.slane %v6605_v32, 4  ;;  %v6793_v33 = vsel %vm6781_vm10, %v6604_v4, %v6792_v58  ;;  %v6334_v14 = vmax.f32 %v6332_v31, %v6333_v53  ;;  %6315 = vst.msk [vmem:[%s10930_s25 + $0x58] sm:$0xff] %vm4059_vm13, %v6299_v11  ;;  %v6258_v16 = vadd.f32 %v6221_v9, %v6004_v60 }
 0x374   : > { %v6419_v10 = vcombine.high %v6417_v36, %v6417_v36  ;;  %v6612_v15 = vsel %vm6520_vm4, %v6418_v50, -inf  ;;  %v6619_v54 = vsel %vm6520_vm4, %v6417_v36, -inf  ;;  %v6009_v30 = vadd.f32 %v8053_v20, %v10897_v26 }
 0x375   : > { %v6607_v35 = vmax.f32 %v6605_v32, %v6606_v17  ;;  %v6613_v13 = vrot.slane %v6612_v15, 4  ;;  %v6620_v23 = vrot.slane %v6619_v54, 4  ;;  %v6420_v28 = vcombine.high %v6334_v14, %v6334_v14 }
 0x376   : > { %v6626_v22 = vsel %vm6520_vm4, %v6419_v10, -inf  ;;  %v6427_v56 = vrot.slane %v6334_v14, %v10932_v6  ;;  %v6281_v40 = vadd.f32 %v10918_v41, %v6258_v16  ;;  %v6263_v37 = vadd.f32 %v8071_v12, %v6009_v30  ;;  %v6234_v10 = vpop.f32.mrf.mxu0 }
 0x377   : > { %v6608_v0 = vrot.slane %v6607_v35, 2  ;;  %v6614_v38 = vmax.f32 %v6612_v15, %v6613_v13  ;;  %v6621_v46 = vmax.f32 %v6619_v54, %v6620_v23  ;;  %v6627_v8 = vrot.slane %v6626_v22, 4 }
 0x378   : > { %v6434_v5 = vrot.slane %v6420_v28, %v10932_v6  ;;  %v6435_v26 = vcombine.high %v6427_v56, %v6427_v56  ;;  %v6633_v45 = vsel %vm6520_vm4, %v6427_v56, -inf  ;;  %v6297_v29 = vmax.f32 %v6281_v40, 0.0 }
 0x379   : > { %v6609_v49 = vmax.f32 %v6607_v35, %v6608_v0  ;;  %v6615_v24 = vrot.slane %v6614_v38, 2  ;;  %v6622_v3 = vrot.slane %v6621_v46, 2  ;;  %v6628_v52 = vmax.f32 %v6626_v22, %v6627_v8  ;;  %v8054_v35 = vpop.f32.mrf.mxu1 }
 0x37a   : > { %v6436_v44 = vcombine.high %v6434_v5, %v6434_v5  ;;  %v6634_v25 = vrot.slane %v6633_v45, 4  ;;  %v6640_v19 = vsel %vm6520_vm4, %v6435_v26, -inf  ;;  %v6647_v18 = vsel %vm6520_vm4, %v6434_v5, -inf  ;;  %6313 = vst.msk [vmem:[%s10930_s25 + $0x48] sm:$0xff] %vm4059_vm13, %v6297_v29 }
 0x37b   : > { %v6610_v2 = vrot.slane %v6609_v49, 1  ;;  %v6616_v47 = vmax.f32 %v6614_v38, %v6615_v24  ;;  %v6623_v61 = vmax.f32 %v6621_v46, %v6622_v3  ;;  %v6629_v59 = vrot.slane %v6628_v52, 2  ;;  %v8072_v46 = vpop.f32.mrf.mxu0 }
 0x37c   : > { %v6635_v7 = vmax.f32 %v6633_v45, %v6634_v25  ;;  %v6641_v27 = vrot.slane %v6640_v19, 4  ;;  %v6648_v48 = vrot.slane %v6647_v18, 4  ;;  %v6654_v34 = vsel %vm6520_vm4, %v6436_v44, -inf }
 0x37d   : > { %v6611_v62 = vmax.f32 %v6609_v49, %v6610_v2  ;;  %v6617_v60 = vrot.slane %v6616_v47, 1  ;;  %v6624_v4 = vrot.slane %v6623_v61, 1  ;;  %v6630_v42 = vmax.f32 %v6628_v52, %v6629_v59 }
 0x37e   : > { %v6636_v1 = vrot.slane %v6635_v7, 2  ;;  %v6642_v9 = vmax.f32 %v6640_v19, %v6641_v27  ;;  %v6649_v58 = vmax.f32 %v6647_v18, %v6648_v48  ;;  %v6655_v31 = vrot.slane %v6654_v34, 4 }
 0x37f   : > { %v6618_v20 = vmax.f32 %v6616_v47, %v6617_v60  ;;  %v6625_v36 = vmax.f32 %v6623_v61, %v6624_v4  ;;  %v6631_v50 = vrot.slane %v6630_v42, 1  ;;  %v6794_v32 = vsel %vm6783_vm11, %v6611_v62, %v6793_v33  ;;  %v5983_v60 = vpop.f32.mrf.mxu1 }
 0x380   : > { %v6637_v53 = vmax.f32 %v6635_v7, %v6636_v1  ;;  %v6643_v17 = vrot.slane %v6642_v9, 2  ;;  %v6650_v14 = vrot.slane %v6649_v58, 2  ;;  %v6656_v16 = vmax.f32 %v6654_v34, %v6655_v31 }
 0x381   : > { %v6795_v15 = vsel %vm6785_vm14, %v6618_v20, %v6794_v32  ;;  %v6336_v54 = vsel %vm4059_vm13, %v6299_v11, -inf  ;;  %v6335_v30 = vsel %vm4059_vm13, %v6297_v29, -inf  ;;  %v6286_v12 = vadd.f32 %v10918_v41, %v6263_v37 }
 0x382   : > { %v11074_v13 = vsel %vm6787_vm12, %v6625_v36, %v6795_v15  ;;  %v6638_v33 = vrot.slane %v6637_v53, 1  ;;  %v6644_v23 = vmax.f32 %v6642_v9, %v6643_v17  ;;  %v6651_v28 = vmax.f32 %v6649_v58, %v6650_v14  ;;  %v6237_v17 = vpop.f32.mrf.mxu0 }
 0x383   : > { %v6657_v22 = vrot.slane %v6656_v16, 2  ;;  %v6337_v56 = vmax.f32 %v6335_v30, %v6336_v54  ;;  %v6302_v40 = vmax.f32 %v6286_v12, 0.0  ;;  %v6007_v0 = vadd.f32 %v5980_v63, %v10902_v51 }
 0x384   : > { %v6632_v21 = vmax.f32 %v6630_v42, %v6631_v50  ;;  %v6645_v11 = vrot.slane %v6644_v23, 1  ;;  %v6652_v38 = vrot.slane %v6651_v28, 1  ;;  %v6010_v37 = vadd.f32 %v8054_v35, %v10908_v43 }
 0x385   : > { %v6639_v8 = vmax.f32 %v6637_v53, %v6638_v33  ;;  %v6658_v5 = vmax.f32 %v6656_v16, %v6657_v22  ;;  %v6437_v26 = vcombine.high %v6337_v56, %v6337_v56  ;;  %v6444_v45 = vrot.slane %v6337_v56, %v10932_v6  ;;  %6318 = vst.msk [vmem:[%s10930_s25 + $0x70] sm:$0xff] %vm4059_vm13, %v6302_v40 }
 0x386   : > { %v6646_v29 = vmax.f32 %v6644_v23, %v6645_v11  ;;  %v6653_v49 = vmax.f32 %v6651_v28, %v6652_v38  ;;  %v6261_v24 = vadd.f32 %v6234_v10, %v6007_v0  ;;  %v6264_v51 = vadd.f32 %v8072_v46, %v6010_v37 }
 0x387   : > { %v6659_v3 = vrot.slane %v6658_v5, 1  ;;  %v6451_v52 = vrot.slane %v6437_v26, %v10932_v6  ;;  %v6452_v44 = vcombine.high %v6444_v45, %v6444_v45  ;;  %v6661_v43 = vsel %vm6520_vm4, %v6444_v45, -inf }
 0x388   : > { %v6798_v25 = vsel %vm6777_vm7, %v6646_v29, %v6639_v8  ;;  %v6662_v19 = vrot.slane %v6661_v43, 4  ;;  %v6284_v18 = vadd.f32 %v10918_v41, %v6261_v24  ;;  %v11087_v2 = vadd.f32 %v10918_v41, %v6264_v51 }
 0x389   : > { %v6660_v47 = vmax.f32 %v6658_v5, %v6659_v3  ;;  %v6799_v61 = vsel %vm6779_vm6, %v6653_v49, %v6798_v25  ;;  %v6453_v59 = vcombine.high %v6451_v52, %v6451_v52  ;;  %v6668_v7 = vsel %vm6520_vm4, %v6452_v44, -inf }
 0x38a   : > { %v6663_v27 = vmax.f32 %v6661_v43, %v6662_v19  ;;  %v6669_v48 = vrot.slane %v6668_v7, 4  ;;  %v6675_v34 = vsel %vm6520_vm4, %v6451_v52, -inf  ;;  %v6300_v62 = vmax.f32 %v6284_v18, 0.0 }
 0x38b   : > { %v6676_v4 = vrot.slane %v6675_v34, 4  ;;  %v6682_v42 = vsel %vm6520_vm4, %v6453_v59, -inf  ;;  %v6339_v63 = vsel %vm4059_vm13, %v6302_v40, -inf  ;;  %v6303_v1 = vmax.f32 %v11087_v2, 0.0 }
 0x38c   : > { %v6664_v9 = vrot.slane %v6663_v27, 2  ;;  %v6670_v58 = vmax.f32 %v6668_v7, %v6669_v48  ;;  %v6683_v31 = vrot.slane %v6682_v42, 4  ;;  %6316 = vst.msk [vmem:[%s10930_s25 + $0x60] sm:$0xff] %vm4059_vm13, %v6300_v62  ;;  %v6338_v20 = vsel %vm4059_vm13, %v6300_v62, -inf }
 0x38d   : > { %v6677_v36 = vmax.f32 %v6675_v34, %v6676_v4  ;;  %v6800_v50 = vsel %vm6781_vm10, %v6660_v47, %v6799_v61  ;;  %v6340_v32 = vmax.f32 %v6338_v20, %v6339_v63  ;;  %6319 = vst.msk [vmem:[%s10930_s25 + $0x78] sm:$0xff] %vm4059_vm13, %v6303_v1  ;;  %v6008_v53 = vadd.f32 %v5983_v60, %v10912_v39 }
 0x38e   : > { %v6665_v14 = vmax.f32 %v6663_v27, %v6664_v9  ;;  %v6671_v16 = vrot.slane %v6670_v58, 2  ;;  %v6684_v10 = vmax.f32 %v6682_v42, %v6683_v31  ;;  %v6790_v15 = vsel %vm6789_vm8, %v11038_v57, %v11014_v55 }
 0x38f   : > { %v6678_v54 = vrot.slane %v6677_v36, 2  ;;  %v6454_v30 = vcombine.high %v6340_v32, %v6340_v32  ;;  %v6461_v12 = vrot.slane %v6340_v32, %v10932_v6  ;;  %v6262_v35 = vadd.f32 %v6237_v17, %v6008_v53  ;;  %6816 = vst.msk [vmem:[%s11110_s18] sm:$0xff] %vm4059_vm13, %v6790_v15 }
 0x390   : > { %v6666_v39 = vrot.slane %v6665_v14, 1  ;;  %v6672_v33 = vmax.f32 %v6670_v58, %v6671_v16  ;;  %v6685_v23 = vrot.slane %v6684_v10, 2  ;;  %v6797_v28 = vsel %vm6789_vm8, %v6632_v21, %v11074_v13 }
 0x391   : > { %v6679_v22 = vmax.f32 %v6677_v36, %v6678_v54  ;;  %v6468_v55 = vrot.slane %v6454_v30, %v10932_v6  ;;  %v6469_v57 = vcombine.high %v6461_v12, %v6461_v12  ;;  %v6689_v56 = vsel %vm6520_vm4, %v6461_v12, -inf  ;;  %6817 = vst.msk [vmem:[%s11110_s18 + $0x8] sm:$0xff] %vm4059_vm13, %v6797_v28 }
 0x392   : > { %v6667_v40 = vmax.f32 %v6665_v14, %v6666_v39  ;;  %v6673_v0 = vrot.slane %v6672_v33, 1  ;;  %v6686_v11 = vmax.f32 %v6684_v10, %v6685_v23  ;;  %v6690_v38 = vrot.slane %v6689_v56, 4 }
 0x393   : > { %v6680_v37 = vrot.slane %v6679_v22, 1  ;;  %v6470_v46 = vcombine.high %v6468_v55, %v6468_v55  ;;  %v6696_v8 = vsel %vm6520_vm4, %v6469_v57, -inf  ;;  %v6703_v5 = vsel %vm6520_vm4, %v6468_v55, -inf }
 0x394   : > { %v6674_v26 = vmax.f32 %v6672_v33, %v6673_v0  ;;  %v6687_v13 = vrot.slane %v6686_v11, 1  ;;  %v6801_v21 = vsel %vm6783_vm11, %v6667_v40, %v6800_v50  ;;  %v6691_v45 = vmax.f32 %v6689_v56, %v6690_v38 }
 0x395   : > { %v6681_v29 = vmax.f32 %v6679_v22, %v6680_v37  ;;  %v6697_v49 = vrot.slane %v6696_v8, 4  ;;  %v6704_v24 = vrot.slane %v6703_v5, 4  ;;  %v6710_v51 = vsel %vm6520_vm4, %v6470_v46, -inf }
 0x396   : > { %v6688_v3 = vmax.f32 %v6686_v11, %v6687_v13  ;;  %v6802_v52 = vsel %vm6785_vm14, %v6674_v26, %v6801_v21  ;;  %v6692_v44 = vrot.slane %v6691_v45, 2  ;;  %v6711_v43 = vrot.slane %v6710_v51, 4 }
 0x397   : > { %v6803_v25 = vsel %vm6787_vm12, %v6681_v29, %v6802_v52  ;;  %v6698_v19 = vmax.f32 %v6696_v8, %v6697_v49  ;;  %v6705_v18 = vmax.f32 %v6703_v5, %v6704_v24  ;;  %v6285_v47 = vadd.f32 %v10918_v41, %v6262_v35 }
 0x398   : > { %v6712_v61 = vmax.f32 %v6710_v51, %v6711_v43  ;;  %v6804_v59 = vsel %vm6789_vm8, %v6688_v3, %v6803_v25  ;;  %v6693_v7 = vmax.f32 %v6691_v45, %v6692_v44  ;;  %v6342_v42 = vsel %vm4059_vm13, %v6303_v1, -inf }
 0x399   : > { %v6699_v27 = vrot.slane %v6698_v19, 2  ;;  %v6706_v48 = vrot.slane %v6705_v18, 2  ;;  %v6301_v34 = vmax.f32 %v6285_v47, 0.0  ;;  %6818 = vst.msk [vmem:[%s11110_s18 + $0x10] sm:$0xff] %vm4059_vm13, %v6804_v59 }
 0x39a   : > { %v6713_v62 = vrot.slane %v6712_v61, 2  ;;  %v6694_v9 = vrot.slane %v6693_v7, 1 }
 0x39b   : > { %v6700_v60 = vmax.f32 %v6698_v19, %v6699_v27  ;;  %v6707_v4 = vmax.f32 %v6705_v18, %v6706_v48  ;;  %6317 = vst.msk [vmem:[%s10930_s25 + $0x68] sm:$0xff] %vm4059_vm13, %v6301_v34  ;;  %v6341_v41 = vsel %vm4059_vm13, %v6301_v34, -inf  ;;  %s8226_s25 = scalar_lea.vmem %s8225_s15, 1024 }
 0x39c   : > { %v6343_v63 = vmax.f32 %v6341_v41, %v6342_v42  ;;  %v6714_v31 = vmax.f32 %v6712_v61, %v6713_v62  ;;  %v6695_v14 = vmax.f32 %v6693_v7, %v6694_v9  ;;  %p8228_p3 = scmp.lt.s32.totalorder %s8226_s25, %s8220_s10 }
 0x39d   : > { %v6701_v58 = vrot.slane %v6700_v60, 1  ;;  %v6708_v20 = vrot.slane %v6707_v4, 1 }
 0x39e   : > { %v6471_v36 = vcombine.high %v6343_v63, %v6343_v63  ;;  %v6478_v50 = vrot.slane %v6343_v63, %v10932_v6  ;;  %v6715_v1 = vrot.slane %v6714_v31, 1  ;;  %p8229_p4 = por %p8228_p3, %p8227_p2 }
 0x39f   : > { %v6702_v32 = vmax.f32 %v6700_v60, %v6701_v58  ;;  %v6709_v10 = vmax.f32 %v6707_v4, %v6708_v20 }
 0x3a0   : > { %v6485_v53 = vrot.slane %v6471_v36, %v10932_v6  ;;  %v6486_v17 = vcombine.high %v6478_v50, %v6478_v50  ;;  %v6717_v2 = vsel %vm6520_vm4, %v6478_v50, -inf  ;;  %v6716_v57 = vmax.f32 %v6714_v31, %v6715_v1  ;;  %p8230_p6 = pnand %p8229_p4, %p8223_p1 }
 0x3a1   : > { %v6718_v16 = vrot.slane %v6717_v2, 4  ;;  %v6805_v12 = vsel %vm6777_vm7, %v6702_v32, %v6695_v14 }
 0x3a2   : > { %v6487_v15 = vcombine.high %v6485_v53, %v6485_v53  ;;  %v6724_v54 = vsel %vm6520_vm4, %v6486_v17, -inf  ;;  %v6731_v30 = vsel %vm6520_vm4, %v6485_v53, -inf  ;;  %v6806_v56 = vsel %vm6779_vm6, %v6709_v10, %v6805_v12 }
 0x3a3   : > { %v6719_v35 = vmax.f32 %v6717_v2, %v6718_v16  ;;  %v6725_v39 = vrot.slane %v6724_v54, 4  ;;  %v6732_v33 = vrot.slane %v6731_v30, 4  ;;  %v6807_v26 = vsel %vm6781_vm10, %v6716_v57, %v6806_v56 }
 0x3a4   : > { %v6738_v23 = vsel %vm6520_vm4, %v6487_v15, -inf }
 0x3a5   : > { %v6720_v6 = vrot.slane %v6719_v35, 2  ;;  %v6726_v28 = vmax.f32 %v6724_v54, %v6725_v39  ;;  %v6733_v22 = vmax.f32 %v6731_v30, %v6732_v33  ;;  %v6739_v55 = vrot.slane %v6738_v23, 4 }
 0x3a7   : > { %v6721_v40 = vmax.f32 %v6719_v35, %v6720_v6  ;;  %v6727_v0 = vrot.slane %v6726_v28, 2  ;;  %v6734_v11 = vrot.slane %v6733_v22, 2  ;;  %v6740_v38 = vmax.f32 %v6738_v23, %v6739_v55 }
 0x3a9   : > { %v6722_v37 = vrot.slane %v6721_v40, 1  ;;  %v6728_v46 = vmax.f32 %v6726_v28, %v6727_v0  ;;  %v6735_v8 = vmax.f32 %v6733_v22, %v6734_v11  ;;  %v6741_v5 = vrot.slane %v6740_v38, 2 }
 0x3ab   : > { %v6723_v13 = vmax.f32 %v6721_v40, %v6722_v37  ;;  %v6729_v21 = vrot.slane %v6728_v46, 1  ;;  %v6736_v45 = vrot.slane %v6735_v8, 1  ;;  %v6742_v29 = vmax.f32 %v6740_v38, %v6741_v5 }
 0x3ad   : > { %v6730_v49 = vmax.f32 %v6728_v46, %v6729_v21  ;;  %v6737_v24 = vmax.f32 %v6735_v8, %v6736_v45  ;;  %v6743_v51 = vrot.slane %v6742_v29, 1  ;;  %v6808_v3 = vsel %vm6783_vm11, %v6723_v13, %v6807_v26 }
 0x3af   : > { %v6744_v52 = vmax.f32 %v6742_v29, %v6743_v51  ;;  %v6809_v44 = vsel %vm6785_vm14, %v6730_v49, %v6808_v3 }
 0x3b0   : > { %v6810_v43 = vsel %vm6787_vm12, %v6737_v24, %v6809_v44 }
 0x3b1   : > { %v6811_v25 = vsel %vm6789_vm8, %v6744_v52, %v6810_v43 }
 0x3b2   : > { %6819 = vst.msk [vmem:[%s11110_s18 + $0x18] sm:$0xff] %vm4059_vm13, %v6811_v25 }
 0x3b3   : > { %8233 = shalt.err (!%p8230_p6)
}
 0x3b4   : > { %s8234_s14 = scalar_lea.hbm %s11152_s8, 512  ;;  %s8238_s24 = scalar_lea.hbm %s11219_s6, 2048 }
 0x3b5   : > { %p8235_p8 = scmp.ne.s32.totalorder %s11152_s8, %s8234_s14  ;;  %p8239_p11 = scmp.lt.s32.totalorder %s11152_s8, %s11219_s6 }
 0x3b6   : > { %p8240_p12 = scmp.lt.s32.totalorder %s8238_s24, %s8234_s14 }
 0x3b7   : > { %p8236_p9 = pnand %p8235_p8, %p8406_p5 }
 0x3b8   : > { %p8241_p13 = por %p8240_p12, %p8239_p11 }
 0x3b9   : > { %p8237_p10 = pneg %p8236_p9 }
 0x3bb   : > { %p8242_p0 = pnand %p8241_p13, %p8237_p10 }
 0x3bd   : > { %8245 = shalt.err (!%p8242_p0)
}
 0x3be   : > { %s8316_s10 = smov 128   ;;  %s8317_s13 = smov 8  }
 0x3bf   : > { %8092 = dma.vmem_to_hbm [thread:$0]  (%p8406_p5), %s11154_s19, 512, %s11152_s8, %s11162_s9, %s8316_s10, %s8316_s10, %s8317_s13  }
 0x3c0 PF: > { %p8098_p1 = scmp.ge.s32.totalorder %s8312_s28, 2  ;;  %s6873_s15 = sand.u32 1, %s8284_s21  }
 0x3c1   : > { %s6874_s25 = scalar_lea.sflag [#allocation4], %s6873_s15 }
 0x3c2   : > { %p8095_p2 = pnand %p8098_p1, %p8412_p7 }
 0x3c4   : > { %p8096_p3 = pneg %p8095_p2 }
 0x3c6   : > { %8279 = dma.done.wait (%p8096_p3), %s6874_s25, 512  }
 0x3c7   : > { %8281 = vsyncadd (%p8096_p3), %s6874_s25, 4294966784  ;;  %s20_s28 = sadd.s32 1, %s8312_s28   ;;  %s11342_s21 = smov %s8288_s22 }
 0x3c8   : > { %p17_p4 = scmp.ge.s32.totalorder %s20_s28, 6   ;;  %s11343_s22 = smov %s8292_s23 }
 0x3c9   : > { %s11344_s23 = smov %s8422_s17  ;;  %s11345_s24 = smov %s8304_s26 }
 0x3ca   : > { %s11346_s25 = smov %s8308_s27  ;;  %s11347_s26 = smov %s11350_s30 }
 0x3cb   : > { %s11348_s27 = smov %s11354_s7  ;;  %19 = sbr.rel (!%p17_p4) target bundleno = 5 (0x5), region = 107 }
 0x3d0   :  { %6879 = vsyncpa [#allocation4], 1 }
 0x3d1   :  { %6881 = vsyncpa [#allocation4 + $0x1], 1 }

</bundles_post_ra>
